<compile_context>
chip_gen: v7x
topology: tpu7x:2x2x1
jax: 0.10.0
libtpu: 0.0.40
codegen_flags: <defaults>
</compile_context>

<pallas_src>
import functools

import jax
import jax.numpy as jnp
from jax.experimental import pallas as pl
from jax.experimental.pallas import tpu as pltpu


def _round_up(x, m):
    return ((x + m - 1) // m) * m


# ---------------------------------------------------------------------------
# Generation-aware hardware info (VMEM capacity, #TensorCores heuristic).
# ---------------------------------------------------------------------------
@functools.lru_cache(maxsize=1)
def _tpu_hw_info():
    kind = ""
    try:
        kind = jax.devices()[0].device_kind.lower()
    except Exception:
        pass
    vmem = None
    try:
        vmem = int(pltpu.get_tpu_info().vmem_capacity_bytes)
    except Exception:
        vmem = None
    if vmem is None:
        # v5e / v6e: 128 MiB per TensorCore; v7x: 64 MiB. Unknown -> conservative.
        vmem = (128 << 20) if ("v5" in kind or "v6" in kind) else (64 << 20)
    # Chips with 2 TensorCores per chip benefit from >=2 "parallel" grid steps.
    two_tc = any(t in kind for t in ("v7", "v4", "v5p"))
    return vmem, two_tc


def _pick_tile(n_rows, row_bytes, budget_bytes, *, min_tiles=1, hard_bytes=None):
    """Largest tile that (a) is a multiple of 8 dividing n_rows (layout rule for
    the 2-D per-row blocks) or covers all rows, (b) fits `budget_bytes`, and
    (c) leaves at least `min_tiles` grid steps (so both TensorCores get work
    on two-core chips)."""
    budget_rows = max(1, budget_bytes // max(row_bytes, 1))
    cap = min(n_rows, budget_rows, max(1, n_rows // max(min_tiles, 1)))
    if cap >= n_rows:
        return n_rows
    for d in range((cap // 8) * 8, 7, -8):
        if n_rows % d == 0:
            return d
    # No multiple-of-8 divisor fits the budget / core split.
    # TODO(synk): support a masked partial last tile (pl.cdiv grid) instead of
    # requiring the tile to divide the axis.
    if hard_bytes is not None and n_rows * row_bytes > hard_bytes:
        raise ValueError(
            f"no valid tile for axis of size {n_rows}: pad it to a multiple "
            f"of 8 (per-row bytes={row_bytes}, budget={budget_bytes})")
    return n_rows


# ---------------------------------------------------------------------------
# Edge-update kernel (+ fused A-side node MLP): tiled over A, "parallel".
# ---------------------------------------------------------------------------
def edge_kernel(edge_ref, a_bias_ref, a_node_ref, b_proj_ref,
                w1e_ref, w2_ref, b2_ref, w3m_ref, w4_ref, b4_ref,
                edge_out_ref, a_out_ref, msg_b_ref):
    TA, B, E2 = edge_ref.shape
    E = w2_ref.shape[0]

    # ---- edge MLP -------------------------------------------------------
    # concat([a, b, e]) @ W1 decomposed into three dots; the small a/b
    # projections (plus b1) are hoisted to the wrapper, so only the big
    # e @ W1e dot runs per tile. Edge traffic may be bf16; accumulate in f32.
    e2d = edge_ref[...].astype(jnp.float32).reshape(TA * B, E2)
    e_proj = jnp.dot(e2d, w1e_ref[...],
                     preferred_element_type=jnp.float32).reshape(TA, B, E)
    h1 = jnp.maximum(
        e_proj + a_bias_ref[...][:, None, :] + b_proj_ref[...][None, :, :], 0.0)
    h2 = jnp.maximum(
        jnp.dot(h1.reshape(TA * B, E), w2_ref[...],
                preferred_element_type=jnp.float32) + b2_ref[...],
        0.0).reshape(TA, B, E)

    edge_out_ref[...] = h2
    # Partial sum over this tile's A rows; reduced across tiles outside the
    # grid (keeps the A axis reduction-free, i.e. safely "parallel").
    msg_b_ref[...] = jnp.sum(h2, axis=0, keepdims=True)          # (1, B, E)

    # ---- node MLP for this tile's A rows (msg_a complete per tile) -------
    # a_node_ref already holds nodes_a @ W3n + b3 (hoisted), so the concat
    # ([x, msg] @ W3) is just one extra dot here and never touches HBM.
    msg_a = jnp.sum(h2, axis=1)                                   # (TA, E)
    h = jnp.maximum(
        a_node_ref[...] + jnp.dot(msg_a, w3m_ref[...],
                                  preferred_element_type=jnp.float32), 0.0)
    a_out_ref[...] = jnp.maximum(
        jnp.dot(h, w4_ref[...], preferred_element_type=jnp.float32) + b4_ref[...],
        0.0)


# ---------------------------------------------------------------------------
# B-side node MLP: tiled over B rows (decomposed W3, no concats).
# ---------------------------------------------------------------------------
def node_b_kernel(b_node_ref, msg_b_ref, w3m_ref, w4_ref, b4_ref, out_ref):
    h = jnp.maximum(
        b_node_ref[...] + jnp.dot(msg_b_ref[...], w3m_ref[...],
                                  preferred_element_type=jnp.float32), 0.0)
    out_ref[...] = jnp.maximum(
        jnp.dot(h, w4_ref[...], preferred_element_type=jnp.float32) + b4_ref[...],
        0.0)


# ---------------------------------------------------------------------------
# Wrapper.
# ---------------------------------------------------------------------------
@functools.partial(jax.jit, static_argnames=("ta", "tb", "vmem_limit"))
def _forward(edge_embeds, nodes_a, nodes_b, params, *, ta, tb, vmem_limit):
    A, B, E2 = edge_embeds.shape
    N = nodes_a.shape[1]
    E = params["w2"].shape[0]
    assert A % ta == 0 and (ta % 8 == 0 or ta == A), "invalid A tile"
    assert B % tb == 0 and (tb % 8 == 0 or tb == B), "invalid B tile"
    n_ta = A // ta
    esize = jnp.dtype(edge_embeds.dtype).itemsize

    # Hoisted small projections (K = node_dim / edge_dim dots, dominated by MXU
    # fill/drain if done per grid step): done once in XLA, biases folded in.
    a_bias = nodes_a @ params["w1a"] + params["b1"]   # (A, E)
    b_proj = nodes_b @ params["w1b"]                  # (B, E)
    a_node = nodes_a @ params["w3n"] + params["b3"]   # (A, N)
    b_node = nodes_b @ params["w3n"] + params["b3"]   # (B, N)

    def resident(shape):
        # Constant index_map: Mosaic keeps these blocks in VMEM across the grid
        # without re-fetching. TODO(synk): sweep pl.Buffered(3) on the edge
        # input spec only (profile-guided) on v7x.
        zeros = (0,) * len(shape)
        return pl.BlockSpec(shape, lambda i, _z=zeros: _z)

    # Edge kernel cost (edge MLP + fused A-node MLP only).
    flops = 2 * A * B * (E2 * E + E * E) + 2 * A * (E * N + N * N)
    bytes_accessed = (A * B * E2 * esize + A * B * E * 4
                      + A * (E + 2 * N) * 4 + B * E * 4 + n_ta * B * E * 4
                      + 4 * (2 * E * E + E * E + E + E * N + N * N + N))

    edge_out, a_out, msg_b_part = pl.pallas_call(
        edge_kernel,
        out_shape=(
            jax.ShapeDtypeStruct((A, B, E), jnp.float32),   # updated edges
            jax.ShapeDtypeStruct((A, N), jnp.float32),      # updated A nodes
            jax.ShapeDtypeStruct((n_ta, B, E), jnp.float32)  # msg_b partials
        ),
        grid=(n_ta,),
        in_specs=[
            pl.BlockSpec((ta, B, E2), lambda i: (i, 0, 0)),   # edge tile
            pl.BlockSpec((ta, E), lambda i: (i, 0)),          # a@W1a + b1 tile
            pl.BlockSpec((ta, N), lambda i: (i, 0)),          # a@W3n + b3 tile
            resident((B, E)),                                 # b@W1b (resident)
            resident(params["w1e"].shape), resident(params["w2"].shape),
            resident(params["b2"].shape),
            resident(params["w3m"].shape), resident(params["w4"].shape),
            resident(params["b4"].shape),
        ],
        out_specs=(
            pl.BlockSpec((ta, B, E), lambda i: (i, 0, 0)),
            pl.BlockSpec((ta, N), lambda i: (i, 0)),
            pl.BlockSpec((1, B, E), lambda i: (i, 0, 0)),
        ),
        compiler_params=pltpu.CompilerParams(
            dimension_semantics=("parallel",),
            vmem_limit_bytes=vmem_limit),
        cost_estimate=pl.CostEstimate(flops=int(flops), transcendentals=0,
                                      bytes_accessed=int(bytes_accessed)),
    )(edge_embeds, a_bias, a_node, b_proj,
      params["w1e"], params["w2"], params["b2"],
      params["w3m"], params["w4"], params["b4"])

    # Cross-tile reduction for messages to B (tiny (n_ta, B, E) sum).
    msg_b = jnp.sum(msg_b_part, axis=0)               # (B, E)
    # TODO(synk): with edge_dim padded to 128 lanes, emit msg_b_part as a
    # lane-dense (n_ta, B*E) slab to avoid masked partial stores.

    node_flops = 2 * B * (E * N + N * N)
    node_bytes = 4 * (B * (2 * N + E) + E * N + N * N + N)
    b_out = pl.pallas_call(
        node_b_kernel,
        out_shape=jax.ShapeDtypeStruct((B, N), jnp.float32),
        grid=(B // tb,),
        in_specs=[
            pl.BlockSpec((tb, N), lambda i: (i, 0)),          # b@W3n + b3 tile
            pl.BlockSpec((tb, E), lambda i: (i, 0)),          # msg_b tile
            resident(params["w3m"].shape), resident(params["w4"].shape),
            resident(params["b4"].shape),
        ],
        out_specs=pl.BlockSpec((tb, N), lambda i: (i, 0)),
        compiler_params=pltpu.CompilerParams(
            dimension_semantics=("parallel",),
            vmem_limit_bytes=vmem_limit),
        cost_estimate=pl.CostEstimate(flops=int(node_flops), transcendentals=0,
                                      bytes_accessed=int(node_bytes)),
    )(b_node, msg_b, params["w3m"], params["w4"], params["b4"])

    return edge_out, a_out, b_out


def bipartite_mp(edge_embeds, nodes_a, nodes_b, params, *, ta=None, tb=None):
    """Forward pass. edge_embeds may be float32 or bfloat16; all accumulation
    is float32 and outputs are float32 (matching the PyTorch module)."""
    vmem_cap, two_tc = _tpu_hw_info()
    A, B, E2 = edge_embeds.shape
    N = nodes_a.shape[1]
    E = params["w2"].shape[0]
    esize = jnp.dtype(edge_embeds.dtype).itemsize

    if ta is None:
        # Double-buffered, lane-padded per-A-row VMEM bytes of the tiled blocks.
        row_bytes = 2 * (B * (_round_up(E2, 128) * esize + _round_up(E, 128) * 4)
                         + (_round_up(E, 128) + 2 * _round_up(N, 128)) * 4)
        ta = _pick_tile(A, row_bytes, int(vmem_cap * 0.30),
                        min_tiles=2 if two_tc else 1,
                        hard_bytes=int(vmem_cap * 0.70))
    if tb is None:
        row_bytes_b = 2 * (_round_up(E, 128) + 2 * _round_up(N, 128)) * 4
        tb = _pick_tile(B, row_bytes_b, int(vmem_cap * 0.30))

    # ~48 MiB on v7x (64 MiB physical), ~96 MiB on v5e/v6e (128 MiB physical).
    vmem_limit = int(vmem_cap * 3 // 4)
    return _forward(edge_embeds, nodes_a, nodes_b, params,
                    ta=int(ta), tb=int(tb), vmem_limit=vmem_limit)


# ---------------------------------------------------------------------------
# Pure-JAX reference mirroring the PyTorch module exactly.
# ---------------------------------------------------------------------------
def reference(edge, a, b, p):
    A, B, _ = edge.shape
    a_b = jnp.broadcast_to(a[:, None, :], (A, B, a.shape[1]))
    b_b = jnp.broadcast_to(b[None, :, :], (A, B, b.shape[1]))
    edge_in = jnp.concatenate([a_b, b_b, edge], axis=-1)
    w1 = jnp.concatenate([p["w1a"], p["w1b"], p["w1e"]], axis=0)
    h1 = jnp.maximum(edge_in @ w1 + p["b1"], 0.0)
    h2 = jnp.maximum(h1 @ p["w2"] + p["b2"], 0.0)
    msg_a = h2.sum(axis=1)
    msg_b = h2.sum(axis=0)
    w3 = jnp.concatenate([p["w3n"], p["w3m"]], axis=0)
    ha = jnp.maximum(jnp.concatenate([a, msg_a], -1) @ w3 + p["b3"], 0.0)
    a_out = jnp.maximum(ha @ p["w4"] + p["b4"], 0.0)
    hb = jnp.maximum(jnp.concatenate([b, msg_b], -1) @ w3 + p["b3"], 0.0)
    b_out = jnp.maximum(hb @ p["w4"] + p["b4"], 0.0)
    return h2, a_out, b_out


def init_params(key, node_dim, edge_dim):
    ks = jax.random.split(key, 10)
    s = 0.1
    return {
        # edge_mlp layer 1: Linear(2*node_dim + 2*edge_dim, edge_dim), split on in_dim
        "w1a": s * jax.random.normal(ks[0], (node_dim, edge_dim), jnp.float32),
        "w1b": s * jax.random.normal(ks[1], (node_dim, edge_dim), jnp.float32),
        "w1e": s * jax.random.normal(ks[2], (2 * edge_dim, edge_dim), jnp.float32),
        "b1": s * jax.random.normal(ks[3], (1, edge_dim), jnp.float32),
        # edge_mlp layer 2: Linear(edge_dim, edge_dim)
        "w2": s * jax.random.normal(ks[4], (edge_dim, edge_dim), jnp.float32),
        "b2": s * jax.random.normal(ks[5], (1, edge_dim), jnp.float32),
        # node_mlp layer 1: Linear(node_dim + edge_dim, node_dim), split on in_dim
        "w3n": s * jax.random.normal(ks[6], (node_dim, node_dim), jnp.float32),
        "w3m": s * jax.random.normal(ks[7], (edge_dim, node_dim), jnp.float32),
        "b3": s * jax.random.normal(ks[8], (1, node_dim), jnp.float32),
        # node_mlp layer 2: Linear(node_dim, node_dim)
        "w4": s * jax.random.normal(ks[9], (node_dim, node_dim), jnp.float32),
        "b4": jnp.zeros((1, node_dim), jnp.float32),
    }


if __name__ == "__main__":
    A, B = 64, 16
    node_dim, edge_dim = 32, 32
    # TODO(synk): for production shapes, pad node_dim/edge_dim to multiples of
    # 128 so every block is lane-dense (avoids 25%-utilized vregs and masked
    # stores), and optionally emit edge_out in bf16 if downstream tolerates it.

    key = jax.random.PRNGKey(0)
    k_e, k_a, k_b, k_p = jax.random.split(key, 4)
    edge_f32 = jax.random.normal(k_e, (A, B, 2 * edge_dim), jnp.float32)
    nodes_a = jax.random.normal(k_a, (A, node_dim), jnp.float32)
    nodes_b = jax.random.normal(k_b, (B, node_dim), jnp.float32)
    params = init_params(k_p, node_dim, edge_dim)

    # bf16 edge traffic (dominant HBM stream); compute still accumulates in f32.
    edge_bf16 = edge_f32.astype(jnp.bfloat16)

    # 1) generation-aware auto tiling, bf16 edges.
    edge1, a_out1, b_out1 = bipartite_mp(edge_bf16, nodes_a, nodes_b, params)
    # 2) forced multi-tile grids (exercises the msg_b partial reduction), f32.
    edge2, a_out2, b_out2 = bipartite_mp(edge_f32, nodes_a, nodes_b, params,
                                         ta=16, tb=8)
    jax.block_until_ready((edge1, a_out1, b_out1, edge2, a_out2, b_out2))

    ref_e16, ref_a16, ref_b16 = reference(edge_bf16.astype(jnp.float32),
                                          nodes_a, nodes_b, params)
    ref_e32, ref_a32, ref_b32 = reference(edge_f32, nodes_a, nodes_b, params)

    checks = [(edge1, ref_e16), (a_out1, ref_a16), (b_out1, ref_b16),
              (edge2, ref_e32), (a_out2, ref_a32), (b_out2, ref_b32)]
    for got, ref in checks:
        assert jnp.allclose(got, ref, atol=2e-3, rtol=2e-3), \
            float(jnp.max(jnp.abs(got - ref)))

    print("KERNEL_OK")
</pallas_src>

<mosaic_0001>
module attributes {stable_mosaic.version = 11 : i64} {
  func.func @edge_kernel(%arg0: i32, %arg1: memref<64x16x64xbf16, #tpu.memory_space<vmem>>, %arg2: memref<64x32xf32, #tpu.memory_space<vmem>>, %arg3: memref<64x32xf32, #tpu.memory_space<vmem>>, %arg4: memref<16x32xf32, #tpu.memory_space<vmem>>, %arg5: memref<64x32xf32, #tpu.memory_space<vmem>>, %arg6: memref<32x32xf32, #tpu.memory_space<vmem>>, %arg7: memref<1x32xf32, #tpu.memory_space<vmem>>, %arg8: memref<32x32xf32, #tpu.memory_space<vmem>>, %arg9: memref<32x32xf32, #tpu.memory_space<vmem>>, %arg10: memref<1x32xf32, #tpu.memory_space<vmem>>, %arg11: memref<64x16x32xf32, #tpu.memory_space<vmem>>, %arg12: memref<64x32xf32, #tpu.memory_space<vmem>>, %arg13: memref<1x16x32xf32, #tpu.memory_space<vmem>>) attributes {dimension_semantics = [#tpu.dimension_semantics<parallel>], iteration_bounds = array<i64: 1>, scalar_prefetch = 0 : i64, scratch_operands = 0 : i64, tpu.core_type = #tpu.core_type<tc>, window_params = [{transform_indices = @transform_0, window_bounds = array<i64: 64, 16, 64>}, {transform_indices = @transform_1, window_bounds = array<i64: 64, 32>}, {transform_indices = @transform_2, window_bounds = array<i64: 64, 32>}, {pipeline_mode = #tpu.pipeline_mode<synchronous>, transform_indices = @transform_3, window_bounds = array<i64: 16, 32>}, {pipeline_mode = #tpu.pipeline_mode<synchronous>, transform_indices = @transform_4, window_bounds = array<i64: 64, 32>}, {pipeline_mode = #tpu.pipeline_mode<synchronous>, transform_indices = @transform_5, window_bounds = array<i64: 32, 32>}, {pipeline_mode = #tpu.pipeline_mode<synchronous>, transform_indices = @transform_6, window_bounds = array<i64: 1, 32>}, {pipeline_mode = #tpu.pipeline_mode<synchronous>, transform_indices = @transform_7, window_bounds = array<i64: 32, 32>}, {pipeline_mode = #tpu.pipeline_mode<synchronous>, transform_indices = @transform_8, window_bounds = array<i64: 32, 32>}, {pipeline_mode = #tpu.pipeline_mode<synchronous>, transform_indices = @transform_9, window_bounds = array<i64: 1, 32>}, {transform_indices = @transform_10, window_bounds = array<i64: 64, 16, 32>}, {transform_indices = @transform_11, window_bounds = array<i64: 64, 32>}, {transform_indices = @transform_12, window_bounds = array<i64: 1, 16, 32>}]} {
    %c0 = arith.constant 0 : index
    %c0_0 = arith.constant 0 : index
    %c0_1 = arith.constant 0 : index
    %0 = vector.load %arg1[%c0, %c0_0, %c0_1] : memref<64x16x64xbf16, #tpu.memory_space<vmem>>, vector<64x16x64xbf16>
    %1 = arith.extf %0 : vector<64x16x64xbf16> to vector<64x16x64xf32>
    %2 = vector.shape_cast %1 : vector<64x16x64xf32> to vector<1024x64xf32>
    %c0_2 = arith.constant 0 : index
    %c0_3 = arith.constant 0 : index
    %3 = vector.load %arg5[%c0_2, %c0_3] : memref<64x32xf32, #tpu.memory_space<vmem>>, vector<64x32xf32>
    %cst = arith.constant dense<0.000000e+00> : vector<1024x32xf32>
    %4 = tpu.matmul %2, %3, %cst {dimension_numbers = #tpu.dot_dimension_numbers<[1], [0], [0], [1], [0, 0, 1, 1], [], []>} : vector<1024x64xf32>, vector<64x32xf32>, vector<1024x32xf32> -> vector<1024x32xf32>
    %5 = vector.shape_cast %4 : vector<1024x32xf32> to vector<64x16x32xf32>
    %c0_4 = arith.constant 0 : index
    %c0_5 = arith.constant 0 : index
    %6 = vector.load %arg2[%c0_4, %c0_5] : memref<64x32xf32, #tpu.memory_space<vmem>>, vector<64x32xf32>
    %7 = vector.shape_cast %6 : vector<64x32xf32> to vector<64x1x32xf32>
    %8 = vector.broadcast %7 : vector<64x1x32xf32> to vector<64x16x32xf32>
    %9 = arith.addf %5, %8 : vector<64x16x32xf32>
    %c0_6 = arith.constant 0 : index
    %c0_7 = arith.constant 0 : index
    %10 = vector.load %arg4[%c0_6, %c0_7] : memref<16x32xf32, #tpu.memory_space<vmem>>, vector<16x32xf32>
    %11 = vector.shape_cast %10 : vector<16x32xf32> to vector<1x16x32xf32>
    %12 = vector.broadcast %11 : vector<1x16x32xf32> to vector<64x16x32xf32>
    %13 = arith.addf %9, %12 : vector<64x16x32xf32>
    %cst_8 = arith.constant 0.000000e+00 : f32
    %14 = vector.broadcast %cst_8 : f32 to vector<64x16x32xf32>
    %15 = arith.maximumf %13, %14 : vector<64x16x32xf32>
    %16 = vector.shape_cast %15 : vector<64x16x32xf32> to vector<1024x32xf32>
    %c0_9 = arith.constant 0 : index
    %c0_10 = arith.constant 0 : index
    %17 = vector.load %arg6[%c0_9, %c0_10] : memref<32x32xf32, #tpu.memory_space<vmem>>, vector<32x32xf32>
    %cst_11 = arith.constant dense<0.000000e+00> : vector<1024x32xf32>
    %18 = tpu.matmul %16, %17, %cst_11 {dimension_numbers = #tpu.dot_dimension_numbers<[1], [0], [0], [1], [0, 0, 1, 1], [], []>} : vector<1024x32xf32>, vector<32x32xf32>, vector<1024x32xf32> -> vector<1024x32xf32>
    %c0_12 = arith.constant 0 : index
    %c0_13 = arith.constant 0 : index
    %19 = vector.load %arg7[%c0_12, %c0_13] : memref<1x32xf32, #tpu.memory_space<vmem>>, vector<1x32xf32>
    %20 = vector.broadcast %19 : vector<1x32xf32> to vector<1024x32xf32>
    %21 = arith.addf %18, %20 : vector<1024x32xf32>
    %cst_14 = arith.constant 0.000000e+00 : f32
    %22 = vector.broadcast %cst_14 : f32 to vector<1024x32xf32>
    %23 = arith.maximumf %21, %22 : vector<1024x32xf32>
    %24 = vector.shape_cast %23 : vector<1024x32xf32> to vector<64x16x32xf32>
    %c0_15 = arith.constant 0 : index
    %c0_16 = arith.constant 0 : index
    %c0_17 = arith.constant 0 : index
    %25 = vector.load %arg11[%c0_15, %c0_16, %c0_17] : memref<64x16x32xf32, #tpu.memory_space<vmem>>, vector<64x16x32xf32>
    tpu.vector_store %arg11[%c0_15, %c0_16, %c0_17], %24 {strides = array<i32>} : memref<64x16x32xf32, #tpu.memory_space<vmem>>, vector<64x16x32xf32>,
    %cst_18 = arith.constant dense<0.000000e+00> : vector<16x32xf32>
    %26 = vector.multi_reduction <add>, %24, %cst_18 [0] : vector<64x16x32xf32> to vector<16x32xf32>
    %27 = vector.shape_cast %26 : vector<16x32xf32> to vector<1x16x32xf32>
    %c0_19 = arith.constant 0 : index
    %c0_20 = arith.constant 0 : index
    %c0_21 = arith.constant 0 : index
    %28 = vector.load %arg13[%c0_19, %c0_20, %c0_21] : memref<1x16x32xf32, #tpu.memory_space<vmem>>, vector<1x16x32xf32>
    tpu.vector_store %arg13[%c0_19, %c0_20, %c0_21], %27 {strides = array<i32>} : memref<1x16x32xf32, #tpu.memory_space<vmem>>, vector<1x16x32xf32>,
    %cst_22 = arith.constant dense<0.000000e+00> : vector<64x32xf32>
    %29 = vector.multi_reduction <add>, %24, %cst_22 [1] : vector<64x16x32xf32> to vector<64x32xf32>
    %c0_23 = arith.constant 0 : index
    %c0_24 = arith.constant 0 : index
    %30 = vector.load %arg3[%c0_23, %c0_24] : memref<64x32xf32, #tpu.memory_space<vmem>>, vector<64x32xf32>
    %c0_25 = arith.constant 0 : index
    %c0_26 = arith.constant 0 : index
    %31 = vector.load %arg8[%c0_25, %c0_26] : memref<32x32xf32, #tpu.memory_space<vmem>>, vector<32x32xf32>
    %cst_27 = arith.constant dense<0.000000e+00> : vector<64x32xf32>
    %32 = tpu.matmul %29, %31, %cst_27 {dimension_numbers = #tpu.dot_dimension_numbers<[1], [0], [0], [1], [0, 0, 1, 1], [], []>} : vector<64x32xf32>, vector<32x32xf32>, vector<64x32xf32> -> vector<64x32xf32>
    %33 = arith.addf %30, %32 : vector<64x32xf32>
    %cst_28 = arith.constant 0.000000e+00 : f32
    %34 = vector.broadcast %cst_28 : f32 to vector<64x32xf32>
    %35 = arith.maximumf %33, %34 : vector<64x32xf32>
    %c0_29 = arith.constant 0 : index
    %c0_30 = arith.constant 0 : index
    %36 = vector.load %arg9[%c0_29, %c0_30] : memref<32x32xf32, #tpu.memory_space<vmem>>, vector<32x32xf32>
    %cst_31 = arith.constant dense<0.000000e+00> : vector<64x32xf32>
    %37 = tpu.matmul %35, %36, %cst_31 {dimension_numbers = #tpu.dot_dimension_numbers<[1], [0], [0], [1], [0, 0, 1, 1], [], []>} : vector<64x32xf32>, vector<32x32xf32>, vector<64x32xf32> -> vector<64x32xf32>
    %c0_32 = arith.constant 0 : index
    %c0_33 = arith.constant 0 : index
    %38 = vector.load %arg10[%c0_32, %c0_33] : memref<1x32xf32, #tpu.memory_space<vmem>>, vector<1x32xf32>
    %39 = vector.broadcast %38 : vector<1x32xf32> to vector<64x32xf32>
    %40 = arith.addf %37, %39 : vector<64x32xf32>
    %cst_34 = arith.constant 0.000000e+00 : f32
    %41 = vector.broadcast %cst_34 : f32 to vector<64x32xf32>
    %42 = arith.maximumf %40, %41 : vector<64x32xf32>
    %c0_35 = arith.constant 0 : index
    %c0_36 = arith.constant 0 : index
    %43 = vector.load %arg12[%c0_35, %c0_36] : memref<64x32xf32, #tpu.memory_space<vmem>>, vector<64x32xf32>
    tpu.vector_store %arg12[%c0_35, %c0_36], %42 {strides = array<i32>} : memref<64x32xf32, #tpu.memory_space<vmem>>, vector<64x32xf32>,
    return
  }
  func.func @transform_0(%arg0: i32) -> (i32, i32, i32) {
    %c0_i32 = arith.constant 0 : i32
    %c0_i32_0 = arith.constant 0 : i32
    %c0_i32_1 = arith.constant 0 : i32
    return %arg0, %c0_i32, %c0_i32_0 : i32, i32, i32
  }
  func.func @transform_1(%arg0: i32) -> (i32, i32) {
    %c0_i32 = arith.constant 0 : i32
    %c0_i32_0 = arith.constant 0 : i32
    return %arg0, %c0_i32 : i32, i32
  }
  func.func @transform_2(%arg0: i32) -> (i32, i32) {
    %c0_i32 = arith.constant 0 : i32
    %c0_i32_0 = arith.constant 0 : i32
    return %arg0, %c0_i32 : i32, i32
  }
  func.func @transform_3(%arg0: i32) -> (i32, i32) {
    %c0_i32 = arith.constant 0 : i32
    %c0_i32_0 = arith.constant 0 : i32
    %c0_i32_1 = arith.constant 0 : i32
    return %c0_i32, %c0_i32_0 : i32, i32
  }
  func.func @transform_4(%arg0: i32) -> (i32, i32) {
    %c0_i32 = arith.constant 0 : i32
    %c0_i32_0 = arith.constant 0 : i32
    %c0_i32_1 = arith.constant 0 : i32
    return %c0_i32, %c0_i32_0 : i32, i32
  }
  func.func @transform_5(%arg0: i32) -> (i32, i32) {
    %c0_i32 = arith.constant 0 : i32
    %c0_i32_0 = arith.constant 0 : i32
    %c0_i32_1 = arith.constant 0 : i32
    return %c0_i32, %c0_i32_0 : i32, i32
  }
  func.func @transform_6(%arg0: i32) -> (i32, i32) {
    %c0_i32 = arith.constant 0 : i32
    %c0_i32_0 = arith.constant 0 : i32
    %c0_i32_1 = arith.constant 0 : i32
    return %c0_i32, %c0_i32_0 : i32, i32
  }
  func.func @transform_7(%arg0: i32) -> (i32, i32) {
    %c0_i32 = arith.constant 0 : i32
    %c0_i32_0 = arith.constant 0 : i32
    %c0_i32_1 = arith.constant 0 : i32
    return %c0_i32, %c0_i32_0 : i32, i32
  }
  func.func @transform_8(%arg0: i32) -> (i32, i32) {
    %c0_i32 = arith.constant 0 : i32
    %c0_i32_0 = arith.constant 0 : i32
    %c0_i32_1 = arith.constant 0 : i32
    return %c0_i32, %c0_i32_0 : i32, i32
  }
  func.func @transform_9(%arg0: i32) -> (i32, i32) {
    %c0_i32 = arith.constant 0 : i32
    %c0_i32_0 = arith.constant 0 : i32
    %c0_i32_1 = arith.constant 0 : i32
    return %c0_i32, %c0_i32_0 : i32, i32
  }
  func.func @transform_10(%arg0: i32) -> (i32, i32, i32) {
    %c0_i32 = arith.constant 0 : i32
    %c0_i32_0 = arith.constant 0 : i32
    %c0_i32_1 = arith.constant 0 : i32
    return %arg0, %c0_i32, %c0_i32_0 : i32, i32, i32
  }
  func.func @transform_11(%arg0: i32) -> (i32, i32) {
    %c0_i32 = arith.constant 0 : i32
    %c0_i32_0 = arith.constant 0 : i32
    return %arg0, %c0_i32 : i32, i32
  }
  func.func @transform_12(%arg0: i32) -> (i32, i32, i32) {
    %c0_i32 = arith.constant 0 : i32
    %c0_i32_0 = arith.constant 0 : i32
    %c0_i32_1 = arith.constant 0 : i32
    return %arg0, %c0_i32, %c0_i32_0 : i32, i32, i32
  }
}

module attributes {stable_mosaic.version = 11 : i64} {
  func.func @node_b_kernel(%arg0: i32, %arg1: memref<16x32xf32, #tpu.memory_space<vmem>>, %arg2: memref<16x32xf32, #tpu.memory_space<vmem>>, %arg3: memref<32x32xf32, #tpu.memory_space<vmem>>, %arg4: memref<32x32xf32, #tpu.memory_space<vmem>>, %arg5: memref<1x32xf32, #tpu.memory_space<vmem>>, %arg6: memref<16x32xf32, #tpu.memory_space<vmem>>) attributes {dimension_semantics = [#tpu.dimension_semantics<parallel>], iteration_bounds = array<i64: 1>, scalar_prefetch = 0 : i64, scratch_operands = 0 : i64, tpu.core_type = #tpu.core_type<tc>, window_params = [{transform_indices = @transform_0, window_bounds = array<i64: 16, 32>}, {transform_indices = @transform_1, window_bounds = array<i64: 16, 32>}, {pipeline_mode = #tpu.pipeline_mode<synchronous>, transform_indices = @transform_2, window_bounds = array<i64: 32, 32>}, {pipeline_mode = #tpu.pipeline_mode<synchronous>, transform_indices = @transform_3, window_bounds = array<i64: 32, 32>}, {pipeline_mode = #tpu.pipeline_mode<synchronous>, transform_indices = @transform_4, window_bounds = array<i64: 1, 32>}, {transform_indices = @transform_5, window_bounds = array<i64: 16, 32>}]} {
    %c0 = arith.constant 0 : index
    %c0_0 = arith.constant 0 : index
    %0 = vector.load %arg1[%c0, %c0_0] : memref<16x32xf32, #tpu.memory_space<vmem>>, vector<16x32xf32>
    %c0_1 = arith.constant 0 : index
    %c0_2 = arith.constant 0 : index
    %1 = vector.load %arg2[%c0_1, %c0_2] : memref<16x32xf32, #tpu.memory_space<vmem>>, vector<16x32xf32>
    %c0_3 = arith.constant 0 : index
    %c0_4 = arith.constant 0 : index
    %2 = vector.load %arg3[%c0_3, %c0_4] : memref<32x32xf32, #tpu.memory_space<vmem>>, vector<32x32xf32>
    %cst = arith.constant dense<0.000000e+00> : vector<16x32xf32>
    %3 = tpu.matmul %1, %2, %cst {dimension_numbers = #tpu.dot_dimension_numbers<[1], [0], [0], [1], [0, 0, 1, 1], [], []>} : vector<16x32xf32>, vector<32x32xf32>, vector<16x32xf32> -> vector<16x32xf32>
    %4 = arith.addf %0, %3 : vector<16x32xf32>
    %cst_5 = arith.constant 0.000000e+00 : f32
    %5 = vector.broadcast %cst_5 : f32 to vector<16x32xf32>
    %6 = arith.maximumf %4, %5 : vector<16x32xf32>
    %c0_6 = arith.constant 0 : index
    %c0_7 = arith.constant 0 : index
    %7 = vector.load %arg4[%c0_6, %c0_7] : memref<32x32xf32, #tpu.memory_space<vmem>>, vector<32x32xf32>
    %cst_8 = arith.constant dense<0.000000e+00> : vector<16x32xf32>
    %8 = tpu.matmul %6, %7, %cst_8 {dimension_numbers = #tpu.dot_dimension_numbers<[1], [0], [0], [1], [0, 0, 1, 1], [], []>} : vector<16x32xf32>, vector<32x32xf32>, vector<16x32xf32> -> vector<16x32xf32>
    %c0_9 = arith.constant 0 : index
    %c0_10 = arith.constant 0 : index
    %9 = vector.load %arg5[%c0_9, %c0_10] : memref<1x32xf32, #tpu.memory_space<vmem>>, vector<1x32xf32>
    %10 = vector.broadcast %9 : vector<1x32xf32> to vector<16x32xf32>
    %11 = arith.addf %8, %10 : vector<16x32xf32>
    %cst_11 = arith.constant 0.000000e+00 : f32
    %12 = vector.broadcast %cst_11 : f32 to vector<16x32xf32>
    %13 = arith.maximumf %11, %12 : vector<16x32xf32>
    %c0_12 = arith.constant 0 : index
    %c0_13 = arith.constant 0 : index
    %14 = vector.load %arg6[%c0_12, %c0_13] : memref<16x32xf32, #tpu.memory_space<vmem>>, vector<16x32xf32>
    tpu.vector_store %arg6[%c0_12, %c0_13], %13 {strides = array<i32>} : memref<16x32xf32, #tpu.memory_space<vmem>>, vector<16x32xf32>,
    return
  }
  func.func @transform_0(%arg0: i32) -> (i32, i32) {
    %c0_i32 = arith.constant 0 : i32
    %c0_i32_0 = arith.constant 0 : i32
    return %arg0, %c0_i32 : i32, i32
  }
  func.func @transform_1(%arg0: i32) -> (i32, i32) {
    %c0_i32 = arith.constant 0 : i32
    %c0_i32_0 = arith.constant 0 : i32
    return %arg0, %c0_i32 : i32, i32
  }
  func.func @transform_2(%arg0: i32) -> (i32, i32) {
    %c0_i32 = arith.constant 0 : i32
    %c0_i32_0 = arith.constant 0 : i32
    %c0_i32_1 = arith.constant 0 : i32
    return %c0_i32, %c0_i32_0 : i32, i32
  }
  func.func @transform_3(%arg0: i32) -> (i32, i32) {
    %c0_i32 = arith.constant 0 : i32
    %c0_i32_0 = arith.constant 0 : i32
    %c0_i32_1 = arith.constant 0 : i32
    return %c0_i32, %c0_i32_0 : i32, i32
  }
  func.func @transform_4(%arg0: i32) -> (i32, i32) {
    %c0_i32 = arith.constant 0 : i32
    %c0_i32_0 = arith.constant 0 : i32
    %c0_i32_1 = arith.constant 0 : i32
    return %c0_i32, %c0_i32_0 : i32, i32
  }
  func.func @transform_5(%arg0: i32) -> (i32, i32) {
    %c0_i32 = arith.constant 0 : i32
    %c0_i32_0 = arith.constant 0 : i32
    return %arg0, %c0_i32 : i32, i32
  }
}

</mosaic_0001>

<bundles_post_ra>
// kernel: _forward.3
= control target key start
LH: loop header
LB: loop body
LE: loop exit
PB: predicated region body
PF: predicated region fallthrough
CT: control target
= control target key end

     0   :  { %vm29_vm0 = vcmask 261120   ;;  %s399_s0 = inlined_call_operand.vmem [shape: f32[16,32], index: 0, kind: input, shape index: {}]   ;;  %s400_s1 = inlined_call_operand.vmem [shape: f32[16,32], index: 1, kind: input, shape index: {}]   ;;  %s401_s2 = inlined_call_operand.vmem [shape: f32[32,32], index: 2, kind: input, shape index: {}]   ;;  %s402_s3 = inlined_call_operand.vmem [shape: f32[32,32], index: 3, kind: input, shape index: {}]   ;;  %s403_s4 = inlined_call_operand.vmem [shape: f32[1,32], index: 4, kind: input, shape index: {}]   ;;  %s404_s5 = inlined_call_operand.hbm [shape: f32[16,32], index: 5, kind: output, shape index: {}]  }
   0x1   :  { %v25_v0 = vld [vmem:[%s401_s2] sm:$0xff]  ;;  %v26_v1 = vld [vmem:[%s401_s2 + $0x8] sm:$0xff]  ;;  %v27_v2 = vld [vmem:[%s401_s2 + $0x10] sm:$0xff] }
   0x2   :  { %v266_v3 = vpack.c.bf16 %v26_v1, %v25_v0  ;;  %v28_v4 = vld [vmem:[%s401_s2 + $0x18] sm:$0xff]  ;;  %v23_v5 = vld [vmem:[%s400_s1] sm:$0xff]  ;;  %v116_v8 = vld [vmem:[%s402_s3 + $0x8] sm:$0xff] }
   0x3   :  { %v270_v6 = vpack.c.bf16 %v28_v4, %v27_v2  ;;  %252 = vmatprep.mubr.msk.f32.mxu0 %vm29_vm0, %v23_v5  ;;  %v115_v7 = vld [vmem:[%s402_s3] sm:$0xff] }
   0x4   :  { %267 = vmatprep.subr.bf16.mxu0 %v266_v3  ;;  %v274_v9 = vpack.c.bf16 %v116_v8, %v115_v7 }
   0x5   :  { %10 = vsyncpa [#allocation3], 0  ;;  %269 = vmatpush3.bf16.msra.mxu0 %v266_v3  ;;  %v24_v10 = vld [vmem:[%s400_s1 + $0x8] sm:$0xff]  ;;  %v117_v11 = vld [vmem:[%s402_s3 + $0x10] sm:$0xff]  ;;  %s309_s16 = smov [#allocation2]  }
   0x6   :  { %271 = vmatprep.subr.bf16.mxu0 %v270_v6  ;;  %275 = vmatprep.subr.bf16.mxu1 %v274_v9  ;;  %v118_v12 = vld [vmem:[%s402_s3 + $0x18] sm:$0xff]  ;;  %v22_v14 = vld [vmem:[%s399_s0 + $0x8] sm:$0xff]  ;;  %v21_v15 = vld [vmem:[%s399_s0] sm:$0xff]  ;;  %s216_s17 = sshll.u32 %s309_s16, 4  ;;  %s217_s17 = int_to_ptr.vmem [resolvable:$true] %s216_s17 }
   0x7   :  { %277 = vmatpush3.bf16.msra.mxu1 %v274_v9  ;;  %v278_v13 = vpack.c.bf16 %v118_v12, %v117_v11  ;;  %v229_v22 = vld [vmem:[%s403_s4] ss:$0 sm:$0xff]  ;;  %s285_s0 = scalar_lea.vmem %s217_s17, 256  ;;  %p290_p1 = scmp.lt.s32.totalorder %s217_s17, %s217_s17 }
   0x8   :  { %p286_p0 = scmp.ne.s32.totalorder %s217_s17, %s285_s0  ;;  %p291_p2 = scmp.lt.s32.totalorder %s285_s0, %s285_s0 }
   0x9   :  { %273 = vmatpush3.bf16.msra.mxu0 %v270_v6  ;;  %279 = vmatprep.subr.bf16.mxu1 %v278_v13 }
   0xa   :  { %p292_p3 = por %p291_p2, %p290_p1 }
   0xb   :  { %281 = vmatpush3.bf16.msra.mxu1 %v278_v13 }
   0xc   :  { %253 = vmatmul.mubr.msk.f32.vlgmr.msra.gmra.mrb[0].mxu0 %vm29_vm0, %v24_v10  ;;  %p293_p4 = pnand %p292_p3, %p286_p0 }
  0xdf   :  { %v254_v16 = vpop.f32.mrb[0].mxu0 }
  0xe0   :  { %v112_v17 = vadd.f32 %v254_v16, %v22_v14  ;;  %v102_v18 = vpop.f32.mrb[1].mxu0 }
  0xe1   :  { %v111_v19 = vadd.f32 %v102_v18, %v21_v15 }
  0xe2   :  { %v114_v21 = vmax.f32 %v112_v17, 0.0 }
  0xe3   :  { %v113_v20 = vmax.f32 %v111_v19, 0.0 }
  0xe5   :  { %263 = vmatprep.mubr.msk.f32.mxu1 %vm29_vm0, %v113_v20 }
  0xe6   :  { %264 = vmatmul.mubr.msk.f32.vlgmr.msra.gmra.mrb[0].mxu1 %vm29_vm0, %v114_v21 }
 0x1b9   :  { %v265_v23 = vpop.f32.mrb[0].mxu1 }
 0x1ba   :  { %v204_v24 = vadd.f32 %v265_v23, %v229_v22  ;;  %v198_v25 = vpop.f32.mrb[1].mxu1 }
 0x1bb   :  { %v199_v26 = vadd.f32 %v229_v22, %v198_v25 }
 0x1bc   :  { %v208_v27 = vmax.f32 %v204_v24, 0.0 }
 0x1bd   :  { %v207_v28 = vmax.f32 %v199_v26, 0.0 }
 0x1be   :  { %210 = vst.msk [vmem:[#allocation2 + $0x8] sm:$0xff] %vm29_vm0, %v208_v27 }
 0x1bf   :  { %209 = vst.msk [vmem:[#allocation2] sm:$0xff] %vm29_vm0, %v207_v28 }
 0x1c0   :  { %296 = shalt.err (!%p293_p4)
}
 0x1c1   :  { %s297_s19 = scalar_lea.hbm %s404_s5, 256 }
 0x1c2   :  { %p298_p5 = scmp.ne.s32.totalorder %s404_s5, %s297_s19  ;;  %p301_p6 = scmp.lt.u32.totalorder %s297_s19, %s404_s5 }
 0x1c4   :  { %p303_p7 = pnand %p301_p6, %p298_p5 }
 0x1c6   :  { %306 = shalt.err (!%p303_p7)
}
 0x1c7   :  { %s310_s24 = smov 128   ;;  %s311_s25 = smov 8  }
 0x1c8   :  { %222 = dma.vmem_to_hbm [thread:$0]  %s217_s17, 256, %s404_s5, [#allocation3], %s310_s24, %s310_s24, %s311_s25  }
 0x1c9   :  { %307 = dma.done.wait [#allocation3], 256  }
 0x1ca   :  { %308 = vsyncadd [#allocation3], 4294967040 }
 0x1cb   :  { %226 = vsyncpa [#allocation3], 1 }

// kernel: _forward.2
= control target key start
LH: loop header
LB: loop body
LE: loop exit
PB: predicated region body
PF: predicated region fallthrough
CT: control target
= control target key end

     0   :  { %18 = vsyncpa [#allocation3], 0  ;;  %s6442_s21 = smov [#allocation2]   ;;  %s8189_s0 = inlined_call_operand.hbm [shape: bf16[64,16,64], index: 0, kind: input, shape index: {}]   ;;  %s8190_s1 = inlined_call_operand.vmem [shape: f32[64,32], index: 1, kind: input, shape index: {}]   ;;  %s8191_s2 = inlined_call_operand.vmem [shape: f32[64,32], index: 2, kind: input, shape index: {}]   ;;  %s8192_s3 = inlined_call_operand.vmem [shape: f32[16,32], index: 3, kind: input, shape index: {}]   ;;  %s8193_s4 = inlined_call_operand.vmem [shape: f32[64,32], index: 4, kind: input, shape index: {}]   ;;  %s8194_s5 = inlined_call_operand.vmem [shape: f32[32,32], index: 5, kind: input, shape index: {}]   ;;  %s8195_s6 = inlined_call_operand.vmem [shape: f32[1,32], index: 6, kind: input, shape index: {}]   ;;  %s8196_s7 = inlined_call_operand.vmem [shape: f32[32,32], index: 7, kind: input, shape index: {}]   ;;  %s8197_s8 = inlined_call_operand.vmem [shape: f32[32,32], index: 8, kind: input, shape index: {}]   ;;  %s8198_s9 = inlined_call_operand.vmem [shape: f32[1,32], index: 9, kind: input, shape index: {}]   ;;  %s8199_s10 = inlined_call_operand.vmem [shape: f32[64,16,32], index: 10, kind: output, shape index: {0}]   ;;  %s8200_s11 = inlined_call_operand.vmem [shape: f32[64,32], index: 11, kind: output, shape index: {1}]   ;;  %s8201_s12 = inlined_call_operand.vmem [shape: f32[1,16,32], index: 12, kind: output, shape index: {2}]  }
   0x1   :  { %s24_s22 = sshll.u32 %s6442_s21, 4  ;;  %s6418_s25 = scalar_lea.hbm %s8189_s0, 8192  ;;  %s25_s22 = int_to_ptr.vmem [resolvable:$true] %s24_s22 }
   0x2   :  { %p6419_p0 = scmp.ne.s32.totalorder %s8189_s0, %s6418_s25  ;;  %p6422_p1 = scmp.lt.u32.totalorder %s6418_s25, %s8189_s0 }
   0x4   :  { %p6424_p2 = pnand %p6422_p1, %p6419_p0 }
   0x6   :  { %6427 = shalt.err (!%p6424_p2)
}
   0x7   :  { %s6428_s30 = scalar_lea.vmem %s25_s22, 8192  ;;  %p6433_p4 = scmp.lt.s32.totalorder %s25_s22, %s25_s22 }
   0x8   :  { %p6429_p3 = scmp.ne.s32.totalorder %s25_s22, %s6428_s30  ;;  %p6434_p5 = scmp.lt.s32.totalorder %s6428_s30, %s6428_s30 }
   0xa   :  { %p6435_p6 = por %p6434_p5, %p6433_p4 }
   0xc   :  { %p6436_p7 = pnand %p6435_p6, %p6429_p3 }
   0xe   :  { %6439 = shalt.err (!%p6436_p7)
}
   0xf   :  { %s6443_s13 = smov 64   ;;  %s6444_s14 = smov 4  }
  0x10   :  { %30 = dma.hbm_to_vmem [thread:$0]  %s8189_s0, 8192, %s25_s22, [#allocation3], %s6443_s13, %s6443_s13, %s6444_s14  }
  0x11   :  { %6440 = dma.done.wait [#allocation3], 8192  }
  0x12   :  { %6441 = vsyncadd [#allocation3], 4294959104  ;;  %v308_v0 = vld [vmem:[%s8193_s4] sm:$0xff]  ;;  %v309_v1 = vld [vmem:[%s8193_s4 + $0x8] sm:$0xff]  ;;  %vm316_vm0 = vcmask 523264   ;;  %vm2531_vm1 = vcmask 261120  }
  0x13   :  { %v310_v2 = vld [vmem:[%s8193_s4 + $0x10] sm:$0xff]  ;;  %v6359_v3 = vpack.c.bf16 %v309_v1, %v308_v0  ;;  %v311_v4 = vld [vmem:[%s8193_s4 + $0x18] sm:$0xff]  ;;  %v312_v6 = vld [vmem:[%s8193_s4 + $0x20] sm:$0xff]  ;;  %vm4657_vm2 = vcmask 1041409   ;;  %vm4659_vm3 = vcmask 1042434   ;;  %vm4661_vm4 = vcmask 1043459  }
  0x14   :  { %v6363_v5 = vpack.c.bf16 %v311_v4, %v310_v2  ;;  %v313_v7 = vld [vmem:[%s8193_s4 + $0x28] sm:$0xff]  ;;  %v5301_v8 = vld [vmem:[#allocation2] sm:$0xff]   ;;  %v314_v11 = vld [vmem:[%s8193_s4 + $0x30] sm:$0xff]  ;;  %vm4663_vm5 = vcmask 1044484   ;;  %vm4665_vm6 = vcmask 1045509   ;;  %vm4667_vm7 = vcmask 1046534  }
  0x15   :  { %6360 = vmatprep.subr.bf16.mxu0 %v6359_v3  ;;  %v5302_v9 = vunpack.c.l.bf16 %v5301_v8  ;;  %v6367_v10 = vpack.c.bf16 %v313_v7, %v312_v6  ;;  %v315_v12 = vld [vmem:[%s8193_s4 + $0x38] sm:$0xff]  ;;  %v5556_v14 = vld [vmem:[#allocation2 + $0x8] sm:$0xff]   ;;  %v5303_v15 = vunpack.c.h.bf16 %v5301_v8  ;;  %v5557_v17 = vld [vmem:[#allocation2 + $0x10] sm:$0xff]   ;;  %vm4669_vm8 = vcmask 1047559  }
  0x16   :  { %6362 = vmatpush3.bf16.msra.mxu0 %v6359_v3  ;;  %v6371_v13 = vpack.c.bf16 %v315_v12, %v314_v11  ;;  %v5306_v16 = vunpack.c.l.bf16 %v5556_v14  ;;  %v5307_v18 = vunpack.c.h.bf16 %v5556_v14  ;;  %v5310_v19 = vunpack.c.l.bf16 %v5557_v17  ;;  %v5558_v20 = vld [vmem:[#allocation2 + $0x18] sm:$0xff]   ;;  %v5559_v23 = vld [vmem:[#allocation2 + $0x20] sm:$0xff]   ;;  %v5560_v26 = vld [vmem:[#allocation2 + $0x28] sm:$0xff]  }
  0x17   :  { %6364 = vmatprep.subr.bf16.mxu0 %v6363_v5  ;;  %5927 = vmatprep.mubr.msk.f32.mxu0 %vm316_vm0, %v5302_v9  ;;  %v5311_v21 = vunpack.c.h.bf16 %v5557_v17  ;;  %v5314_v22 = vunpack.c.l.bf16 %v5558_v20  ;;  %v5315_v24 = vunpack.c.h.bf16 %v5558_v20  ;;  %v5318_v25 = vunpack.c.l.bf16 %v5559_v23  ;;  %v5561_v29 = vld [vmem:[#allocation2 + $0x30] sm:$0xff]   ;;  %v5562_v32 = vld [vmem:[#allocation2 + $0x38] sm:$0xff]   ;;  %v5563_v35 = vld [vmem:[#allocation2 + $0x40] sm:$0xff]  }
  0x18   :  { %v5319_v27 = vunpack.c.h.bf16 %v5559_v23  ;;  %v5322_v28 = vunpack.c.l.bf16 %v5560_v26  ;;  %v5323_v30 = vunpack.c.h.bf16 %v5560_v26  ;;  %v5326_v31 = vunpack.c.l.bf16 %v5561_v29  ;;  %v5564_v38 = vld [vmem:[#allocation2 + $0x48] sm:$0xff]   ;;  %v5565_v41 = vld [vmem:[#allocation2 + $0x50] sm:$0xff]   ;;  %v5566_v44 = vld [vmem:[#allocation2 + $0x58] sm:$0xff]  }
  0x19   :  { %v5327_v33 = vunpack.c.h.bf16 %v5561_v29  ;;  %v5330_v34 = vunpack.c.l.bf16 %v5562_v32  ;;  %v5331_v36 = vunpack.c.h.bf16 %v5562_v32  ;;  %v5334_v37 = vunpack.c.l.bf16 %v5563_v35  ;;  %v5567_v47 = vld [vmem:[#allocation2 + $0x60] sm:$0xff]   ;;  %v5568_v50 = vld [vmem:[#allocation2 + $0x68] sm:$0xff]   ;;  %v5569_v53 = vld [vmem:[#allocation2 + $0x70] sm:$0xff]  }
  0x1a   :  { %6366 = vmatpush3.bf16.msra.mxu0 %v6363_v5  ;;  %v5335_v39 = vunpack.c.h.bf16 %v5563_v35  ;;  %v5338_v40 = vunpack.c.l.bf16 %v5564_v38  ;;  %v5339_v42 = vunpack.c.h.bf16 %v5564_v38  ;;  %v5342_v43 = vunpack.c.l.bf16 %v5565_v41  ;;  %v5570_v56 = vld [vmem:[#allocation2 + $0x78] sm:$0xff]   ;;  %v5571_v59 = vld [vmem:[#allocation2 + $0x80] sm:$0xff]   ;;  %v5572_v62 = vld [vmem:[#allocation2 + $0x88] sm:$0xff]  }
  0x1b   :  { %6368 = vmatprep.subr.bf16.mxu0 %v6367_v10  ;;  %v5343_v45 = vunpack.c.h.bf16 %v5565_v41  ;;  %v5346_v46 = vunpack.c.l.bf16 %v5566_v44  ;;  %v5347_v48 = vunpack.c.h.bf16 %v5566_v44  ;;  %v5350_v49 = vunpack.c.l.bf16 %v5567_v47  ;;  %v5573_v1 = vld [vmem:[#allocation2 + $0x90] sm:$0xff]   ;;  %v5574_v4 = vld [vmem:[#allocation2 + $0x98] sm:$0xff]   ;;  %v5575_v7 = vld [vmem:[#allocation2 + $0xa0] sm:$0xff]  }
  0x1c   :  { %v5351_v51 = vunpack.c.h.bf16 %v5567_v47  ;;  %v5354_v52 = vunpack.c.l.bf16 %v5568_v50  ;;  %v5355_v54 = vunpack.c.h.bf16 %v5568_v50  ;;  %v5358_v55 = vunpack.c.l.bf16 %v5569_v53  ;;  %v2521_v17 = vld [vmem:[%s8194_s5 + $0x8] sm:$0xff]  ;;  %v2523_v23 = vld [vmem:[%s8194_s5 + $0x18] sm:$0xff] }
  0x1d   :  { %v5359_v57 = vunpack.c.h.bf16 %v5569_v53  ;;  %v5362_v58 = vunpack.c.l.bf16 %v5570_v56  ;;  %v5363_v60 = vunpack.c.h.bf16 %v5570_v56  ;;  %v5366_v61 = vunpack.c.l.bf16 %v5571_v59 }
  0x1e   :  { %6370 = vmatpush3.bf16.msra.mxu0 %v6367_v10  ;;  %v5367_v63 = vunpack.c.h.bf16 %v5571_v59  ;;  %v5370_v0 = vunpack.c.l.bf16 %v5572_v62  ;;  %v5371_v2 = vunpack.c.h.bf16 %v5572_v62  ;;  %v5374_v3 = vunpack.c.l.bf16 %v5573_v1  ;;  %v5576_v10 = vld [vmem:[#allocation2 + $0xa8] sm:$0xff]  }
  0x1f   :  { %6372 = vmatprep.subr.bf16.mxu0 %v6371_v13  ;;  %v5375_v5 = vunpack.c.h.bf16 %v5573_v1  ;;  %v5378_v6 = vunpack.c.l.bf16 %v5574_v4  ;;  %v5379_v8 = vunpack.c.h.bf16 %v5574_v4  ;;  %v5382_v9 = vunpack.c.l.bf16 %v5575_v7 }
  0x20   :  { %v5383_v11 = vunpack.c.h.bf16 %v5575_v7  ;;  %v5386_v12 = vunpack.c.l.bf16 %v5576_v10  ;;  %v5387_v14 = vunpack.c.h.bf16 %v5576_v10 }
  0x22   :  { %6374 = vmatpush3.bf16.msra.mxu0 %v6371_v13  ;;  %v5577_v13 = vld [vmem:[#allocation2 + $0xb0] sm:$0xff]  }
  0x23   :  { %v5391_v20 = vunpack.c.h.bf16 %v5577_v13 }
  0x25   :  { %5928 = vmatmul.mubr.msk.f32.vlgmr.msra.gmra.mrb[0].mxu0 %vm316_vm0, %v5303_v15  ;;  %v5390_v15 = vunpack.c.l.bf16 %v5577_v13 }
  0x26   :  { %5930 = vmatprep.mubr.msk.f32.mxu0 %vm316_vm0, %v5306_v16  ;;  %v2520_v16 = vld [vmem:[%s8194_s5] sm:$0xff] }
  0x29   :  { %5931 = vmatmul.mubr.msk.f32.gmra.mrb[2].mxu0 %vm316_vm0, %v5307_v18  ;;  %v5578_v18 = vld [vmem:[#allocation2 + $0xb8] sm:$0xff]  }
  0x2a   :  { %5933 = vmatprep.mubr.msk.f32.mxu0 %vm316_vm0, %v5310_v19  ;;  %v6375_v19 = vpack.c.bf16 %v2521_v17, %v2520_v16  ;;  %v5395_v26 = vunpack.c.h.bf16 %v5578_v18 }
  0x2c   :  { %6376 = vmatprep.subr.bf16.mxu1 %v6375_v19 }
  0x2d   :  { %5934 = vmatmul.mubr.msk.f32.gmra.mrb[4].mxu0 %vm316_vm0, %v5311_v21  ;;  %v5394_v21 = vunpack.c.l.bf16 %v5578_v18  ;;  %6378 = vmatpush3.bf16.msra.mxu1 %v6375_v19  ;;  %v5598_v18 = vld [vmem:[#allocation2 + $0x158] sm:$0xff]  }
  0x2e   :  { %5936 = vmatprep.mubr.msk.f32.mxu0 %vm316_vm0, %v5314_v22  ;;  %v2522_v22 = vld [vmem:[%s8194_s5 + $0x10] sm:$0xff] }
  0x31   :  { %5937 = vmatmul.mubr.msk.f32.gmra.mrb[6].mxu0 %vm316_vm0, %v5315_v24  ;;  %v5579_v24 = vld [vmem:[#allocation2 + $0xc0] sm:$0xff]  }
  0x32   :  { %5939 = vmatprep.mubr.msk.f32.mxu0 %vm316_vm0, %v5318_v25  ;;  %v6379_v25 = vpack.c.bf16 %v2523_v23, %v2522_v22  ;;  %v5399_v29 = vunpack.c.h.bf16 %v5579_v24  ;;  %v5475_v22 = vunpack.c.h.bf16 %v5598_v18 }
  0x34   :  { %6380 = vmatprep.subr.bf16.mxu1 %v6379_v25 }
  0x35   :  { %5940 = vmatmul.mubr.msk.f32.gmra.mrb[8].mxu0 %vm316_vm0, %v5319_v27  ;;  %v5398_v27 = vunpack.c.l.bf16 %v5579_v24  ;;  %6382 = vmatpush3.bf16.msra.mxu1 %v6379_v25  ;;  %v5600_v24 = vld [vmem:[#allocation2 + $0x168] sm:$0xff]  }
  0x36   :  { %5942 = vmatprep.mubr.msk.f32.mxu0 %vm316_vm0, %v5322_v28  ;;  %v5580_v28 = vld [vmem:[#allocation2 + $0xc8] sm:$0xff]  }
  0x37   :  { %v5403_v32 = vunpack.c.h.bf16 %v5580_v28 }
  0x39   :  { %5943 = vmatmul.mubr.msk.f32.gmra.mrb[10].mxu0 %vm316_vm0, %v5323_v30  ;;  %v5402_v30 = vunpack.c.l.bf16 %v5580_v28  ;;  %v5483_v28 = vunpack.c.h.bf16 %v5600_v24 }
  0x3a   :  { %5945 = vmatprep.mubr.msk.f32.mxu0 %vm316_vm0, %v5326_v31  ;;  %v5581_v31 = vld [vmem:[#allocation2 + $0xd0] sm:$0xff]  }
  0x3b   :  { %v5407_v35 = vunpack.c.h.bf16 %v5581_v31 }
  0x3d   :  { %5946 = vmatmul.mubr.msk.f32.gmra.mrb[12].mxu0 %vm316_vm0, %v5327_v33  ;;  %v5406_v33 = vunpack.c.l.bf16 %v5581_v31 }
  0x3e   :  { %5948 = vmatprep.mubr.msk.f32.mxu0 %vm316_vm0, %v5330_v34  ;;  %v5582_v34 = vld [vmem:[#allocation2 + $0xd8] sm:$0xff]  }
  0x3f   :  { %v5411_v38 = vunpack.c.h.bf16 %v5582_v34 }
  0x41   :  { %5949 = vmatmul.mubr.msk.f32.gmra.mrb[14].mxu0 %vm316_vm0, %v5331_v36  ;;  %v5410_v36 = vunpack.c.l.bf16 %v5582_v34 }
  0x42   :  { %5951 = vmatprep.mubr.msk.f32.mxu0 %vm316_vm0, %v5334_v37  ;;  %v5583_v37 = vld [vmem:[#allocation2 + $0xe0] sm:$0xff]  }
  0x43   :  { %v5415_v41 = vunpack.c.h.bf16 %v5583_v37 }
  0x45   :  { %5952 = vmatmul.mubr.msk.f32.gmra.mrb[16].mxu0 %vm316_vm0, %v5335_v39  ;;  %v5414_v39 = vunpack.c.l.bf16 %v5583_v37 }
  0x46   :  { %5954 = vmatprep.mubr.msk.f32.mxu0 %vm316_vm0, %v5338_v40  ;;  %v5584_v40 = vld [vmem:[#allocation2 + $0xe8] sm:$0xff]  }
  0x47   :  { %v5419_v44 = vunpack.c.h.bf16 %v5584_v40 }
  0x49   :  { %5955 = vmatmul.mubr.msk.f32.gmra.mrb[18].mxu0 %vm316_vm0, %v5339_v42  ;;  %v5418_v42 = vunpack.c.l.bf16 %v5584_v40  ;;  %v1426_v40 = vlaneseq }
  0x4a   :  { %5957 = vmatprep.mubr.msk.f32.mxu0 %vm316_vm0, %v5342_v43  ;;  %v5585_v43 = vld [vmem:[#allocation2 + $0xf0] sm:$0xff]  }
  0x4b   :  { %v5423_v47 = vunpack.c.h.bf16 %v5585_v43 }
  0x4d   :  { %5958 = vmatmul.mubr.msk.f32.gmra.mrb[20].mxu0 %vm316_vm0, %v5343_v45  ;;  %v5422_v45 = vunpack.c.l.bf16 %v5585_v43 }
  0x4e   :  { %5960 = vmatprep.mubr.msk.f32.mxu0 %vm316_vm0, %v5346_v46  ;;  %v5586_v46 = vld [vmem:[#allocation2 + $0xf8] sm:$0xff]  }
  0x4f   :  { %v5427_v50 = vunpack.c.h.bf16 %v5586_v46 }
  0x51   :  { %5961 = vmatmul.mubr.msk.f32.gmra.mrb[22].mxu0 %vm316_vm0, %v5347_v48  ;;  %v5426_v48 = vunpack.c.l.bf16 %v5586_v46 }
  0x52   :  { %5963 = vmatprep.mubr.msk.f32.mxu0 %vm316_vm0, %v5350_v49  ;;  %v5587_v49 = vld [vmem:[#allocation2 + $0x100] sm:$0xff]  }
  0x53   :  { %v5431_v53 = vunpack.c.h.bf16 %v5587_v49 }
  0x55   :  { %5964 = vmatmul.mubr.msk.f32.gmra.mrb[24].mxu0 %vm316_vm0, %v5351_v51  ;;  %v5430_v51 = vunpack.c.l.bf16 %v5587_v49 }
  0x56   :  { %5966 = vmatprep.mubr.msk.f32.mxu0 %vm316_vm0, %v5354_v52  ;;  %v5588_v52 = vld [vmem:[#allocation2 + $0x108] sm:$0xff]  }
  0x57   :  { %v5435_v56 = vunpack.c.h.bf16 %v5588_v52 }
  0x59   :  { %5967 = vmatmul.mubr.msk.f32.gmra.mrb[26].mxu0 %vm316_vm0, %v5355_v54  ;;  %v5434_v54 = vunpack.c.l.bf16 %v5588_v52  ;;  %v5607_v52 = vld [vmem:[#allocation2 + $0x1a0] sm:$0xff]  }
  0x5a   :  { %5969 = vmatprep.mubr.msk.f32.mxu0 %vm316_vm0, %v5358_v55  ;;  %v5589_v55 = vld [vmem:[#allocation2 + $0x110] sm:$0xff]  }
  0x5b   :  { %v5439_v59 = vunpack.c.h.bf16 %v5589_v55 }
  0x5d   :  { %5970 = vmatmul.mubr.msk.f32.gmra.mrb[28].mxu0 %vm316_vm0, %v5359_v57  ;;  %v5438_v57 = vunpack.c.l.bf16 %v5589_v55  ;;  %v5510_v55 = vunpack.c.l.bf16 %v5607_v52 }
  0x5e   :  { %5972 = vmatprep.mubr.msk.f32.mxu0 %vm316_vm0, %v5362_v58  ;;  %v5590_v58 = vld [vmem:[#allocation2 + $0x118] sm:$0xff]  }
  0x5f   :  { %v5443_v62 = vunpack.c.h.bf16 %v5590_v58 }
  0x61   :  { %5973 = vmatmul.mubr.msk.f32.gmra.mrb[30].mxu0 %vm316_vm0, %v5363_v60  ;;  %v5442_v60 = vunpack.c.l.bf16 %v5590_v58 }
  0x62   :  { %5975 = vmatprep.mubr.msk.f32.mxu0 %vm316_vm0, %v5366_v61  ;;  %v5591_v61 = vld [vmem:[#allocation2 + $0x120] sm:$0xff]  }
  0x63   :  { %v5447_v1 = vunpack.c.h.bf16 %v5591_v61 }
  0x65   :  { %5976 = vmatmul.mubr.msk.f32.gmra.mrb[32].mxu0 %vm316_vm0, %v5367_v63  ;;  %v5446_v63 = vunpack.c.l.bf16 %v5591_v61 }
  0x66   :  { %5978 = vmatprep.mubr.msk.f32.mxu0 %vm316_vm0, %v5370_v0  ;;  %v5592_v0 = vld [vmem:[#allocation2 + $0x128] sm:$0xff]  }
  0x67   :  { %v5451_v4 = vunpack.c.h.bf16 %v5592_v0 }
  0x69   :  { %5979 = vmatmul.mubr.msk.f32.gmra.mrb[34].mxu0 %vm316_vm0, %v5371_v2  ;;  %v5450_v2 = vunpack.c.l.bf16 %v5592_v0 }
  0x6a   :  { %5981 = vmatprep.mubr.msk.f32.mxu0 %vm316_vm0, %v5374_v3  ;;  %v5593_v3 = vld [vmem:[#allocation2 + $0x130] sm:$0xff]  }
  0x6b   :  { %v5455_v7 = vunpack.c.h.bf16 %v5593_v3 }
  0x6d   :  { %5982 = vmatmul.mubr.msk.f32.gmra.mrb[36].mxu0 %vm316_vm0, %v5375_v5  ;;  %v5454_v5 = vunpack.c.l.bf16 %v5593_v3  ;;  %v5610_v3 = vld [vmem:[#allocation2 + $0x1b8] sm:$0xff]  }
  0x6e   :  { %5984 = vmatprep.mubr.msk.f32.mxu0 %vm316_vm0, %v5378_v6  ;;  %v5594_v6 = vld [vmem:[#allocation2 + $0x138] sm:$0xff]  }
  0x6f   :  { %v5459_v10 = vunpack.c.h.bf16 %v5594_v6 }
  0x71   :  { %5985 = vmatmul.mubr.msk.f32.gmra.mrb[38].mxu0 %vm316_vm0, %v5379_v8  ;;  %v5458_v8 = vunpack.c.l.bf16 %v5594_v6 }
  0x72   :  { %5987 = vmatprep.mubr.msk.f32.mxu0 %vm316_vm0, %v5382_v9  ;;  %v5595_v9 = vld [vmem:[#allocation2 + $0x140] sm:$0xff]  }
  0x73   :  { %v5463_v13 = vunpack.c.h.bf16 %v5595_v9 }
  0x75   :  { %5988 = vmatmul.mubr.msk.f32.gmra.mrb[40].mxu0 %vm316_vm0, %v5383_v11  ;;  %v5462_v11 = vunpack.c.l.bf16 %v5595_v9 }
  0x76   :  { %5990 = vmatprep.mubr.msk.f32.mxu0 %vm316_vm0, %v5386_v12  ;;  %v5596_v12 = vld [vmem:[#allocation2 + $0x148] sm:$0xff]  }
  0x77   :  { %v5467_v16 = vunpack.c.h.bf16 %v5596_v12 }
  0x79   :  { %5991 = vmatmul.mubr.msk.f32.gmra.mrb[42].mxu0 %vm316_vm0, %v5387_v14  ;;  %v5466_v14 = vunpack.c.l.bf16 %v5596_v12 }
  0x7a   :  { %5993 = vmatprep.mubr.msk.f32.mxu0 %vm316_vm0, %v5390_v15  ;;  %v5597_v15 = vld [vmem:[#allocation2 + $0x150] sm:$0xff]  }
  0x7b   :  { %v5470_v17 = vunpack.c.l.bf16 %v5597_v15  ;;  %v5471_v19 = vunpack.c.h.bf16 %v5597_v15 }
  0x7d   :  { %5994 = vmatmul.mubr.msk.f32.gmra.mrb[44].mxu0 %vm316_vm0, %v5391_v20  ;;  %v5474_v20 = vunpack.c.l.bf16 %v5598_v18 }
  0x7e   :  { %5996 = vmatprep.mubr.msk.f32.mxu0 %vm316_vm0, %v5394_v21  ;;  %v5599_v21 = vld [vmem:[#allocation2 + $0x160] sm:$0xff]  }
  0x7f   :  { %v5478_v23 = vunpack.c.l.bf16 %v5599_v21  ;;  %v5479_v25 = vunpack.c.h.bf16 %v5599_v21 }
  0x81   :  { %5997 = vmatmul.mubr.msk.f32.gmra.mrb[46].mxu0 %vm316_vm0, %v5395_v26  ;;  %v5482_v26 = vunpack.c.l.bf16 %v5600_v24 }
  0x82   :  { %5999 = vmatprep.mubr.msk.f32.mxu0 %vm316_vm0, %v5398_v27  ;;  %v5601_v27 = vld [vmem:[#allocation2 + $0x170] sm:$0xff]  }
  0x83   :  { %v5487_v31 = vunpack.c.h.bf16 %v5601_v27 }
  0x85   :  { %6000 = vmatmul.mubr.msk.f32.gmra.mrb[48].mxu0 %vm316_vm0, %v5399_v29  ;;  %v5486_v29 = vunpack.c.l.bf16 %v5601_v27 }
  0x86   :  { %6002 = vmatprep.mubr.msk.f32.mxu0 %vm316_vm0, %v5402_v30  ;;  %v5602_v30 = vld [vmem:[#allocation2 + $0x178] sm:$0xff]  }
  0x87   :  { %v5491_v34 = vunpack.c.h.bf16 %v5602_v30 }
  0x89   :  { %6003 = vmatmul.mubr.msk.f32.gmra.mrb[50].mxu0 %vm316_vm0, %v5403_v32  ;;  %v5490_v32 = vunpack.c.l.bf16 %v5602_v30  ;;  %v5612_v30 = vld [vmem:[#allocation2 + $0x1c8] sm:$0xff]  }
  0x8a   :  { %6005 = vmatprep.mubr.msk.f32.mxu0 %vm316_vm0, %v5406_v33  ;;  %v5603_v33 = vld [vmem:[#allocation2 + $0x180] sm:$0xff]  }
  0x8b   :  { %v5495_v37 = vunpack.c.h.bf16 %v5603_v33 }
  0x8d   :  { %6006 = vmatmul.mubr.msk.f32.gmra.mrb[52].mxu0 %vm316_vm0, %v5407_v35  ;;  %v5494_v35 = vunpack.c.l.bf16 %v5603_v33 }
  0x8e   :  { %6008 = vmatprep.mubr.msk.f32.mxu0 %vm316_vm0, %v5410_v36  ;;  %v5604_v36 = vld [vmem:[#allocation2 + $0x188] sm:$0xff]  }
  0x8f   :  { %v5499_v43 = vunpack.c.h.bf16 %v5604_v36 }
  0x91   :  { %6009 = vmatmul.mubr.msk.f32.gmra.mrb[54].mxu0 %vm316_vm0, %v5411_v38  ;;  %v6445_v38 = vmov 1966171168  }
  0x92   :  { %6011 = vmatprep.mubr.msk.f32.mxu0 %vm316_vm0, %v5414_v39  ;;  %v1424_v39 = vunpack.c.l.s4 %v6445_v38 }
  0x95   :  { %6012 = vmatmul.mubr.msk.f32.gmra.mrb[56].mxu0 %vm316_vm0, %v5415_v41  ;;  %v5498_v41 = vunpack.c.l.bf16 %v5604_v36 }
  0x96   :  { %6014 = vmatprep.mubr.msk.f32.mxu0 %vm316_vm0, %v5418_v42  ;;  %v5605_v42 = vld [vmem:[#allocation2 + $0x190] sm:$0xff]  }
  0x97   :  { %v5502_v46 = vunpack.c.l.bf16 %v5605_v42 }
  0x99   :  { %6015 = vmatmul.mubr.msk.f32.gmra.mrb[58].mxu0 %vm316_vm0, %v5419_v44  ;;  %v1425_v44 = vunpack.c.0.s8 %v1424_v39 }
  0x9a   :  { %6017 = vmatprep.mubr.msk.f32.mxu0 %vm316_vm0, %v5422_v45  ;;  %v1427_v45 = vshrl.u32 %v1426_v40, 7 }
  0x9c   :  { %v6659_v49 = vsub.s32 %v1425_v44, %v1427_v45  ;;  %v5613_v44 = vld [vmem:[#allocation2 + $0x1d0] sm:$0xff]  }
  0x9d   :  { %6018 = vmatmul.mubr.msk.f32.gmra.mrb[60].mxu0 %vm316_vm0, %v5423_v47  ;;  %v5606_v47 = vld [vmem:[#allocation2 + $0x198] sm:$0xff]  }
  0x9e   :  { %6020 = vmatprep.mubr.msk.f32.mxu0 %vm316_vm0, %v5426_v48  ;;  %v5503_v48 = vunpack.c.h.bf16 %v5605_v42 }
  0xa1   :  { %6021 = vmatmul.mubr.msk.f32.gmra.mrb[62].mxu0 %vm316_vm0, %v5427_v50  ;;  %v5506_v50 = vunpack.c.l.bf16 %v5606_v47 }
  0xa2   :  { %6023 = vmatprep.mubr.msk.f32.mxu0 %vm316_vm0, %v5430_v51  ;;  %v1406_v51 = vld [vmem:[%s8190_s1] sm:$0xff] }
  0xa3   :  { %v1422_v12 = vcombine.high %v1406_v51, %v1406_v51 }
  0xa5   :  { %6024 = vmatmul.mubr.msk.f32.gmra.mrb[64].mxu0 %vm316_vm0, %v5431_v53  ;;  %v5507_v53 = vunpack.c.h.bf16 %v5606_v47  ;;  %v1436_v24 = vrot.slane %v1422_v12, %v6659_v49 }
  0xa6   :  { %6026 = vmatprep.mubr.msk.f32.mxu0 %vm316_vm0, %v5434_v54  ;;  %v1429_v54 = vrot.slane %v1406_v51, %v6659_v49  ;;  %v5531_v51 = vunpack.c.h.bf16 %v5612_v30 }
  0xa7   :  { %v1438_v38 = vcombine.high %v1436_v24, %v1436_v24 }
  0xa8   :  { %v1445_v58 = vrot.slane %v1429_v54, %v6659_v49 }
  0xa9   :  { %6027 = vmatmul.mubr.msk.f32.gmra.mrb[66].mxu0 %vm316_vm0, %v5435_v56  ;;  %v5608_v56 = vld [vmem:[#allocation2 + $0x1a8] sm:$0xff]  }
  0xaa   :  { %6029 = vmatprep.mubr.msk.f32.mxu0 %vm316_vm0, %v5438_v57  ;;  %v5511_v57 = vunpack.c.h.bf16 %v5607_v52  ;;  %v5514_v61 = vunpack.c.l.bf16 %v5608_v56  ;;  %v5515_v0 = vunpack.c.h.bf16 %v5608_v56  ;;  %v1467_v6 = vcombine.high %v1445_v58, %v1445_v58 }
  0xab   :  { %v1466_v52 = vrot.slane %v1438_v38, %v6659_v49 }
  0xad   :  { %6030 = vmatmul.mubr.msk.f32.gmra.mrb[68].mxu0 %vm316_vm0, %v5439_v59  ;;  %v6670_v59 = vsub.s32 0, %v1427_v45 }
  0xae   :  { %6032 = vmatprep.mubr.msk.f32.mxu0 %vm316_vm0, %v5442_v60  ;;  %v1437_v60 = vcombine.high %v1429_v54, %v1429_v54 }
  0xaf   :  { %v1825_v18 = vrot.slane %v1467_v6, %v6670_v59 }
  0xb1   :  { %6033 = vmatmul.mubr.msk.f32.gmra.mrb[70].mxu0 %vm316_vm0, %v5443_v62  ;;  %v5609_v62 = vld [vmem:[#allocation2 + $0x1b0] sm:$0xff]  }
  0xb2   :  { %6035 = vmatprep.mubr.msk.f32.mxu0 %vm316_vm0, %v5446_v63  ;;  %v1817_v63 = vrot.slane %v1445_v58, %v6670_v59  ;;  %v5614_v58 = vld [vmem:[#allocation2 + $0x1d8] sm:$0xff]  }
  0xb3   :  { %v5538_v6 = vunpack.c.l.bf16 %v5614_v58 }
  0xb5   :  { %6036 = vmatmul.mubr.msk.f32.gmra.mrb[72].mxu0 %vm316_vm0, %v5447_v1  ;;  %v1459_v1 = vrot.slane %v1437_v60, %v6659_v49 }
  0xb6   :  { %6038 = vmatprep.mubr.msk.f32.mxu0 %vm316_vm0, %v5450_v2  ;;  %v5518_v2 = vunpack.c.l.bf16 %v5609_v62 }
  0xb7   :  { %v1821_v9 = vrot.slane %v1459_v1, %v6670_v59 }
  0xb9   :  { %6039 = vmatmul.mubr.msk.f32.gmra.mrb[74].mxu0 %vm316_vm0, %v5451_v4 }
  0xba   :  { %6041 = vmatprep.mubr.msk.f32.mxu0 %vm316_vm0, %v5454_v5  ;;  %v6680_v5 = vld [vmem:[%s8192_s3 + $0x8] sm:$0xff] }
  0xbd   :  { %6042 = vmatmul.mubr.msk.f32.gmra.mrb[76].mxu0 %vm316_vm0, %v5455_v7 }
  0xbe   :  { %6044 = vmatprep.mubr.msk.f32.mxu0 %vm316_vm0, %v5458_v8 }
  0xc1   :  { %6045 = vmatmul.mubr.msk.f32.gmra.mrb[78].mxu0 %vm316_vm0, %v5459_v10  ;;  %v6687_v10 = vld [vmem:[%s8192_s3] sm:$0xff] }
  0xc2   :  { %6047 = vmatprep.mubr.msk.f32.mxu0 %vm316_vm0, %v5462_v11  ;;  %v5519_v11 = vunpack.c.h.bf16 %v5609_v62 }
  0xc5   :  { %6048 = vmatmul.mubr.msk.f32.gmra.mrb[80].mxu0 %vm316_vm0, %v5463_v13 }
  0xc6   :  { %6050 = vmatprep.mubr.msk.f32.mxu0 %vm316_vm0, %v5466_v14  ;;  %v5522_v14 = vunpack.c.l.bf16 %v5610_v3 }
  0xc9   :  { %6051 = vmatmul.mubr.msk.f32.gmra.mrb[82].mxu0 %vm316_vm0, %v5467_v16  ;;  %v5611_v16 = vld [vmem:[#allocation2 + $0x1c0] sm:$0xff]  }
  0xca   :  { %6053 = vmatprep.mubr.msk.f32.mxu0 %vm316_vm0, %v5470_v17  ;;  %v5526_v27 = vunpack.c.l.bf16 %v5611_v16  ;;  %v5527_v36 = vunpack.c.h.bf16 %v5611_v16 }
  0xcd   :  { %6054 = vmatmul.mubr.msk.f32.gmra.mrb[84].mxu0 %vm316_vm0, %v5471_v19 }
  0xce   :  { %6056 = vmatprep.mubr.msk.f32.mxu0 %vm316_vm0, %v5474_v20  ;;  %v1469_v20 = vcombine.high %v1459_v1, %v1459_v1  ;;  %v1837_v1 = vrot.slane %v1466_v52, %v6670_v59 }
  0xd0   :  { %v1829_v33 = vrot.slane %v1469_v20, %v6670_v59 }
  0xd1   :  { %6057 = vmatmul.mubr.msk.f32.gmra.mrb[86].mxu0 %vm316_vm0, %v5475_v22 }
  0xd2   :  { %6059 = vmatprep.mubr.msk.f32.mxu0 %vm316_vm0, %v5478_v23  ;;  %v5523_v23 = vunpack.c.h.bf16 %v5610_v3 }
  0xd5   :  { %6060 = vmatmul.mubr.msk.f32.gmra.mrb[88].mxu0 %vm316_vm0, %v5479_v25 }
  0xd6   :  { %6062 = vmatprep.mubr.msk.f32.mxu0 %vm316_vm0, %v5482_v26 }
  0xd9   :  { %6063 = vmatmul.mubr.msk.f32.gmra.mrb[90].mxu0 %vm316_vm0, %v5483_v28 }
  0xda   :  { %6065 = vmatprep.mubr.msk.f32.mxu0 %vm316_vm0, %v5486_v29 }
  0xdd   :  { %6066 = vmatmul.mubr.msk.f32.gmra.mrb[92].mxu0 %vm316_vm0, %v5487_v31 }
  0xde   :  { %6068 = vmatprep.mubr.msk.f32.mxu0 %vm316_vm0, %v5490_v32 }
  0xe1   :  { %6069 = vmatmul.mubr.msk.f32.gmra.mrb[94].mxu0 %vm316_vm0, %v5491_v34 }
  0xe2   :  { %6071 = vmatprep.mubr.msk.f32.mxu0 %vm316_vm0, %v5494_v35 }
  0xe5   :  { %6072 = vmatmul.mubr.msk.f32.gmra.mrb[96].mxu0 %vm316_vm0, %v5495_v37  ;;  %v1452_v37 = vrot.slane %v1436_v24, %v6659_v49 }
  0xe6   :  { %6074 = vmatprep.mubr.msk.f32.mxu0 %vm316_vm0, %v5498_v41  ;;  %v5530_v41 = vunpack.c.l.bf16 %v5612_v30 }
  0xe7   :  { %v1468_v62 = vcombine.high %v1452_v37, %v1452_v37 }
  0xe9   :  { %6075 = vmatmul.mubr.msk.f32.gmra.mrb[98].mxu0 %vm316_vm0, %v5499_v43 }
  0xea   :  { %6077 = vmatprep.mubr.msk.f32.mxu0 %vm316_vm0, %v5502_v46 }
  0xed   :  { %6078 = vmatmul.mubr.msk.f32.gmra.mrb[100].mxu0 %vm316_vm0, %v5503_v48 }
  0xee   :  { %6080 = vmatprep.mubr.msk.f32.mxu0 %vm316_vm0, %v5506_v50  ;;  %v1833_v50 = vrot.slane %v1452_v37, %v6670_v59 }
  0xf1   :  { %6081 = vmatmul.mubr.msk.f32.gmra.mrb[102].mxu0 %vm316_vm0, %v5507_v53 }
  0xf2   :  { %6083 = vmatprep.mubr.msk.f32.mxu0 %vm316_vm0, %v5510_v55  ;;  %v5534_v55 = vunpack.c.l.bf16 %v5613_v44 }
  0xf5   :  { %6084 = vmatmul.mubr.msk.f32.gmra.mrb[104].mxu0 %vm316_vm0, %v5511_v57 }
  0xf6   :  { %6086 = vmatprep.mubr.msk.f32.mxu0 %vm316_vm0, %v5514_v61 }
  0xf8   :  { %v5929_v4 = vpop.f32.mrb[0].mxu0 }
  0xf9   :  { %v2135_v7 = vadd.f32 %v5929_v4, %v1817_v63  ;;  %v767_v8 = vpop.f32.mrb[1].mxu0  ;;  %6087 = vmatmul.mubr.msk.f32.gmra.mrb[106].mxu0 %vm316_vm0, %v5515_v0 }
  0xfa   :  { %v2134_v13 = vadd.f32 %v1817_v63, %v767_v8  ;;  %6089 = vmatprep.mubr.msk.f32.mxu0 %vm316_vm0, %v5518_v2  ;;  %v5535_v2 = vunpack.c.h.bf16 %v5613_v44 }
  0xfb   :  { %v2265_v15 = vadd.f32 %v6680_v5, %v2135_v7  ;;  %v6722_v7 = vld [vmem:[%s8190_s1 + $0x8] sm:$0xff] }
  0xfc   :  { %v5932_v17 = vpop.f32.mrb[2].mxu0  ;;  %v2264_v19 = vadd.f32 %v6687_v10, %v2134_v13 }
  0xfd   :  { %v2137_v21 = vadd.f32 %v5932_v17, %v1821_v9  ;;  %v777_v22 = vpop.f32.mrb[3].mxu0  ;;  %6090 = vmatmul.mubr.msk.f32.gmra.mrb[108].mxu0 %vm316_vm0, %v5519_v11  ;;  %v2393_v28 = vmax.f32 %v2265_v15, 0.0  ;;  %v5615_v11 = vld [vmem:[#allocation2 + $0x1e0] sm:$0xff]   ;;  %v5539_v17 = vunpack.c.h.bf16 %v5614_v58 }
  0xfe   :  { %v2136_v25 = vadd.f32 %v1821_v9, %v777_v22  ;;  %6092 = vmatprep.mubr.msk.f32.mxu0 %vm316_vm0, %v5522_v14  ;;  %v2392_v26 = vmax.f32 %v2264_v19, 0.0  ;;  %v1841_v14 = vrot.slane %v1468_v62, %v6670_v59  ;;  %v1478_v19 = vrot.slane %v6722_v7, %v6659_v49 }
  0xff   :  { %v2267_v29 = vadd.f32 %v6680_v5, %v2137_v21  ;;  %v5542_v22 = vunpack.c.l.bf16 %v5615_v11  ;;  %v1471_v62 = vcombine.high %v6722_v7, %v6722_v7 }
 0x100   :  { %v2266_v31 = vadd.f32 %v6687_v10, %v2136_v25  ;;  %v5935_v32 = vpop.f32.mrb[4].mxu0  ;;  %6127 = vmatprep.mubr.msk.f32.mxu1 %vm2531_vm1, %v2392_v26  ;;  %v5616_v25 = vld [vmem:[#allocation2 + $0x1e8] sm:$0xff]  }
 0x101   :  { %v2139_v34 = vadd.f32 %v5935_v32, %v1825_v18  ;;  %v787_v35 = vpop.f32.mrb[5].mxu0  ;;  %6093 = vmatmul.mubr.msk.f32.gmra.mrb[110].mxu0 %vm316_vm0, %v5523_v23  ;;  %6128 = vmatmul.mubr.msk.f32.vlgmr.msra.gmra.mrb[0].mxu1 %vm2531_vm1, %v2393_v28  ;;  %v2395_v42 = vmax.f32 %v2267_v29, 0.0  ;;  %v1486_v28 = vcombine.high %v1478_v19, %v1478_v19  ;;  %v5543_v32 = vunpack.c.h.bf16 %v5615_v11 }
 0x102   :  { %v2394_v39 = vmax.f32 %v2266_v31, 0.0  ;;  %v2138_v40 = vadd.f32 %v1825_v18, %v787_v35  ;;  %6095 = vmatprep.mubr.msk.f32.mxu0 %vm316_vm0, %v5526_v27  ;;  %v1470_v18 = vcombine.high %v1466_v52, %v1466_v52 }
 0x103   :  { %v2269_v43 = vadd.f32 %v6680_v5, %v2139_v34 }
 0x104   :  { %v2268_v45 = vadd.f32 %v6687_v10, %v2138_v40  ;;  %v5938_v46 = vpop.f32.mrb[6].mxu0  ;;  %6130 = vmatprep.mubr.msk.f32.mxu1 %vm2531_vm1, %v2394_v39  ;;  %v1845_v31 = vrot.slane %v1470_v18, %v6670_v59  ;;  %v5617_v39 = vld [vmem:[#allocation2 + $0x1f0] sm:$0xff]  }
 0x105   :  { %v2141_v47 = vadd.f32 %v5938_v46, %v1829_v33  ;;  %v797_v48 = vpop.f32.mrb[7].mxu0  ;;  %6096 = vmatmul.mubr.msk.f32.gmra.mrb[112].mxu0 %vm316_vm0, %v5527_v36  ;;  %6131 = vmatmul.mubr.msk.f32.gmra.mrb[2].mxu1 %vm2531_vm1, %v2395_v42  ;;  %v2397_v56 = vmax.f32 %v2269_v43, 0.0  ;;  %v5546_v36 = vunpack.c.l.bf16 %v5616_v25  ;;  %v1508_v42 = vrot.slane %v1486_v28, %v6659_v49 }
 0x106   :  { %v2396_v53 = vmax.f32 %v2268_v45, 0.0  ;;  %v2140_v54 = vadd.f32 %v1829_v33, %v797_v48  ;;  %6098 = vmatprep.mubr.msk.f32.mxu0 %vm316_vm0, %v5530_v41  ;;  %v1494_v33 = vrot.slane %v1478_v19, %v6659_v49  ;;  %v5547_v46 = vunpack.c.h.bf16 %v5616_v25 }
 0x107   :  { %v2271_v57 = vadd.f32 %v6680_v5, %v2141_v47 }
 0x108   :  { %v2270_v60 = vadd.f32 %v6687_v10, %v2140_v54  ;;  %v5941_v61 = vpop.f32.mrb[8].mxu0  ;;  %6133 = vmatprep.mubr.msk.f32.mxu1 %vm2531_vm1, %v2396_v53  ;;  %v1849_v45 = vrot.slane %v1494_v33, %v6670_v59  ;;  %v5618_v53 = vld [vmem:[#allocation2 + $0x1f8] sm:$0xff]  }
 0x109   :  { %v2143_v63 = vadd.f32 %v5941_v61, %v1833_v50  ;;  %v807_v0 = vpop.f32.mrb[9].mxu0  ;;  %6099 = vmatmul.mubr.msk.f32.gmra.mrb[114].mxu0 %vm316_vm0, %v5531_v51  ;;  %6134 = vmatmul.mubr.msk.f32.gmra.mrb[4].mxu1 %vm2531_vm1, %v2397_v56  ;;  %v2399_v8 = vmax.f32 %v2271_v57, 0.0  ;;  %v1853_v56 = vrot.slane %v1508_v42, %v6670_v59  ;;  %v1516_v61 = vcombine.high %v1494_v33, %v1494_v33 }
 0x10a   :  { %v2398_v3 = vmax.f32 %v2270_v60, 0.0  ;;  %v2142_v4 = vadd.f32 %v1833_v50, %v807_v0  ;;  %6101 = vmatprep.mubr.msk.f32.mxu0 %vm316_vm0, %v5534_v55  ;;  %v5550_v50 = vunpack.c.l.bf16 %v5617_v39  ;;  %v5551_v60 = vunpack.c.h.bf16 %v5617_v39 }
 0x10b   :  { %v2273_v9 = vadd.f32 %v6680_v5, %v2143_v63  ;;  %v1857_v7 = vrot.slane %v1516_v61, %v6670_v59 }
 0x10c   :  { %v2272_v12 = vadd.f32 %v6687_v10, %v2142_v4  ;;  %v5944_v13 = vpop.f32.mrb[10].mxu0  ;;  %6136 = vmatprep.mubr.msk.f32.mxu1 %vm2531_vm1, %v2398_v3 }
 0x10d   :  { %v2145_v15 = vadd.f32 %v5944_v13, %v1837_v1  ;;  %v817_v16 = vpop.f32.mrb[11].mxu0  ;;  %6102 = vmatmul.mubr.msk.f32.gmra.mrb[116].mxu0 %vm316_vm0, %v5535_v2  ;;  %6137 = vmatmul.mubr.msk.f32.gmra.mrb[6].mxu1 %vm2531_vm1, %v2399_v8  ;;  %v2401_v23 = vmax.f32 %v2273_v9, 0.0  ;;  %v1518_v8 = vcombine.high %v1508_v42, %v1508_v42  ;;  %v1485_v13 = vrot.slane %v1471_v62, %v6659_v49 }
 0x10e   :  { %v2400_v20 = vmax.f32 %v2272_v12, 0.0  ;;  %v2144_v21 = vadd.f32 %v1837_v1, %v817_v16  ;;  %6104 = vmatprep.mubr.msk.f32.mxu0 %vm316_vm0, %v5538_v6  ;;  %v5554_v1 = vunpack.c.l.bf16 %v5618_v53  ;;  %v5555_v12 = vunpack.c.h.bf16 %v5618_v53 }
 0x10f   :  { %v2275_v24 = vadd.f32 %v6680_v5, %v2145_v15 }
 0x110   :  { %v2274_v26 = vadd.f32 %v6687_v10, %v2144_v21  ;;  %v5947_v27 = vpop.f32.mrb[12].mxu0  ;;  %6139 = vmatprep.mubr.msk.f32.mxu1 %vm2531_vm1, %v2400_v20  ;;  %v1861_v20 = vrot.slane %v1518_v8, %v6670_v59 }
 0x111   :  { %v2147_v29 = vadd.f32 %v5947_v27, %v1841_v14  ;;  %v827_v30 = vpop.f32.mrb[13].mxu0  ;;  %6105 = vmatmul.mubr.msk.f32.gmra.mrb[118].mxu0 %vm316_vm0, %v5539_v17  ;;  %6140 = vmatmul.mubr.msk.f32.gmra.mrb[8].mxu1 %vm2531_vm1, %v2401_v23  ;;  %v2403_v37 = vmax.f32 %v2275_v24, 0.0  ;;  %v1501_v23 = vrot.slane %v1485_v13, %v6659_v49  ;;  %v1487_v24 = vcombine.high %v1485_v13, %v1485_v13 }
 0x112   :  { %v2402_v34 = vmax.f32 %v2274_v26, 0.0  ;;  %v2146_v35 = vadd.f32 %v1841_v14, %v827_v30  ;;  %6107 = vmatprep.mubr.msk.f32.mxu0 %vm316_vm0, %v5542_v22 }
 0x113   :  { %v2277_v38 = vadd.f32 %v6680_v5, %v2147_v29  ;;  %v1865_v33 = vrot.slane %v1501_v23, %v6670_v59 }
 0x114   :  { %v2276_v40 = vadd.f32 %v6687_v10, %v2146_v35  ;;  %v5950_v41 = vpop.f32.mrb[14].mxu0  ;;  %6142 = vmatprep.mubr.msk.f32.mxu1 %vm2531_vm1, %v2402_v34  ;;  %v1515_v34 = vrot.slane %v1487_v24, %v6659_v49 }
 0x115   :  { %v2149_v43 = vadd.f32 %v5950_v41, %v1845_v31  ;;  %v837_v44 = vpop.f32.mrb[15].mxu0  ;;  %6108 = vmatmul.mubr.msk.f32.gmra.mrb[120].mxu0 %vm316_vm0, %v5543_v32  ;;  %6143 = vmatmul.mubr.msk.f32.gmra.mrb[10].mxu1 %vm2531_vm1, %v2403_v37  ;;  %v2405_v51 = vmax.f32 %v2277_v38, 0.0 }
 0x116   :  { %v2404_v47 = vmax.f32 %v2276_v40, 0.0  ;;  %v2148_v48 = vadd.f32 %v1845_v31, %v837_v44  ;;  %6110 = vmatprep.mubr.msk.f32.mxu0 %vm316_vm0, %v5546_v36  ;;  %v1517_v44 = vcombine.high %v1501_v23, %v1501_v23 }
 0x117   :  { %v2279_v52 = vadd.f32 %v6680_v5, %v2149_v43  ;;  %v1869_v43 = vrot.slane %v1515_v34, %v6670_v59 }
 0x118   :  { %v2278_v54 = vadd.f32 %v6687_v10, %v2148_v48  ;;  %v5953_v55 = vpop.f32.mrb[16].mxu0  ;;  %6145 = vmatprep.mubr.msk.f32.mxu1 %vm2531_vm1, %v2404_v47  ;;  %v6787_v47 = vld [vmem:[%s8190_s1 + $0x10] sm:$0xff] }
 0x119   :  { %v2151_v57 = vadd.f32 %v5953_v55, %v1849_v45  ;;  %v847_v58 = vpop.f32.mrb[17].mxu0  ;;  %6111 = vmatmul.mubr.msk.f32.gmra.mrb[122].mxu0 %vm316_vm0, %v5547_v46  ;;  %6146 = vmatmul.mubr.msk.f32.gmra.mrb[12].mxu1 %vm2531_vm1, %v2405_v51  ;;  %v2407_v2 = vmax.f32 %v2279_v52, 0.0  ;;  %v1873_v55 = vrot.slane %v1517_v44, %v6670_v59 }
 0x11a   :  { %v2406_v63 = vmax.f32 %v2278_v54, 0.0  ;;  %v2150_v0 = vadd.f32 %v1849_v45, %v847_v58  ;;  %6113 = vmatprep.mubr.msk.f32.mxu0 %vm316_vm0, %v5550_v50 }
 0x11b   :  { %v2281_v3 = vadd.f32 %v6680_v5, %v2151_v57  ;;  %v1527_v57 = vrot.slane %v6787_v47, %v6659_v49 }
 0x11c   :  { %v2280_v4 = vadd.f32 %v6687_v10, %v2150_v0  ;;  %v5956_v6 = vpop.f32.mrb[18].mxu0  ;;  %6148 = vmatprep.mubr.msk.f32.mxu1 %vm2531_vm1, %v2406_v63 }
 0x11d   :  { %v2153_v9 = vadd.f32 %v5956_v6, %v1853_v56  ;;  %v857_v11 = vpop.f32.mrb[19].mxu0  ;;  %6114 = vmatmul.mubr.msk.f32.gmra.mrb[124].mxu0 %vm316_vm0, %v5551_v60  ;;  %6149 = vmatmul.mubr.msk.f32.gmra.mrb[14].mxu1 %vm2531_vm1, %v2407_v2  ;;  %v2409_v16 = vmax.f32 %v2281_v3, 0.0  ;;  %v1535_v6 = vcombine.high %v1527_v57, %v1527_v57 }
 0x11e   :  { %v2408_v14 = vmax.f32 %v2280_v4, 0.0  ;;  %v2152_v15 = vadd.f32 %v1853_v56, %v857_v11  ;;  %6116 = vmatprep.mubr.msk.f32.mxu0 %vm316_vm0, %v5554_v1  ;;  %v1519_v56 = vcombine.high %v1515_v34, %v1515_v34  ;;  %v1543_v4 = vrot.slane %v1527_v57, %v6659_v49 }
 0x11f   :  { %v2283_v17 = vadd.f32 %v6680_v5, %v2153_v9 }
 0x120   :  { %v2282_v18 = vadd.f32 %v6687_v10, %v2152_v15  ;;  %v5959_v19 = vpop.f32.mrb[20].mxu0  ;;  %6151 = vmatprep.mubr.msk.f32.mxu1 %vm2531_vm1, %v2408_v14  ;;  %v1877_v3 = vrot.slane %v1519_v56, %v6670_v59 }
 0x121   :  { %v2155_v21 = vadd.f32 %v5959_v19, %v1857_v7  ;;  %v867_v22 = vpop.f32.mrb[21].mxu0  ;;  %6117 = vmatmul.mubr.msk.f32.gmra.mrb[126].mxu0 %vm316_vm0, %v5555_v12  ;;  %6152 = vmatmul.mubr.msk.f32.gmra.mrb[16].mxu1 %vm2531_vm1, %v2409_v16  ;;  %v2411_v27 = vmax.f32 %v2283_v17, 0.0  ;;  %v1881_v16 = vrot.slane %v1543_v4, %v6670_v59  ;;  %v1557_v17 = vrot.slane %v1535_v6, %v6659_v49 }
 0x122   :  { %v2410_v25 = vmax.f32 %v2282_v18, 0.0  ;;  %v2154_v26 = vadd.f32 %v1857_v7, %v867_v22 }
 0x123   :  { %v2285_v28 = vadd.f32 %v6680_v5, %v2155_v21 }
 0x124   :  { %v2284_v29 = vadd.f32 %v6687_v10, %v2154_v26  ;;  %v5962_v30 = vpop.f32.mrb[22].mxu0  ;;  %6154 = vmatprep.mubr.msk.f32.mxu1 %vm2531_vm1, %v2410_v25  ;;  %v1885_v26 = vrot.slane %v1557_v17, %v6670_v59 }
 0x125   :  { %v2157_v31 = vadd.f32 %v5962_v30, %v1861_v20  ;;  %v877_v32 = vpop.f32.mrb[23].mxu0  ;;  %6155 = vmatmul.mubr.msk.f32.gmra.mrb[18].mxu1 %vm2531_vm1, %v2411_v27  ;;  %v2413_v37 = vmax.f32 %v2285_v28, 0.0  ;;  %v1565_v27 = vcombine.high %v1543_v4, %v1543_v4  ;;  %v1520_v28 = vcombine.high %v6787_v47, %v6787_v47 }
 0x126   :  { %v2412_v35 = vmax.f32 %v2284_v29, 0.0  ;;  %v2156_v36 = vadd.f32 %v1861_v20, %v877_v32 }
 0x127   :  { %v2287_v38 = vadd.f32 %v6680_v5, %v2157_v31 }
 0x128   :  { %v2286_v39 = vadd.f32 %v6687_v10, %v2156_v36  ;;  %v5965_v40 = vpop.f32.mrb[24].mxu0  ;;  %6157 = vmatprep.mubr.msk.f32.mxu1 %vm2531_vm1, %v2412_v35 }
 0x129   :  { %v2159_v41 = vadd.f32 %v5965_v40, %v1865_v33  ;;  %v887_v42 = vpop.f32.mrb[25].mxu0  ;;  %6158 = vmatmul.mubr.msk.f32.gmra.mrb[20].mxu1 %vm2531_vm1, %v2413_v37  ;;  %v2415_v48 = vmax.f32 %v2287_v38, 0.0  ;;  %v1889_v37 = vrot.slane %v1565_v27, %v6670_v59  ;;  %v1567_v38 = vcombine.high %v1557_v17, %v1557_v17 }
 0x12a   :  { %v2414_v45 = vmax.f32 %v2286_v39, 0.0  ;;  %v2158_v46 = vadd.f32 %v1865_v33, %v887_v42  ;;  %v1534_v39 = vrot.slane %v1520_v28, %v6659_v49 }
 0x12b   :  { %v2289_v50 = vadd.f32 %v6680_v5, %v2159_v41 }
 0x12c   :  { %v2288_v51 = vadd.f32 %v6687_v10, %v2158_v46  ;;  %v5968_v52 = vpop.f32.mrb[26].mxu0  ;;  %6160 = vmatprep.mubr.msk.f32.mxu1 %vm2531_vm1, %v2414_v45 }
 0x12d   :  { %v2161_v53 = vadd.f32 %v5968_v52, %v1869_v43  ;;  %v897_v54 = vpop.f32.mrb[27].mxu0  ;;  %6161 = vmatmul.mubr.msk.f32.gmra.mrb[22].mxu1 %vm2531_vm1, %v2415_v48  ;;  %v2417_v61 = vmax.f32 %v2289_v50, 0.0  ;;  %v1893_v48 = vrot.slane %v1567_v38, %v6670_v59  ;;  %v1550_v50 = vrot.slane %v1534_v39, %v6659_v49 }
 0x12e   :  { %v2416_v58 = vmax.f32 %v2288_v51, 0.0  ;;  %v2160_v60 = vadd.f32 %v1869_v43, %v897_v54  ;;  %v1536_v51 = vcombine.high %v1534_v39, %v1534_v39 }
 0x12f   :  { %v2291_v62 = vadd.f32 %v6680_v5, %v2161_v53 }
 0x130   :  { %v2290_v63 = vadd.f32 %v6687_v10, %v2160_v60  ;;  %v5971_v0 = vpop.f32.mrb[28].mxu0  ;;  %6163 = vmatprep.mubr.msk.f32.mxu1 %vm2531_vm1, %v2416_v58 }
 0x131   :  { %v2163_v1 = vadd.f32 %v5971_v0, %v1873_v55  ;;  %v907_v2 = vpop.f32.mrb[29].mxu0  ;;  %6164 = vmatmul.mubr.msk.f32.gmra.mrb[24].mxu1 %vm2531_vm1, %v2417_v61  ;;  %v2419_v11 = vmax.f32 %v2291_v62, 0.0  ;;  %v1897_v61 = vrot.slane %v1550_v50, %v6670_v59  ;;  %v1564_v62 = vrot.slane %v1536_v51, %v6659_v49 }
 0x132   :  { %v2418_v8 = vmax.f32 %v2290_v63, 0.0  ;;  %v2162_v9 = vadd.f32 %v1873_v55, %v907_v2 }
 0x133   :  { %v2293_v7 = vadd.f32 %v6680_v5, %v2163_v1 }
 0x134   :  { %v2292_v12 = vadd.f32 %v6687_v10, %v2162_v9  ;;  %v5974_v13 = vpop.f32.mrb[30].mxu0  ;;  %6166 = vmatprep.mubr.msk.f32.mxu1 %vm2531_vm1, %v2418_v8  ;;  %v1901_v9 = vrot.slane %v1564_v62, %v6670_v59 }
 0x135   :  { %v2165_v14 = vadd.f32 %v5974_v13, %v1877_v3  ;;  %v917_v15 = vpop.f32.mrb[31].mxu0  ;;  %6167 = vmatmul.mubr.msk.f32.gmra.mrb[26].mxu1 %vm2531_vm1, %v2419_v11  ;;  %v2421_v20 = vmax.f32 %v2293_v7, 0.0  ;;  %v1566_v11 = vcombine.high %v1550_v50, %v1550_v50  ;;  %v6841_v13 = vld [vmem:[%s8190_s1 + $0x18] sm:$0xff] }
 0x136   :  { %v2420_v18 = vmax.f32 %v2292_v12, 0.0  ;;  %v2164_v19 = vadd.f32 %v1877_v3, %v917_v15 }
 0x137   :  { %v2295_v21 = vadd.f32 %v6680_v5, %v2165_v14 }
 0x138   :  { %v2294_v22 = vadd.f32 %v6687_v10, %v2164_v19  ;;  %v5977_v23 = vpop.f32.mrb[32].mxu0  ;;  %6169 = vmatprep.mubr.msk.f32.mxu1 %vm2531_vm1, %v2420_v18 }
 0x139   :  { %v2167_v24 = vadd.f32 %v5977_v23, %v1881_v16  ;;  %v927_v25 = vpop.f32.mrb[33].mxu0  ;;  %6170 = vmatmul.mubr.msk.f32.gmra.mrb[28].mxu1 %vm2531_vm1, %v2421_v20  ;;  %v2423_v31 = vmax.f32 %v2295_v21, 0.0  ;;  %v1905_v20 = vrot.slane %v1566_v11, %v6670_v59  ;;  %v1568_v21 = vcombine.high %v1564_v62, %v1564_v62 }
 0x13a   :  { %v2422_v29 = vmax.f32 %v2294_v22, 0.0  ;;  %v2166_v30 = vadd.f32 %v1881_v16, %v927_v25  ;;  %v1576_v22 = vrot.slane %v6841_v13, %v6659_v49 }
 0x13b   :  { %v2297_v32 = vadd.f32 %v6680_v5, %v2167_v24 }
 0x13c   :  { %v2296_v33 = vadd.f32 %v6687_v10, %v2166_v30  ;;  %v5980_v34 = vpop.f32.mrb[34].mxu0  ;;  %6172 = vmatprep.mubr.msk.f32.mxu1 %vm2531_vm1, %v2422_v29 }
 0x13d   :  { %v2169_v35 = vadd.f32 %v5980_v34, %v1885_v26  ;;  %v937_v36 = vpop.f32.mrb[35].mxu0  ;;  %6173 = vmatmul.mubr.msk.f32.gmra.mrb[30].mxu1 %vm2531_vm1, %v2423_v31  ;;  %v2425_v42 = vmax.f32 %v2297_v32, 0.0  ;;  %v1909_v31 = vrot.slane %v1568_v21, %v6670_v59  ;;  %v1592_v32 = vrot.slane %v1576_v22, %v6659_v49 }
 0x13e   :  { %v2424_v40 = vmax.f32 %v2296_v33, 0.0  ;;  %v2168_v41 = vadd.f32 %v1885_v26, %v937_v36  ;;  %v1584_v33 = vcombine.high %v1576_v22, %v1576_v22 }
 0x13f   :  { %v2299_v43 = vadd.f32 %v6680_v5, %v2169_v35 }
 0x140   :  { %v2298_v44 = vadd.f32 %v6687_v10, %v2168_v41  ;;  %v5983_v45 = vpop.f32.mrb[36].mxu0  ;;  %6175 = vmatprep.mubr.msk.f32.mxu1 %vm2531_vm1, %v2424_v40 }
 0x141   :  { %v2171_v46 = vadd.f32 %v5983_v45, %v1889_v37  ;;  %v947_v47 = vpop.f32.mrb[37].mxu0  ;;  %6176 = vmatmul.mubr.msk.f32.gmra.mrb[32].mxu1 %vm2531_vm1, %v2425_v42  ;;  %v2427_v54 = vmax.f32 %v2299_v43, 0.0  ;;  %v1913_v42 = vrot.slane %v1592_v32, %v6670_v59  ;;  %v1606_v43 = vrot.slane %v1584_v33, %v6659_v49 }
 0x142   :  { %v2426_v52 = vmax.f32 %v2298_v44, 0.0  ;;  %v2170_v53 = vadd.f32 %v1889_v37, %v947_v47 }
 0x143   :  { %v2301_v55 = vadd.f32 %v6680_v5, %v2171_v46 }
 0x144   :  { %v2300_v56 = vadd.f32 %v6687_v10, %v2170_v53  ;;  %v5986_v57 = vpop.f32.mrb[38].mxu0  ;;  %6178 = vmatprep.mubr.msk.f32.mxu1 %vm2531_vm1, %v2426_v52  ;;  %v1917_v53 = vrot.slane %v1606_v43, %v6670_v59 }
 0x145   :  { %v2173_v58 = vadd.f32 %v5986_v57, %v1893_v48  ;;  %v957_v60 = vpop.f32.mrb[39].mxu0  ;;  %6179 = vmatmul.mubr.msk.f32.gmra.mrb[34].mxu1 %vm2531_vm1, %v2427_v54  ;;  %v2429_v1 = vmax.f32 %v2301_v55, 0.0  ;;  %v1614_v54 = vcombine.high %v1592_v32, %v1592_v32  ;;  %v1569_v55 = vcombine.high %v6841_v13, %v6841_v13 }
 0x146   :  { %v2428_v63 = vmax.f32 %v2300_v56, 0.0  ;;  %v2172_v0 = vadd.f32 %v1893_v48, %v957_v60 }
 0x147   :  { %v2303_v2 = vadd.f32 %v6680_v5, %v2173_v58 }
 0x148   :  { %v2302_v3 = vadd.f32 %v6687_v10, %v2172_v0  ;;  %v5989_v4 = vpop.f32.mrb[40].mxu0  ;;  %6181 = vmatprep.mubr.msk.f32.mxu1 %vm2531_vm1, %v2428_v63 }
 0x149   :  { %v2175_v6 = vadd.f32 %v5989_v4, %v1897_v61  ;;  %v967_v8 = vpop.f32.mrb[41].mxu0  ;;  %6182 = vmatmul.mubr.msk.f32.gmra.mrb[36].mxu1 %vm2531_vm1, %v2429_v1  ;;  %v2431_v14 = vmax.f32 %v2303_v2, 0.0  ;;  %v1921_v1 = vrot.slane %v1614_v54, %v6670_v59  ;;  %v1616_v2 = vcombine.high %v1606_v43, %v1606_v43 }
 0x14a   :  { %v2430_v7 = vmax.f32 %v2302_v3, 0.0  ;;  %v2174_v12 = vadd.f32 %v1897_v61, %v967_v8  ;;  %v1583_v3 = vrot.slane %v1569_v55, %v6659_v49 }
 0x14b   :  { %v2305_v15 = vadd.f32 %v6680_v5, %v2175_v6 }
 0x14c   :  { %v2304_v16 = vadd.f32 %v6687_v10, %v2174_v12  ;;  %v5992_v17 = vpop.f32.mrb[42].mxu0  ;;  %6184 = vmatprep.mubr.msk.f32.mxu1 %vm2531_vm1, %v2430_v7 }
 0x14d   :  { %v2177_v18 = vadd.f32 %v5992_v17, %v1901_v9  ;;  %v977_v19 = vpop.f32.mrb[43].mxu0  ;;  %6185 = vmatmul.mubr.msk.f32.gmra.mrb[38].mxu1 %vm2531_vm1, %v2431_v14  ;;  %v2433_v25 = vmax.f32 %v2305_v15, 0.0  ;;  %v1925_v14 = vrot.slane %v1616_v2, %v6670_v59  ;;  %v1599_v15 = vrot.slane %v1583_v3, %v6659_v49 }
 0x14e   :  { %v2432_v23 = vmax.f32 %v2304_v16, 0.0  ;;  %v2176_v24 = vadd.f32 %v1901_v9, %v977_v19  ;;  %v1585_v16 = vcombine.high %v1583_v3, %v1583_v3 }
 0x14f   :  { %v2307_v26 = vadd.f32 %v6680_v5, %v2177_v18 }
 0x150   :  { %v2306_v27 = vadd.f32 %v6687_v10, %v2176_v24  ;;  %v5995_v28 = vpop.f32.mrb[44].mxu0  ;;  %6187 = vmatprep.mubr.msk.f32.mxu1 %vm2531_vm1, %v2432_v23 }
 0x151   :  { %v2179_v29 = vadd.f32 %v5995_v28, %v1905_v20  ;;  %v987_v30 = vpop.f32.mrb[45].mxu0  ;;  %6188 = vmatmul.mubr.msk.f32.gmra.mrb[40].mxu1 %vm2531_vm1, %v2433_v25  ;;  %v2435_v36 = vmax.f32 %v2307_v26, 0.0  ;;  %v1929_v25 = vrot.slane %v1599_v15, %v6670_v59  ;;  %v1613_v26 = vrot.slane %v1585_v16, %v6659_v49 }
 0x152   :  { %v2434_v34 = vmax.f32 %v2306_v27, 0.0  ;;  %v2178_v35 = vadd.f32 %v1905_v20, %v987_v30 }
 0x153   :  { %v2309_v37 = vadd.f32 %v6680_v5, %v2179_v29 }
 0x154   :  { %v2308_v38 = vadd.f32 %v6687_v10, %v2178_v35  ;;  %v5998_v39 = vpop.f32.mrb[46].mxu0  ;;  %6190 = vmatprep.mubr.msk.f32.mxu1 %vm2531_vm1, %v2434_v34  ;;  %v1933_v35 = vrot.slane %v1613_v26, %v6670_v59 }
 0x155   :  { %v2181_v40 = vadd.f32 %v5998_v39, %v1909_v31  ;;  %v997_v41 = vpop.f32.mrb[47].mxu0  ;;  %6191 = vmatmul.mubr.msk.f32.gmra.mrb[42].mxu1 %vm2531_vm1, %v2435_v36  ;;  %v2437_v46 = vmax.f32 %v2309_v37, 0.0  ;;  %v1615_v36 = vcombine.high %v1599_v15, %v1599_v15  ;;  %v6895_v39 = vld [vmem:[%s8190_s1 + $0x20] sm:$0xff] }
 0x156   :  { %v2436_v44 = vmax.f32 %v2308_v38, 0.0  ;;  %v2180_v45 = vadd.f32 %v1909_v31, %v997_v41 }
 0x157   :  { %v2311_v47 = vadd.f32 %v6680_v5, %v2181_v40 }
 0x158   :  { %v2310_v48 = vadd.f32 %v6687_v10, %v2180_v45  ;;  %v6001_v50 = vpop.f32.mrb[48].mxu0  ;;  %6193 = vmatprep.mubr.msk.f32.mxu1 %vm2531_vm1, %v2436_v44 }
 0x159   :  { %v2183_v51 = vadd.f32 %v6001_v50, %v1913_v42  ;;  %v1007_v52 = vpop.f32.mrb[49].mxu0  ;;  %6194 = vmatmul.mubr.msk.f32.gmra.mrb[44].mxu1 %vm2531_vm1, %v2437_v46  ;;  %v2439_v58 = vmax.f32 %v2311_v47, 0.0  ;;  %v1937_v46 = vrot.slane %v1615_v36, %v6670_v59  ;;  %v1617_v47 = vcombine.high %v1613_v26, %v1613_v26  ;;  %v4589_v50 = vld [vmem:[%s8196_s7] sm:$0xff] }
 0x15a   :  { %v2438_v56 = vmax.f32 %v2310_v48, 0.0  ;;  %v2182_v57 = vadd.f32 %v1913_v42, %v1007_v52  ;;  %v1625_v48 = vrot.slane %v6895_v39, %v6659_v49 }
 0x15b   :  { %v2313_v60 = vadd.f32 %v6680_v5, %v2183_v51  ;;  %v4590_v51 = vld [vmem:[%s8196_s7 + $0x8] sm:$0xff] }
 0x15c   :  { %v2312_v61 = vadd.f32 %v6687_v10, %v2182_v57  ;;  %v6004_v62 = vpop.f32.mrb[50].mxu0  ;;  %6196 = vmatprep.mubr.msk.f32.mxu1 %vm2531_vm1, %v2438_v56  ;;  %v6383_v54 = vpack.c.bf16 %v4590_v51, %v4589_v50 }
 0x15d   :  { %v2185_v63 = vadd.f32 %v6004_v62, %v1917_v53  ;;  %v1017_v0 = vpop.f32.mrb[51].mxu0  ;;  %6197 = vmatmul.mubr.msk.f32.gmra.mrb[46].mxu1 %vm2531_vm1, %v2439_v58  ;;  %v2441_v8 = vmax.f32 %v2313_v60, 0.0  ;;  %v1941_v62 = vrot.slane %v1617_v47, %v6670_v59 }
 0x15e   :  { %v2440_v4 = vmax.f32 %v2312_v61, 0.0  ;;  %v2184_v6 = vadd.f32 %v1917_v53, %v1017_v0  ;;  %6384 = vmatprep.subr.bf16.mxu1 %v6383_v54  ;;  %v1633_v0 = vcombine.high %v1625_v48, %v1625_v48 }
 0x15f   :  { %v2315_v9 = vadd.f32 %v6680_v5, %v2185_v63  ;;  %v1641_v63 = vrot.slane %v1625_v48, %v6659_v49  ;;  %6386 = vmatpush3.bf16.msra.mxu1 %v6383_v54 }
 0x160   :  { %v2314_v11 = vadd.f32 %v6687_v10, %v2184_v6  ;;  %v6007_v7 = vpop.f32.mrb[52].mxu0  ;;  %6199 = vmatprep.mubr.msk.f32.mxu1 %vm2531_vm1, %v2440_v4 }
 0x161   :  { %v2187_v12 = vadd.f32 %v6007_v7, %v1921_v1  ;;  %v1027_v13 = vpop.f32.mrb[53].mxu0  ;;  %6200 = vmatmul.mubr.msk.f32.gmra.mrb[48].mxu1 %vm2531_vm1, %v2441_v8  ;;  %v2443_v19 = vmax.f32 %v2315_v9, 0.0  ;;  %v1945_v7 = vrot.slane %v1641_v63, %v6670_v59 }
 0x162   :  { %v2442_v17 = vmax.f32 %v2314_v11, 0.0  ;;  %v2186_v18 = vadd.f32 %v1921_v1, %v1027_v13 }
 0x163   :  { %v2317_v20 = vadd.f32 %v6680_v5, %v2187_v12  ;;  %v1655_v12 = vrot.slane %v1633_v0, %v6659_v49 }
 0x164   :  { %v2316_v21 = vadd.f32 %v6687_v10, %v2186_v18  ;;  %v6010_v22 = vpop.f32.mrb[54].mxu0  ;;  %6202 = vmatprep.mubr.msk.f32.mxu1 %vm2531_vm1, %v2442_v17 }
 0x165   :  { %v2189_v23 = vadd.f32 %v6010_v22, %v1925_v14  ;;  %v1037_v24 = vpop.f32.mrb[55].mxu0  ;;  %6203 = vmatmul.mubr.msk.f32.gmra.mrb[50].mxu1 %vm2531_vm1, %v2443_v19  ;;  %v2445_v29 = vmax.f32 %v2317_v20, 0.0  ;;  %v1663_v22 = vcombine.high %v1641_v63, %v1641_v63 }
 0x166   :  { %v2444_v27 = vmax.f32 %v2316_v21, 0.0  ;;  %v2188_v28 = vadd.f32 %v1925_v14, %v1037_v24  ;;  %v1949_v21 = vrot.slane %v1655_v12, %v6670_v59 }
 0x167   :  { %v2319_v30 = vadd.f32 %v6680_v5, %v2189_v23  ;;  %v1618_v23 = vcombine.high %v6895_v39, %v6895_v39 }
 0x168   :  { %v2318_v31 = vadd.f32 %v6687_v10, %v2188_v28  ;;  %v6013_v32 = vpop.f32.mrb[56].mxu0  ;;  %6205 = vmatprep.mubr.msk.f32.mxu1 %vm2531_vm1, %v2444_v27 }
 0x169   :  { %v2191_v33 = vadd.f32 %v6013_v32, %v1929_v25  ;;  %v1047_v34 = vpop.f32.mrb[57].mxu0  ;;  %6206 = vmatmul.mubr.msk.f32.gmra.mrb[52].mxu1 %vm2531_vm1, %v2445_v29  ;;  %v2447_v40 = vmax.f32 %v2319_v30, 0.0  ;;  %v1953_v32 = vrot.slane %v1663_v22, %v6670_v59 }
 0x16a   :  { %v2446_v37 = vmax.f32 %v2318_v31, 0.0  ;;  %v2190_v38 = vadd.f32 %v1929_v25, %v1047_v34  ;;  %v1632_v34 = vrot.slane %v1618_v23, %v6659_v49 }
 0x16b   :  { %v2321_v41 = vadd.f32 %v6680_v5, %v2191_v33  ;;  %v1665_v33 = vcombine.high %v1655_v12, %v1655_v12 }
 0x16c   :  { %v2320_v42 = vadd.f32 %v6687_v10, %v2190_v38  ;;  %v6016_v43 = vpop.f32.mrb[58].mxu0  ;;  %6208 = vmatprep.mubr.msk.f32.mxu1 %vm2531_vm1, %v2446_v37 }
 0x16d   :  { %v2193_v44 = vadd.f32 %v6016_v43, %v1933_v35  ;;  %v1057_v45 = vpop.f32.mrb[59].mxu0  ;;  %6209 = vmatmul.mubr.msk.f32.gmra.mrb[54].mxu1 %vm2531_vm1, %v2447_v40  ;;  %v2449_v55 = vmax.f32 %v2321_v41, 0.0  ;;  %v1957_v43 = vrot.slane %v1665_v33, %v6670_v59 }
 0x16e   :  { %v2448_v52 = vmax.f32 %v2320_v42, 0.0  ;;  %v2192_v53 = vadd.f32 %v1933_v35, %v1057_v45  ;;  %v1634_v45 = vcombine.high %v1632_v34, %v1632_v34 }
 0x16f   :  { %v2323_v56 = vadd.f32 %v6680_v5, %v2193_v44  ;;  %v1648_v44 = vrot.slane %v1632_v34, %v6659_v49 }
 0x170   :  { %v2322_v57 = vadd.f32 %v6687_v10, %v2192_v53  ;;  %v6019_v58 = vpop.f32.mrb[60].mxu0  ;;  %6211 = vmatprep.mubr.msk.f32.mxu1 %vm2531_vm1, %v2448_v52 }
 0x171   :  { %v2195_v60 = vadd.f32 %v6019_v58, %v1937_v46  ;;  %v1067_v61 = vpop.f32.mrb[61].mxu0  ;;  %6212 = vmatmul.mubr.msk.f32.gmra.mrb[56].mxu1 %vm2531_vm1, %v2449_v55  ;;  %v2451_v3 = vmax.f32 %v2323_v56, 0.0  ;;  %v1961_v55 = vrot.slane %v1648_v44, %v6670_v59  ;;  %v1662_v56 = vrot.slane %v1634_v45, %v6659_v49 }
 0x172   :  { %v2450_v1 = vmax.f32 %v2322_v57, 0.0  ;;  %v2194_v2 = vadd.f32 %v1937_v46, %v1067_v61 }
 0x173   :  { %v2325_v4 = vadd.f32 %v6680_v5, %v2195_v60 }
 0x174   :  { %v2324_v6 = vadd.f32 %v6687_v10, %v2194_v2  ;;  %v6022_v8 = vpop.f32.mrb[62].mxu0  ;;  %6214 = vmatprep.mubr.msk.f32.mxu1 %vm2531_vm1, %v2450_v1  ;;  %v1965_v2 = vrot.slane %v1662_v56, %v6670_v59 }
 0x175   :  { %v2197_v9 = vadd.f32 %v6022_v8, %v1941_v62  ;;  %v1077_v11 = vpop.f32.mrb[63].mxu0  ;;  %6215 = vmatmul.mubr.msk.f32.gmra.mrb[58].mxu1 %vm2531_vm1, %v2451_v3  ;;  %v2453_v15 = vmax.f32 %v2325_v4, 0.0  ;;  %v1664_v3 = vcombine.high %v1648_v44, %v1648_v44  ;;  %v6955_v8 = vld [vmem:[%s8190_s1 + $0x28] sm:$0xff] }
 0x176   :  { %v2452_v13 = vmax.f32 %v2324_v6, 0.0  ;;  %v2196_v14 = vadd.f32 %v1941_v62, %v1077_v11  ;;  %v6966_v11 = vld [vmem:[%s8192_s3] sm:$0xff] }
 0x177   :  { %v2327_v16 = vadd.f32 %v6680_v5, %v2197_v9 }
 0x178   :  { %v2326_v17 = vadd.f32 %v6687_v10, %v2196_v14  ;;  %v6025_v18 = vpop.f32.mrb[64].mxu0  ;;  %6217 = vmatprep.mubr.msk.f32.mxu1 %vm2531_vm1, %v2452_v13 }
 0x179   :  { %v2199_v19 = vadd.f32 %v6025_v18, %v1945_v7  ;;  %v1087_v20 = vpop.f32.mrb[65].mxu0  ;;  %6218 = vmatmul.mubr.msk.f32.gmra.mrb[60].mxu1 %vm2531_vm1, %v2453_v15  ;;  %v2455_v26 = vmax.f32 %v2327_v16, 0.0  ;;  %v1969_v15 = vrot.slane %v1664_v3, %v6670_v59  ;;  %v1666_v16 = vcombine.high %v1662_v56, %v1662_v56 }
 0x17a   :  { %v2454_v24 = vmax.f32 %v2326_v17, 0.0  ;;  %v2198_v25 = vadd.f32 %v1945_v7, %v1087_v20  ;;  %v1674_v17 = vrot.slane %v6955_v8, %v6659_v49 }
 0x17b   :  { %v2329_v27 = vadd.f32 %v6680_v5, %v2199_v19 }
 0x17c   :  { %v2328_v28 = vadd.f32 %v6687_v10, %v2198_v25  ;;  %v6028_v29 = vpop.f32.mrb[66].mxu0  ;;  %6220 = vmatprep.mubr.msk.f32.mxu1 %vm2531_vm1, %v2454_v24 }
 0x17d   :  { %v2201_v30 = vadd.f32 %v6028_v29, %v1949_v21  ;;  %v1097_v31 = vpop.f32.mrb[67].mxu0  ;;  %6221 = vmatmul.mubr.msk.f32.gmra.mrb[62].mxu1 %vm2531_vm1, %v2455_v26  ;;  %v2457_v37 = vmax.f32 %v2329_v27, 0.0  ;;  %v1973_v26 = vrot.slane %v1666_v16, %v6670_v59  ;;  %v1690_v27 = vrot.slane %v1674_v17, %v6659_v49 }
 0x17e   :  { %v2456_v35 = vmax.f32 %v2328_v28, 0.0  ;;  %v2200_v36 = vadd.f32 %v1949_v21, %v1097_v31  ;;  %v1682_v28 = vcombine.high %v1674_v17, %v1674_v17 }
 0x17f   :  { %v2331_v38 = vadd.f32 %v6680_v5, %v2201_v30 }
 0x180   :  { %v2330_v39 = vadd.f32 %v6687_v10, %v2200_v36  ;;  %v6031_v40 = vpop.f32.mrb[68].mxu0  ;;  %6223 = vmatprep.mubr.msk.f32.mxu1 %vm2531_vm1, %v2456_v35 }
 0x181   :  { %v2203_v41 = vadd.f32 %v6031_v40, %v1953_v32  ;;  %v1107_v42 = vpop.f32.mrb[69].mxu0  ;;  %6224 = vmatmul.mubr.msk.f32.gmra.mrb[64].mxu1 %vm2531_vm1, %v2457_v37  ;;  %v2459_v48 = vmax.f32 %v2331_v38, 0.0  ;;  %v1977_v37 = vrot.slane %v1690_v27, %v6670_v59  ;;  %v1704_v38 = vrot.slane %v1682_v28, %v6659_v49 }
 0x182   :  { %v2458_v46 = vmax.f32 %v2330_v39, 0.0  ;;  %v2202_v47 = vadd.f32 %v1953_v32, %v1107_v42 }
 0x183   :  { %v2333_v50 = vadd.f32 %v6680_v5, %v2203_v41 }
 0x184   :  { %v2332_v51 = vadd.f32 %v6687_v10, %v2202_v47  ;;  %v6034_v52 = vpop.f32.mrb[70].mxu0  ;;  %6226 = vmatprep.mubr.msk.f32.mxu1 %vm2531_vm1, %v2458_v46  ;;  %v1981_v47 = vrot.slane %v1704_v38, %v6670_v59 }
 0x185   :  { %v2205_v53 = vadd.f32 %v6034_v52, %v1957_v43  ;;  %v1117_v54 = vpop.f32.mrb[71].mxu0  ;;  %6227 = vmatmul.mubr.msk.f32.gmra.mrb[66].mxu1 %vm2531_vm1, %v2459_v48  ;;  %v2461_v60 = vmax.f32 %v2333_v50, 0.0  ;;  %v1712_v48 = vcombine.high %v1690_v27, %v1690_v27  ;;  %v1667_v50 = vcombine.high %v6955_v8, %v6955_v8 }
 0x186   :  { %v2460_v57 = vmax.f32 %v2332_v51, 0.0  ;;  %v2204_v58 = vadd.f32 %v1957_v43, %v1117_v54 }
 0x187   :  { %v2335_v61 = vadd.f32 %v6680_v5, %v2205_v53 }
 0x188   :  { %v2334_v62 = vadd.f32 %v6687_v10, %v2204_v58  ;;  %v6037_v63 = vpop.f32.mrb[72].mxu0  ;;  %6229 = vmatprep.mubr.msk.f32.mxu1 %vm2531_vm1, %v2460_v57  ;;  %v6960_v10 = vld [vmem:[%s8192_s3 + $0x8] sm:$0xff] }
 0x189   :  { %v2207_v0 = vadd.f32 %v6037_v63, %v1961_v55  ;;  %v1127_v1 = vpop.f32.mrb[73].mxu0  ;;  %6230 = vmatmul.mubr.msk.f32.gmra.mrb[68].mxu1 %vm2531_vm1, %v2461_v60  ;;  %v2463_v5 = vmax.f32 %v2335_v61, 0.0  ;;  %v1985_v60 = vrot.slane %v1712_v48, %v6670_v59  ;;  %v1714_v61 = vcombine.high %v1704_v38, %v1704_v38 }
 0x18a   :  { %v2462_v4 = vmax.f32 %v2334_v62, 0.0  ;;  %v2206_v6 = vadd.f32 %v1961_v55, %v1127_v1  ;;  %v1681_v62 = vrot.slane %v1667_v50, %v6659_v49 }
 0x18b   :  { %v2337_v9 = vadd.f32 %v6960_v10, %v2207_v0 }
 0x18c   :  { %v2336_v7 = vadd.f32 %v6966_v11, %v2206_v6  ;;  %v6040_v12 = vpop.f32.mrb[74].mxu0  ;;  %6232 = vmatprep.mubr.msk.f32.mxu1 %vm2531_vm1, %v2462_v4 }
 0x18d   :  { %v2209_v13 = vadd.f32 %v6040_v12, %v1965_v2  ;;  %v1137_v14 = vpop.f32.mrb[75].mxu0  ;;  %6233 = vmatmul.mubr.msk.f32.gmra.mrb[70].mxu1 %vm2531_vm1, %v2463_v5  ;;  %v2465_v20 = vmax.f32 %v2337_v9, 0.0  ;;  %v1989_v5 = vrot.slane %v1714_v61, %v6670_v59  ;;  %v1697_v9 = vrot.slane %v1681_v62, %v6659_v49 }
 0x18e   :  { %v2464_v18 = vmax.f32 %v2336_v7, 0.0  ;;  %v2208_v19 = vadd.f32 %v1965_v2, %v1137_v14  ;;  %v1683_v7 = vcombine.high %v1681_v62, %v1681_v62 }
 0x18f   :  { %v2339_v21 = vadd.f32 %v6960_v10, %v2209_v13 }
 0x190   :  { %v2338_v22 = vadd.f32 %v6966_v11, %v2208_v19  ;;  %v6043_v23 = vpop.f32.mrb[76].mxu0  ;;  %6235 = vmatprep.mubr.msk.f32.mxu1 %vm2531_vm1, %v2464_v18 }
 0x191   :  { %v2211_v24 = vadd.f32 %v6043_v23, %v1969_v15  ;;  %v1147_v25 = vpop.f32.mrb[77].mxu0  ;;  %6236 = vmatmul.mubr.msk.f32.gmra.mrb[72].mxu1 %vm2531_vm1, %v2465_v20  ;;  %v2467_v31 = vmax.f32 %v2339_v21, 0.0  ;;  %v1993_v20 = vrot.slane %v1697_v9, %v6670_v59  ;;  %v1711_v21 = vrot.slane %v1683_v7, %v6659_v49 }
 0x192   :  { %v2466_v29 = vmax.f32 %v2338_v22, 0.0  ;;  %v2210_v30 = vadd.f32 %v1969_v15, %v1147_v25 }
 0x193   :  { %v2341_v32 = vadd.f32 %v6960_v10, %v2211_v24 }
 0x194   :  { %v2340_v33 = vadd.f32 %v6966_v11, %v2210_v30  ;;  %v6046_v34 = vpop.f32.mrb[78].mxu0  ;;  %6238 = vmatprep.mubr.msk.f32.mxu1 %vm2531_vm1, %v2466_v29  ;;  %v1997_v30 = vrot.slane %v1711_v21, %v6670_v59 }
 0x195   :  { %v2213_v35 = vadd.f32 %v6046_v34, %v1973_v26  ;;  %v1157_v36 = vpop.f32.mrb[79].mxu0  ;;  %6239 = vmatmul.mubr.msk.f32.gmra.mrb[74].mxu1 %vm2531_vm1, %v2467_v31  ;;  %v2469_v41 = vmax.f32 %v2341_v32, 0.0  ;;  %v1713_v31 = vcombine.high %v1697_v9, %v1697_v9  ;;  %v7019_v34 = vld [vmem:[%s8190_s1 + $0x30] sm:$0xff] }
 0x196   :  { %v2468_v39 = vmax.f32 %v2340_v33, 0.0  ;;  %v2212_v40 = vadd.f32 %v1973_v26, %v1157_v36 }
 0x197   :  { %v2343_v42 = vadd.f32 %v6960_v10, %v2213_v35 }
 0x198   :  { %v2342_v43 = vadd.f32 %v6966_v11, %v2212_v40  ;;  %v6049_v44 = vpop.f32.mrb[80].mxu0  ;;  %6241 = vmatprep.mubr.msk.f32.mxu1 %vm2531_vm1, %v2468_v39 }
 0x199   :  { %v2215_v45 = vadd.f32 %v6049_v44, %v1977_v37  ;;  %v1167_v46 = vpop.f32.mrb[81].mxu0  ;;  %6242 = vmatmul.mubr.msk.f32.gmra.mrb[76].mxu1 %vm2531_vm1, %v2469_v41  ;;  %v2471_v53 = vmax.f32 %v2343_v42, 0.0  ;;  %v2001_v41 = vrot.slane %v1713_v31, %v6670_v59  ;;  %v1715_v42 = vcombine.high %v1711_v21, %v1711_v21  ;;  %v4592_v21 = vld [vmem:[%s8196_s7 + $0x18] sm:$0xff] }
 0x19a   :  { %v2470_v51 = vmax.f32 %v2342_v43, 0.0  ;;  %v2214_v52 = vadd.f32 %v1977_v37, %v1167_v46  ;;  %v1723_v43 = vrot.slane %v7019_v34, %v6659_v49 }
 0x19b   :  { %v2345_v54 = vadd.f32 %v6960_v10, %v2215_v45 }
 0x19c   :  { %v2344_v55 = vadd.f32 %v6966_v11, %v2214_v52  ;;  %v6052_v56 = vpop.f32.mrb[82].mxu0  ;;  %6244 = vmatprep.mubr.msk.f32.mxu1 %vm2531_vm1, %v2470_v51 }
 0x19d   :  { %v2217_v57 = vadd.f32 %v6052_v56, %v1981_v47  ;;  %v1177_v58 = vpop.f32.mrb[83].mxu0  ;;  %6245 = vmatmul.mubr.msk.f32.gmra.mrb[78].mxu1 %vm2531_vm1, %v2471_v53  ;;  %v2473_v1 = vmax.f32 %v2345_v54, 0.0  ;;  %v2005_v53 = vrot.slane %v1715_v42, %v6670_v59  ;;  %v1739_v54 = vrot.slane %v1723_v43, %v6659_v49 }
 0x19e   :  { %v2472_v63 = vmax.f32 %v2344_v55, 0.0  ;;  %v2216_v0 = vadd.f32 %v1981_v47, %v1177_v58  ;;  %v1731_v55 = vcombine.high %v1723_v43, %v1723_v43 }
 0x19f   :  { %v2347_v2 = vadd.f32 %v6960_v10, %v2217_v57 }
 0x1a0   :  { %v2346_v3 = vadd.f32 %v6966_v11, %v2216_v0  ;;  %v6055_v4 = vpop.f32.mrb[84].mxu0  ;;  %6247 = vmatprep.mubr.msk.f32.mxu1 %vm2531_vm1, %v2472_v63 }
 0x1a1   :  { %v2219_v6 = vadd.f32 %v6055_v4, %v1985_v60  ;;  %v1187_v8 = vpop.f32.mrb[85].mxu0  ;;  %6248 = vmatmul.mubr.msk.f32.gmra.mrb[80].mxu1 %vm2531_vm1, %v2473_v1  ;;  %v2475_v14 = vmax.f32 %v2347_v2, 0.0  ;;  %v2009_v1 = vrot.slane %v1739_v54, %v6670_v59  ;;  %v1753_v2 = vrot.slane %v1731_v55, %v6659_v49 }
 0x1a2   :  { %v2474_v12 = vmax.f32 %v2346_v3, 0.0  ;;  %v2218_v13 = vadd.f32 %v1985_v60, %v1187_v8 }
 0x1a3   :  { %v2349_v15 = vadd.f32 %v6960_v10, %v2219_v6 }
 0x1a4   :  { %v2348_v16 = vadd.f32 %v6966_v11, %v2218_v13  ;;  %v6058_v17 = vpop.f32.mrb[86].mxu0  ;;  %6250 = vmatprep.mubr.msk.f32.mxu1 %vm2531_vm1, %v2474_v12  ;;  %v2013_v13 = vrot.slane %v1753_v2, %v6670_v59 }
 0x1a5   :  { %v2221_v18 = vadd.f32 %v6058_v17, %v1989_v5  ;;  %v1197_v19 = vpop.f32.mrb[87].mxu0  ;;  %6251 = vmatmul.mubr.msk.f32.gmra.mrb[82].mxu1 %vm2531_vm1, %v2475_v14  ;;  %v2477_v24 = vmax.f32 %v2349_v15, 0.0  ;;  %v1761_v14 = vcombine.high %v1739_v54, %v1739_v54  ;;  %v1716_v15 = vcombine.high %v7019_v34, %v7019_v34 }
 0x1a6   :  { %v2476_v22 = vmax.f32 %v2348_v16, 0.0  ;;  %v2220_v23 = vadd.f32 %v1989_v5, %v1197_v19 }
 0x1a7   :  { %v2351_v25 = vadd.f32 %v6960_v10, %v2221_v18 }
 0x1a8   :  { %v2350_v26 = vadd.f32 %v6966_v11, %v2220_v23  ;;  %v6061_v27 = vpop.f32.mrb[88].mxu0  ;;  %6253 = vmatprep.mubr.msk.f32.mxu1 %vm2531_vm1, %v2476_v22 }
 0x1a9   :  { %v2223_v28 = vadd.f32 %v6061_v27, %v1993_v20  ;;  %v1207_v29 = vpop.f32.mrb[89].mxu0  ;;  %6254 = vmatmul.mubr.msk.f32.gmra.mrb[84].mxu1 %vm2531_vm1, %v2477_v24  ;;  %v2479_v35 = vmax.f32 %v2351_v25, 0.0  ;;  %v2017_v27 = vrot.slane %v1761_v14, %v6670_v59 }
 0x1aa   :  { %v2478_v32 = vmax.f32 %v2350_v26, 0.0  ;;  %v2222_v33 = vadd.f32 %v1993_v20, %v1207_v29  ;;  %v4591_v20 = vld [vmem:[%s8196_s7 + $0x10] sm:$0xff]  ;;  %v1730_v29 = vrot.slane %v1716_v15, %v6659_v49 }
 0x1ab   :  { %v2353_v36 = vadd.f32 %v6960_v10, %v2223_v28  ;;  %v6387_v24 = vpack.c.bf16 %v4592_v21, %v4591_v20  ;;  %v1763_v28 = vcombine.high %v1753_v2, %v1753_v2 }
 0x1ac   :  { %v2352_v37 = vadd.f32 %v6966_v11, %v2222_v33  ;;  %v6064_v38 = vpop.f32.mrb[90].mxu0  ;;  %6256 = vmatprep.mubr.msk.f32.mxu1 %vm2531_vm1, %v2478_v32 }
 0x1ad   :  { %v2225_v39 = vadd.f32 %v6064_v38, %v1997_v30  ;;  %v1217_v40 = vpop.f32.mrb[91].mxu0  ;;  %6257 = vmatmul.mubr.msk.f32.gmra.mrb[86].mxu1 %vm2531_vm1, %v2479_v35  ;;  %v2481_v46 = vmax.f32 %v2353_v36, 0.0  ;;  %6388 = vmatprep.subr.bf16.mxu1 %v6387_v24  ;;  %v2021_v38 = vrot.slane %v1763_v28, %v6670_v59 }
 0x1ae   :  { %v2480_v44 = vmax.f32 %v2352_v37, 0.0  ;;  %v2224_v45 = vadd.f32 %v1997_v30, %v1217_v40  ;;  %6390 = vmatpush3.bf16.msra.mxu1 %v6387_v24  ;;  %v1732_v40 = vcombine.high %v1730_v29, %v1730_v29 }
 0x1af   :  { %v2355_v47 = vadd.f32 %v6960_v10, %v2225_v39  ;;  %v1746_v39 = vrot.slane %v1730_v29, %v6659_v49 }
 0x1b0   :  { %v2354_v48 = vadd.f32 %v6966_v11, %v2224_v45  ;;  %v6067_v50 = vpop.f32.mrb[92].mxu0  ;;  %6259 = vmatprep.mubr.msk.f32.mxu1 %vm2531_vm1, %v2480_v44 }
 0x1b1   :  { %v2227_v51 = vadd.f32 %v6067_v50, %v2001_v41  ;;  %v1227_v52 = vpop.f32.mrb[93].mxu0  ;;  %6260 = vmatmul.mubr.msk.f32.gmra.mrb[88].mxu1 %vm2531_vm1, %v2481_v46  ;;  %v2483_v58 = vmax.f32 %v2355_v47, 0.0  ;;  %v2025_v50 = vrot.slane %v1746_v39, %v6670_v59 }
 0x1b2   :  { %v2482_v56 = vmax.f32 %v2354_v48, 0.0  ;;  %v2226_v57 = vadd.f32 %v2001_v41, %v1227_v52 }
 0x1b3   :  { %v2357_v60 = vadd.f32 %v6960_v10, %v2227_v51  ;;  %v1760_v51 = vrot.slane %v1732_v40, %v6659_v49 }
 0x1b4   :  { %v2356_v61 = vadd.f32 %v6966_v11, %v2226_v57  ;;  %v6070_v62 = vpop.f32.mrb[94].mxu0  ;;  %6262 = vmatprep.mubr.msk.f32.mxu1 %vm2531_vm1, %v2482_v56 }
 0x1b5   :  { %v2229_v63 = vadd.f32 %v6070_v62, %v2005_v53  ;;  %v1237_v0 = vpop.f32.mrb[95].mxu0  ;;  %6263 = vmatmul.mubr.msk.f32.gmra.mrb[90].mxu1 %vm2531_vm1, %v2483_v58  ;;  %v2485_v6 = vmax.f32 %v2357_v60, 0.0  ;;  %v1413_v58 = vld [vmem:[%s8190_s1 + $0x38] sm:$0xff]  ;;  %v2029_v62 = vrot.slane %v1760_v51, %v6670_v59 }
 0x1b6   :  { %v2484_v3 = vmax.f32 %v2356_v61, 0.0  ;;  %v2228_v4 = vadd.f32 %v2005_v53, %v1237_v0 }
 0x1b7   :  { %v2359_v8 = vadd.f32 %v6960_v10, %v2229_v63  ;;  %v1762_v63 = vcombine.high %v1746_v39, %v1746_v39 }
 0x1b8   :  { %v2358_v5 = vadd.f32 %v6966_v11, %v2228_v4  ;;  %v6073_v9 = vpop.f32.mrb[96].mxu0  ;;  %6265 = vmatprep.mubr.msk.f32.mxu1 %vm2531_vm1, %v2484_v3  ;;  %v1772_v4 = vrot.slane %v1413_v58, %v6659_v49 }
 0x1b9   :  { %v2231_v7 = vadd.f32 %v6073_v9, %v2009_v1  ;;  %v1247_v12 = vpop.f32.mrb[97].mxu0  ;;  %6266 = vmatmul.mubr.msk.f32.gmra.mrb[92].mxu1 %vm2531_vm1, %v2485_v6  ;;  %v2487_v18 = vmax.f32 %v2359_v8, 0.0  ;;  %v1765_v6 = vcombine.high %v1413_v58, %v1413_v58 }
 0x1ba   :  { %v2486_v16 = vmax.f32 %v2358_v5, 0.0  ;;  %v2230_v17 = vadd.f32 %v2009_v1, %v1247_v12  ;;  %v2033_v12 = vrot.slane %v1762_v63, %v6670_v59  ;;  %v1780_v14 = vcombine.high %v1772_v4, %v1772_v4 }
 0x1bb   :  { %v2361_v19 = vadd.f32 %v6960_v10, %v2231_v7 }
 0x1bc   :  { %v2360_v22 = vadd.f32 %v6966_v11, %v2230_v17  ;;  %v6076_v23 = vpop.f32.mrb[98].mxu0  ;;  %6268 = vmatprep.mubr.msk.f32.mxu1 %vm2531_vm1, %v2486_v16 }
 0x1bd   :  { %v2233_v25 = vadd.f32 %v6076_v23, %v2013_v13  ;;  %v1257_v26 = vpop.f32.mrb[99].mxu0  ;;  %6269 = vmatmul.mubr.msk.f32.gmra.mrb[94].mxu1 %vm2531_vm1, %v2487_v18  ;;  %v2489_v32 = vmax.f32 %v2361_v19, 0.0  ;;  %v1779_v19 = vrot.slane %v1765_v6, %v6659_v49 }
 0x1be   :  { %v2488_v30 = vmax.f32 %v2360_v22, 0.0  ;;  %v2232_v31 = vadd.f32 %v2013_v13, %v1257_v26  ;;  %v1764_v13 = vcombine.high %v1760_v51, %v1760_v51  ;;  %v1788_v22 = vrot.slane %v1772_v4, %v6659_v49 }
 0x1bf   :  { %v2363_v33 = vadd.f32 %v6960_v10, %v2233_v25  ;;  %v1802_v26 = vrot.slane %v1780_v14, %v6659_v49  ;;  %v1795_v39 = vrot.slane %v1779_v19, %v6659_v49 }
 0x1c0   :  { %v2362_v34 = vadd.f32 %v6966_v11, %v2232_v31  ;;  %v6079_v35 = vpop.f32.mrb[100].mxu0  ;;  %6271 = vmatprep.mubr.msk.f32.mxu1 %vm2531_vm1, %v2488_v30  ;;  %v2037_v25 = vrot.slane %v1764_v13, %v6670_v59  ;;  %v7096_v30 = vld [vmem:[%s8195_s6] ss:$0 sm:$0xff]  ;;  %v1810_v31 = vcombine.high %v1788_v22, %v1788_v22 }
 0x1c1   :  { %v2235_v36 = vadd.f32 %v6079_v35, %v2017_v27  ;;  %v1267_v37 = vpop.f32.mrb[101].mxu0  ;;  %6272 = vmatmul.mubr.msk.f32.gmra.mrb[96].mxu1 %vm2531_vm1, %v2489_v32  ;;  %v2491_v43 = vmax.f32 %v2363_v33, 0.0  ;;  %v7120_v58 = vrot.slane %v1795_v39, %v6670_v59 }
 0x1c2   :  { %v2490_v41 = vmax.f32 %v2362_v34, 0.0  ;;  %v2234_v42 = vadd.f32 %v2017_v27, %v1267_v37  ;;  %v1781_v27 = vcombine.high %v1779_v19, %v1779_v19  ;;  %v1812_v34 = vcombine.high %v1802_v26, %v1802_v26 }
 0x1c3   :  { %v2365_v44 = vadd.f32 %v6960_v10, %v2235_v36 }
 0x1c4   :  { %v2364_v45 = vadd.f32 %v6966_v11, %v2234_v42  ;;  %v6082_v46 = vpop.f32.mrb[102].mxu0  ;;  %6274 = vmatprep.mubr.msk.f32.mxu1 %vm2531_vm1, %v2490_v41 }
 0x1c5   :  { %v2237_v47 = vadd.f32 %v6082_v46, %v2021_v38  ;;  %v1277_v48 = vpop.f32.mrb[103].mxu0  ;;  %6275 = vmatmul.mubr.msk.f32.gmra.mrb[98].mxu1 %vm2531_vm1, %v2491_v43  ;;  %v2493_v54 = vmax.f32 %v2365_v44, 0.0  ;;  %v2045_v44 = vrot.slane %v1802_v26, %v6670_v59 }
 0x1c6   :  { %v2492_v52 = vmax.f32 %v2364_v45, 0.0  ;;  %v2236_v53 = vadd.f32 %v2021_v38, %v1277_v48  ;;  %v2041_v38 = vrot.slane %v1788_v22, %v6670_v59  ;;  %v7107_v45 = vrot.slane %v1781_v27, %v6659_v49 }
 0x1c7   :  { %v2367_v55 = vadd.f32 %v6960_v10, %v2237_v47 }
 0x1c8   :  { %v2366_v56 = vadd.f32 %v6966_v11, %v2236_v53  ;;  %v6085_v57 = vpop.f32.mrb[104].mxu0  ;;  %6277 = vmatprep.mubr.msk.f32.mxu1 %vm2531_vm1, %v2492_v52 }
 0x1c9   :  { %v2239_v60 = vadd.f32 %v6085_v57, %v2025_v50  ;;  %v1287_v61 = vpop.f32.mrb[105].mxu0  ;;  %6278 = vmatmul.mubr.msk.f32.gmra.mrb[100].mxu1 %vm2531_vm1, %v2493_v54  ;;  %v2495_v2 = vmax.f32 %v2367_v55, 0.0  ;;  %v7115_v54 = vrot.slane %v1812_v34, %v6670_v59 }
 0x1ca   :  { %v2494_v0 = vmax.f32 %v2366_v56, 0.0  ;;  %v2238_v1 = vadd.f32 %v2025_v50, %v1287_v61  ;;  %v7111_v50 = vrot.slane %v1810_v31, %v6670_v59 }
 0x1cb   :  { %v2369_v3 = vadd.f32 %v6960_v10, %v2239_v60  ;;  %v1811_v60 = vcombine.high %v1795_v39, %v1795_v39 }
 0x1cc   :  { %v2368_v8 = vadd.f32 %v6966_v11, %v2238_v1  ;;  %v6088_v5 = vpop.f32.mrb[106].mxu0  ;;  %6280 = vmatprep.mubr.msk.f32.mxu1 %vm2531_vm1, %v2494_v0 }
 0x1cd   :  { %v2241_v9 = vadd.f32 %v6088_v5, %v2029_v62  ;;  %v1297_v7 = vpop.f32.mrb[107].mxu0  ;;  %6281 = vmatmul.mubr.msk.f32.gmra.mrb[102].mxu1 %vm2531_vm1, %v2495_v2  ;;  %v2497_v17 = vmax.f32 %v2369_v3, 0.0  ;;  %v7131_v2 = vrot.slane %v7107_v45, %v6670_v59 }
 0x1ce   :  { %v2496_v15 = vmax.f32 %v2368_v8, 0.0  ;;  %v2240_v16 = vadd.f32 %v2029_v62, %v1297_v7 }
 0x1cf   :  { %v2371_v18 = vadd.f32 %v6960_v10, %v2241_v9 }
 0x1d0   :  { %v2370_v20 = vadd.f32 %v6966_v11, %v2240_v16  ;;  %v6091_v21 = vpop.f32.mrb[108].mxu0  ;;  %6283 = vmatprep.mubr.msk.f32.mxu1 %vm2531_vm1, %v2496_v15 }
 0x1d1   :  { %v2243_v23 = vadd.f32 %v6091_v21, %v2033_v12  ;;  %v1307_v24 = vpop.f32.mrb[109].mxu0  ;;  %6284 = vmatmul.mubr.msk.f32.gmra.mrb[104].mxu1 %vm2531_vm1, %v2497_v17  ;;  %v2499_v32 = vmax.f32 %v2371_v18, 0.0  ;;  %v7143_v17 = vrot.slane %v1811_v60, %v6670_v59  ;;  %v1813_v18 = vcombine.high %v7107_v45, %v7107_v45 }
 0x1d2   :  { %v2498_v28 = vmax.f32 %v2370_v20, 0.0  ;;  %v2242_v29 = vadd.f32 %v2033_v12, %v1307_v24 }
 0x1d3   :  { %v2373_v33 = vadd.f32 %v6960_v10, %v2243_v23  ;;  %v7163_v39 = vrot.slane %v1813_v18, %v6670_v59 }
 0x1d4   :  { %v2372_v35 = vadd.f32 %v6966_v11, %v2242_v29  ;;  %v6094_v36 = vpop.f32.mrb[110].mxu0  ;;  %v6129_v37 = vpop.f32.mrb[0].mxu1  ;;  %6286 = vmatprep.mubr.msk.f32.mxu1 %vm2531_vm1, %v2498_v28 }
 0x1d5   :  { %v2245_v40 = vadd.f32 %v6094_v36, %v2037_v25  ;;  %v2988_v41 = vadd.f32 %v6129_v37, %v7096_v30  ;;  %v1317_v42 = vpop.f32.mrb[111].mxu0  ;;  %v2982_v43 = vpop.f32.mrb[1].mxu1  ;;  %6287 = vmatmul.mubr.msk.f32.gmra.mrb[106].mxu1 %vm2531_vm1, %v2499_v32  ;;  %v2501_v51 = vmax.f32 %v2373_v33, 0.0 }
 0x1d6   :  { %v2500_v46 = vmax.f32 %v2372_v35, 0.0  ;;  %v2244_v47 = vadd.f32 %v2037_v25, %v1317_v42  ;;  %v2983_v48 = vadd.f32 %v7096_v30, %v2982_v43 }
 0x1d7   :  { %v2375_v52 = vadd.f32 %v6960_v10, %v2245_v40  ;;  %v3622_v53 = vmax.f32 %v2988_v41, 0.0 }
 0x1d8   :  { %v2374_v55 = vadd.f32 %v6966_v11, %v2244_v47  ;;  %v3621_v56 = vmax.f32 %v2983_v48, 0.0  ;;  %v6097_v57 = vpop.f32.mrb[112].mxu0  ;;  %v6132_v49 = vpop.f32.mrb[2].mxu1  ;;  %6289 = vmatprep.mubr.msk.f32.mxu1 %vm2531_vm1, %v2500_v46 }
 0x1d9   :  { %3750 = vst.msk [vmem:[%s8199_s10 + $0x8] sm:$0xff] %vm2531_vm1, %v3622_v53  ;;  %v4004_v61 = vsel %vm2531_vm1, %v3622_v53, 0.0  ;;  %v2247_v62 = vadd.f32 %v6097_v57, %v2041_v38  ;;  %v2998_v63 = vadd.f32 %v6132_v49, %v7096_v30  ;;  %v1327_v0 = vpop.f32.mrb[113].mxu0  ;;  %v2992_v1 = vpop.f32.mrb[3].mxu1  ;;  %6290 = vmatmul.mubr.msk.f32.gmra.mrb[108].mxu1 %vm2531_vm1, %v2501_v51  ;;  %v2503_v5 = vmax.f32 %v2375_v52, 0.0 }
 0x1da   :  { %v2502_v3 = vmax.f32 %v2374_v55, 0.0  ;;  %3749 = vst.msk [vmem:[%s8199_s10] sm:$0xff] %vm2531_vm1, %v3621_v56  ;;  %v3877_v4 = vsel %vm2531_vm1, %v3621_v56, 0.0  ;;  %v2246_v6 = vadd.f32 %v2041_v38, %v1327_v0  ;;  %v2993_v8 = vadd.f32 %v7096_v30, %v2992_v1 }
 0x1db   :  { %v4133_v9 = vadd.f32 %v4004_v61, %v3877_v4  ;;  %v2377_v7 = vadd.f32 %v6960_v10, %v2247_v62  ;;  %v3624_v12 = vmax.f32 %v2998_v63, 0.0 }
 0x1dc   :  { %v2376_v13 = vadd.f32 %v6966_v11, %v2246_v6  ;;  %v3623_v14 = vmax.f32 %v2993_v8, 0.0  ;;  %v6100_v15 = vpop.f32.mrb[114].mxu0  ;;  %v6135_v16 = vpop.f32.mrb[4].mxu1  ;;  %6292 = vmatprep.mubr.msk.f32.mxu1 %vm2531_vm1, %v2502_v3 }
 0x1dd   :  { %v4134_v19 = vrot.slane %v4133_v9, 4  ;;  %v2505_v20 = vmax.f32 %v2377_v7, 0.0  ;;  %3752 = vst.msk [vmem:[%s8199_s10 + $0x18] sm:$0xff] %vm2531_vm1, %v3624_v12  ;;  %v4005_v21 = vsel %vm2531_vm1, %v3624_v12, 0.0  ;;  %v2249_v22 = vadd.f32 %v6100_v15, %v2045_v44  ;;  %v1337_v23 = vpop.f32.mrb[115].mxu0  ;;  %v3002_v24 = vpop.f32.mrb[5].mxu1  ;;  %6293 = vmatmul.mubr.msk.f32.gmra.mrb[110].mxu1 %vm2531_vm1, %v2503_v5 }
 0x1de   :  { %v4006_v25 = vadd.f32 %v4005_v21, %v4004_v61  ;;  %v2504_v26 = vmax.f32 %v2376_v13, 0.0  ;;  %3751 = vst.msk [vmem:[%s8199_s10 + $0x10] sm:$0xff] %vm2531_vm1, %v3623_v14  ;;  %v3878_v27 = vsel %vm2531_vm1, %v3623_v14, 0.0  ;;  %v3008_v28 = vadd.f32 %v6135_v16, %v7096_v30 }
 0x1df   :  { %v4135_v29 = vadd.f32 %v4134_v19, %v4133_v9  ;;  %v3879_v31 = vadd.f32 %v3878_v27, %v3877_v4  ;;  %v4140_v32 = vadd.f32 %v4005_v21, %v3878_v27  ;;  %v2379_v33 = vadd.f32 %v6960_v10, %v2249_v22 }
 0x1e0   :  { %v3626_v34 = vmax.f32 %v3008_v28, 0.0  ;;  %v2248_v35 = vadd.f32 %v2045_v44, %v1337_v23  ;;  %v3003_v36 = vadd.f32 %v7096_v30, %v3002_v24  ;;  %v6103_v37 = vpop.f32.mrb[116].mxu0  ;;  %v6138_v38 = vpop.f32.mrb[6].mxu1  ;;  %6295 = vmatprep.mubr.msk.f32.mxu1 %vm2531_vm1, %v2504_v26 }
 0x1e1   :  { %v4136_v40 = vrot.slane %v4135_v29, 2  ;;  %v4141_v41 = vrot.slane %v4140_v32, 4  ;;  %v2507_v42 = vmax.f32 %v2379_v33, 0.0  ;;  %v2251_v43 = vadd.f32 %v6103_v37, %v7111_v50  ;;  %v1347_v45 = vpop.f32.mrb[117].mxu0  ;;  %v3012_v46 = vpop.f32.mrb[7].mxu1  ;;  %6296 = vmatmul.mubr.msk.f32.gmra.mrb[112].mxu1 %vm2531_vm1, %v2505_v20 }
 0x1e2   :  { %3754 = vst.msk [vmem:[%s8199_s10 + $0x28] sm:$0xff] %vm2531_vm1, %v3626_v34  ;;  %v4007_v44 = vsel %vm2531_vm1, %v3626_v34, 0.0  ;;  %v2378_v59 = vadd.f32 %v6966_v11, %v2248_v35  ;;  %v3625_v47 = vmax.f32 %v3003_v36, 0.0  ;;  %v3018_v48 = vadd.f32 %v6138_v38, %v7096_v30 }
 0x1e3   :  { %v4137_v51 = vadd.f32 %v4136_v40, %v4135_v29  ;;  %v4142_v52 = vadd.f32 %v4141_v41, %v4140_v32  ;;  %v4008_v53 = vadd.f32 %v4007_v44, %v4006_v25  ;;  %v2381_v55 = vadd.f32 %v6960_v10, %v2251_v43 }
 0x1e4   :  { %v2506_v56 = vmax.f32 %v2378_v59, 0.0  ;;  %3753 = vst.msk [vmem:[%s8199_s10 + $0x20] sm:$0xff] %vm2531_vm1, %v3625_v47  ;;  %v3880_v57 = vsel %vm2531_vm1, %v3625_v47, 0.0  ;;  %v3628_v49 = vmax.f32 %v3018_v48, 0.0  ;;  %v2250_v60 = vadd.f32 %v7111_v50, %v1347_v45  ;;  %v6106_v61 = vpop.f32.mrb[118].mxu0  ;;  %v6141_v62 = vpop.f32.mrb[8].mxu1 }
 0x1e5   :  { %v4138_v63 = vrot.slane %v4137_v51, 1  ;;  %v4143_v0 = vrot.slane %v4142_v52, 2  ;;  %v3881_v1 = vadd.f32 %v3880_v57, %v3879_v31  ;;  %v4147_v3 = vadd.f32 %v4007_v44, %v3880_v57  ;;  %v1357_v4 = vpop.f32.mrb[119].mxu0  ;;  %v3022_v6 = vpop.f32.mrb[9].mxu1 }
 0x1e6   :  { %v2509_v8 = vmax.f32 %v2381_v55, 0.0  ;;  %3756 = vst.msk [vmem:[%s8199_s10 + $0x38] sm:$0xff] %vm2531_vm1, %v3628_v49  ;;  %v4009_v5 = vsel %vm2531_vm1, %v3628_v49, 0.0  ;;  %v2380_v9 = vadd.f32 %v6966_v11, %v2250_v60  ;;  %v3013_v50 = vadd.f32 %v7096_v30, %v3012_v46  ;;  %6298 = vmatprep.mubr.msk.f32.mxu1 %vm2531_vm1, %v2506_v56 }
 0x1e7   :  { %v4139_v7 = vadd.f32 %v4138_v63, %v4137_v51  ;;  %v4144_v12 = vadd.f32 %v4143_v0, %v4142_v52  ;;  %v4148_v13 = vrot.slane %v4147_v3, 4  ;;  %v4010_v14 = vadd.f32 %v4009_v5, %v4008_v53  ;;  %6299 = vmatmul.mubr.msk.f32.gmra.mrb[114].mxu1 %vm2531_vm1, %v2507_v42 }
 0x1e8   :  { %v2508_v15 = vmax.f32 %v2380_v9, 0.0  ;;  %v3627_v16 = vmax.f32 %v3013_v50, 0.0  ;;  %v2253_v18 = vadd.f32 %v6106_v61, %v7115_v54  ;;  %v3028_v19 = vadd.f32 %v6141_v62, %v7096_v30  ;;  %v6109_v20 = vpop.f32.mrb[120].mxu0  ;;  %v6144_v21 = vpop.f32.mrb[10].mxu1 }
 0x1e9   :  { %v4145_v22 = vrot.slane %v4144_v12, 1  ;;  %v4149_v23 = vadd.f32 %v4148_v13, %v4147_v3  ;;  %v2252_v24 = vadd.f32 %v7115_v54, %v1357_v4  ;;  %v3023_v25 = vadd.f32 %v7096_v30, %v3022_v6  ;;  %v1367_v26 = vpop.f32.mrb[121].mxu0  ;;  %v3032_v27 = vpop.f32.mrb[11].mxu1 }
 0x1ea   :  { %3755 = vst.msk [vmem:[%s8199_s10 + $0x30] sm:$0xff] %vm2531_vm1, %v3627_v16  ;;  %v3882_v28 = vsel %vm2531_vm1, %v3627_v16, 0.0  ;;  %v2383_v29 = vadd.f32 %v6960_v10, %v2253_v18  ;;  %v3630_v31 = vmax.f32 %v3028_v19, 0.0  ;;  %v2255_v32 = vadd.f32 %v6109_v20, %v7120_v58  ;;  %6301 = vmatprep.mubr.msk.f32.mxu1 %vm2531_vm1, %v2508_v15 }
 0x1eb   :  { %v4146_v33 = vadd.f32 %v4145_v22, %v4144_v12  ;;  %v4150_v54 = vrot.slane %v4149_v23, 2  ;;  %v3883_v34 = vadd.f32 %v3882_v28, %v3881_v1  ;;  %v4154_v35 = vadd.f32 %v4009_v5, %v3882_v28  ;;  %6302 = vmatmul.mubr.msk.f32.gmra.mrb[116].mxu1 %vm2531_vm1, %v2509_v8 }
 0x1ec   :  { %v2511_v36 = vmax.f32 %v2383_v29, 0.0  ;;  %3758 = vst.msk [vmem:[%s8199_s10 + $0x48] sm:$0xff] %vm2531_vm1, %v3630_v31  ;;  %v4011_v37 = vsel %vm2531_vm1, %v3630_v31, 0.0  ;;  %v2382_v38 = vadd.f32 %v6966_v11, %v2252_v24  ;;  %v3629_v40 = vmax.f32 %v3023_v25, 0.0  ;;  %v6112_v41 = vpop.f32.mrb[122].mxu0  ;;  %v6147_v42 = vpop.f32.mrb[12].mxu1 }
 0x1ed   :  { %v4658_v43 = vsel %vm4657_vm2, %v4146_v33, %v4139_v7  ;;  %v4151_v45 = vadd.f32 %v4150_v54, %v4149_v23  ;;  %v4155_v46 = vrot.slane %v4154_v35, 4  ;;  %v4012_v44 = vadd.f32 %v4011_v37, %v4010_v14  ;;  %v1377_v59 = vpop.f32.mrb[123].mxu0  ;;  %v3042_v47 = vpop.f32.mrb[13].mxu1 }
 0x1ee   :  { %v2510_v48 = vmax.f32 %v2382_v38, 0.0  ;;  %3757 = vst.msk [vmem:[%s8199_s10 + $0x40] sm:$0xff] %vm2531_vm1, %v3629_v40  ;;  %v3884_v51 = vsel %vm2531_vm1, %v3629_v40, 0.0  ;;  %v2385_v52 = vadd.f32 %v6960_v10, %v2255_v32  ;;  %v3038_v53 = vadd.f32 %v6144_v21, %v7096_v30 }
 0x1ef   :  { %v4152_v55 = vrot.slane %v4151_v45, 1  ;;  %v4156_v56 = vadd.f32 %v4155_v46, %v4154_v35  ;;  %v3885_v57 = vadd.f32 %v3884_v51, %v3883_v34  ;;  %v4161_v49 = vadd.f32 %v4011_v37, %v3884_v51 }
 0x1f0   :  { %v2513_v60 = vmax.f32 %v2385_v52, 0.0  ;;  %v3632_v61 = vmax.f32 %v3038_v53, 0.0  ;;  %v2254_v62 = vadd.f32 %v7120_v58, %v1367_v26  ;;  %v3033_v63 = vadd.f32 %v7096_v30, %v3032_v27  ;;  %6304 = vmatprep.mubr.msk.f32.mxu1 %vm2531_vm1, %v2510_v48  ;;  %v6115_v0 = vpop.f32.mrb[124].mxu0  ;;  %v6150_v1 = vpop.f32.mrb[14].mxu1 }
 0x1f1   :  { %v4153_v3 = vadd.f32 %v4152_v55, %v4151_v45  ;;  %v4157_v4 = vrot.slane %v4156_v56, 2  ;;  %v4162_v6 = vrot.slane %v4161_v49, 4  ;;  %v2257_v8 = vadd.f32 %v6112_v41, %v7131_v2  ;;  %6305 = vmatmul.mubr.msk.f32.gmra.mrb[118].mxu1 %vm2531_vm1, %v2511_v36  ;;  %v1387_v5 = vpop.f32.mrb[125].mxu0  ;;  %v3052_v9 = vpop.f32.mrb[15].mxu1 }
 0x1f2   :  { %3760 = vst.msk [vmem:[%s8199_s10 + $0x58] sm:$0xff] %vm2531_vm1, %v3632_v61  ;;  %v4013_v58 = vsel %vm2531_vm1, %v3632_v61, 0.0  ;;  %v2384_v50 = vadd.f32 %v6966_v11, %v2254_v62  ;;  %v3631_v7 = vmax.f32 %v3033_v63, 0.0  ;;  %v3048_v12 = vadd.f32 %v6147_v42, %v7096_v30 }
 0x1f3   :  { %v7230_v13 = vsel %vm4659_vm3, %v4153_v3, %v4658_v43  ;;  %v4158_v14 = vadd.f32 %v4157_v4, %v4156_v56  ;;  %v4163_v15 = vadd.f32 %v4162_v6, %v4161_v49  ;;  %v4014_v16 = vadd.f32 %v4013_v58, %v4012_v44 }
 0x1f4   :  { %v2512_v18 = vmax.f32 %v2384_v50, 0.0  ;;  %3759 = vst.msk [vmem:[%s8199_s10 + $0x50] sm:$0xff] %vm2531_vm1, %v3631_v7  ;;  %v3886_v19 = vsel %vm2531_vm1, %v3631_v7, 0.0  ;;  %v2387_v20 = vadd.f32 %v6960_v10, %v2257_v8  ;;  %v3634_v21 = vmax.f32 %v3048_v12, 0.0  ;;  %v6118_v22 = vpop.f32.mrb[126].mxu0  ;;  %v6153_v23 = vpop.f32.mrb[16].mxu1 }
 0x1f5   :  { %v4159_v24 = vrot.slane %v4158_v14, 1  ;;  %v4164_v25 = vrot.slane %v4163_v15, 2  ;;  %v3887_v26 = vadd.f32 %v3886_v19, %v3885_v57  ;;  %v4168_v27 = vadd.f32 %v4013_v58, %v3886_v19  ;;  %v1397_v28 = vpop.f32.mrb[127].mxu0  ;;  %v3062_v29 = vpop.f32.mrb[17].mxu1 }
 0x1f6   :  { %v2515_v31 = vmax.f32 %v2387_v20, 0.0  ;;  %3762 = vst.msk [vmem:[%s8199_s10 + $0x68] sm:$0xff] %vm2531_vm1, %v3634_v21  ;;  %v4015_v32 = vsel %vm2531_vm1, %v3634_v21, 0.0  ;;  %v2256_v33 = vadd.f32 %v7131_v2, %v1377_v59  ;;  %v3043_v54 = vadd.f32 %v7096_v30, %v3042_v47  ;;  %6307 = vmatprep.mubr.msk.f32.mxu1 %vm2531_vm1, %v2512_v18 }
 0x1f7   :  { %v7246_v34 = vadd.f32 %v4159_v24, %v4158_v14  ;;  %v4165_v35 = vadd.f32 %v4164_v25, %v4163_v15  ;;  %v4169_v36 = vrot.slane %v4168_v27, 4  ;;  %v4016_v37 = vadd.f32 %v4015_v32, %v4014_v16  ;;  %6308 = vmatmul.mubr.msk.f32.gmra.mrb[120].mxu1 %vm2531_vm1, %v2513_v60 }
 0x1f8   :  { %v2386_v38 = vadd.f32 %v6966_v11, %v2256_v33  ;;  %v3633_v40 = vmax.f32 %v3043_v54, 0.0  ;;  %v2259_v41 = vadd.f32 %v6115_v0, %v7143_v17  ;;  %v3058_v42 = vadd.f32 %v6150_v1, %v7096_v30  ;;  %v6156_v43 = vpop.f32.mrb[18].mxu1 }
 0x1f9   :  { %v4166_v2 = vrot.slane %v4165_v35, 1  ;;  %v4170_v45 = vadd.f32 %v4169_v36, %v4168_v27  ;;  %v2258_v46 = vadd.f32 %v7143_v17, %v1387_v5  ;;  %v3053_v44 = vadd.f32 %v7096_v30, %v3052_v9  ;;  %v3072_v59 = vpop.f32.mrb[19].mxu1 }
 0x1fa   :  { %v2514_v47 = vmax.f32 %v2386_v38, 0.0  ;;  %3761 = vst.msk [vmem:[%s8199_s10 + $0x60] sm:$0xff] %vm2531_vm1, %v3633_v40  ;;  %v3888_v48 = vsel %vm2531_vm1, %v3633_v40, 0.0  ;;  %v2389_v51 = vadd.f32 %v6960_v10, %v2259_v41  ;;  %v3636_v52 = vmax.f32 %v3058_v42, 0.0 }
 0x1fb   :  { %v7260_v53 = vadd.f32 %v4166_v2, %v4165_v35  ;;  %v4171_v55 = vrot.slane %v4170_v45, 2  ;;  %v3889_v56 = vadd.f32 %v3888_v48, %v3887_v26  ;;  %v4175_v57 = vadd.f32 %v4015_v32, %v3888_v48 }
 0x1fc   :  { %v2517_v17 = vmax.f32 %v2389_v51, 0.0  ;;  %3764 = vst.msk [vmem:[%s8199_s10 + $0x78] sm:$0xff] %vm2531_vm1, %v3636_v52  ;;  %v4017_v49 = vsel %vm2531_vm1, %v3636_v52, 0.0  ;;  %v2388_v60 = vadd.f32 %v6966_v11, %v2258_v46  ;;  %v3635_v61 = vmax.f32 %v3053_v44, 0.0  ;;  %6310 = vmatprep.mubr.msk.f32.mxu1 %vm2531_vm1, %v2514_v47  ;;  %v6159_v62 = vpop.f32.mrb[20].mxu1 }
 0x1fd   :  { %v4172_v63 = vadd.f32 %v4171_v55, %v4170_v45  ;;  %v4176_v0 = vrot.slane %v4175_v57, 4  ;;  %v4018_v1 = vadd.f32 %v4017_v49, %v4016_v37  ;;  %v2261_v3 = vadd.f32 %v6118_v22, %v7163_v39  ;;  %6311 = vmatmul.mubr.msk.f32.gmra.mrb[122].mxu1 %vm2531_vm1, %v2515_v31  ;;  %v3082_v4 = vpop.f32.mrb[21].mxu1 }
 0x1fe   :  { %v2516_v6 = vmax.f32 %v2388_v60, 0.0  ;;  %3763 = vst.msk [vmem:[%s8199_s10 + $0x70] sm:$0xff] %vm2531_vm1, %v3635_v61  ;;  %v3890_v8 = vsel %vm2531_vm1, %v3635_v61, 0.0  ;;  %v3068_v5 = vadd.f32 %v6153_v23, %v7096_v30  ;;  %v2260_v9 = vadd.f32 %v7163_v39, %v1397_v28 }
 0x1ff   :  { %v4173_v58 = vrot.slane %v4172_v63, 1  ;;  %v4177_v50 = vadd.f32 %v4176_v0, %v4175_v57  ;;  %v3891_v7 = vadd.f32 %v3890_v8, %v3889_v56  ;;  %v4182_v12 = vadd.f32 %v4017_v49, %v3890_v8 }
 0x200   :  { %v2391_v14 = vadd.f32 %v6960_v10, %v2261_v3  ;;  %v3638_v15 = vmax.f32 %v3068_v5, 0.0  ;;  %v2390_v16 = vadd.f32 %v6966_v11, %v2260_v9  ;;  %v3063_v18 = vadd.f32 %v7096_v30, %v3062_v29  ;;  %6313 = vmatprep.mubr.msk.f32.mxu1 %vm2531_vm1, %v2516_v6  ;;  %v6162_v19 = vpop.f32.mrb[22].mxu1 }
 0x201   :  { %v7282_v20 = vadd.f32 %v4173_v58, %v4172_v63  ;;  %v4178_v21 = vrot.slane %v4177_v50, 2  ;;  %v4183_v22 = vrot.slane %v4182_v12, 4  ;;  %v3078_v39 = vadd.f32 %v6156_v43, %v7096_v30  ;;  %6314 = vmatmul.mubr.msk.f32.gmra.mrb[124].mxu1 %vm2531_vm1, %v2517_v17  ;;  %v3092_v23 = vpop.f32.mrb[23].mxu1 }
 0x202   :  { %v2519_v24 = vmax.f32 %v2391_v14, 0.0  ;;  %3766 = vst.msk [vmem:[%s8199_s10 + $0x88] sm:$0xff] %vm2531_vm1, %v3638_v15  ;;  %v4019_v10 = vsel %vm2531_vm1, %v3638_v15, 0.0  ;;  %v2518_v11 = vmax.f32 %v2390_v16, 0.0  ;;  %v3637_v25 = vmax.f32 %v3063_v18, 0.0 }
 0x203   :  { %v4179_v26 = vadd.f32 %v4178_v21, %v4177_v50  ;;  %v4184_v27 = vadd.f32 %v4183_v22, %v4182_v12  ;;  %v4020_v28 = vadd.f32 %v4019_v10, %v4018_v1  ;;  %v3640_v29 = vmax.f32 %v3078_v39, 0.0 }
 0x204   :  { %3765 = vst.msk [vmem:[%s8199_s10 + $0x80] sm:$0xff] %vm2531_vm1, %v3637_v25  ;;  %v3892_v31 = vsel %vm2531_vm1, %v3637_v25, 0.0  ;;  %v3073_v32 = vadd.f32 %v7096_v30, %v3072_v59  ;;  %v3088_v33 = vadd.f32 %v6159_v62, %v7096_v30  ;;  %6316 = vmatprep.mubr.msk.f32.mxu1 %vm2531_vm1, %v2518_v11  ;;  %v3083_v54 = vadd.f32 %v7096_v30, %v3082_v4  ;;  %v6165_v35 = vpop.f32.mrb[24].mxu1 }
 0x205   :  { %v4180_v36 = vrot.slane %v4179_v26, 1  ;;  %v4185_v37 = vrot.slane %v4184_v27, 2  ;;  %v3893_v38 = vadd.f32 %v3892_v31, %v3891_v7  ;;  %v4189_v40 = vadd.f32 %v4019_v10, %v3892_v31  ;;  %3768 = vst.msk [vmem:[%s8199_s10 + $0x98] sm:$0xff] %vm2531_vm1, %v3640_v29  ;;  %6317 = vmatmul.mubr.msk.f32.gmra.mrb[126].mxu1 %vm2531_vm1, %v2519_v24  ;;  %v3102_v41 = vpop.f32.mrb[25].mxu1 }
 0x206   :  { %v4021_v42 = vsel %vm2531_vm1, %v3640_v29, 0.0  ;;  %v3639_v43 = vmax.f32 %v3073_v32, 0.0  ;;  %v3642_v2 = vmax.f32 %v3088_v33, 0.0  ;;  %v3641_v45 = vmax.f32 %v3083_v54, 0.0 }
 0x207   :  { %v7306_v46 = vadd.f32 %v4180_v36, %v4179_v26  ;;  %v4186_v44 = vadd.f32 %v4185_v37, %v4184_v27  ;;  %v4190_v59 = vrot.slane %v4189_v40, 4  ;;  %v4022_v47 = vadd.f32 %v4021_v42, %v4020_v28 }
 0x208   :  { %3767 = vst.msk [vmem:[%s8199_s10 + $0x90] sm:$0xff] %vm2531_vm1, %v3639_v43  ;;  %v3894_v48 = vsel %vm2531_vm1, %v3639_v43, 0.0  ;;  %3770 = vst.msk [vmem:[%s8199_s10 + $0xa8] sm:$0xff] %vm2531_vm1, %v3642_v2  ;;  %v4023_v51 = vsel %vm2531_vm1, %v3642_v2, 0.0  ;;  %v3896_v52 = vsel %vm2531_vm1, %v3641_v45, 0.0  ;;  %v3098_v55 = vadd.f32 %v6162_v19, %v7096_v30  ;;  %v6168_v56 = vpop.f32.mrb[26].mxu1 }
 0x209   :  { %3769 = vst.msk [vmem:[%s8199_s10 + $0xa0] sm:$0xff] %vm2531_vm1, %v3641_v45  ;;  %v4191_v57 = vadd.f32 %v4190_v59, %v4189_v40  ;;  %v3895_v17 = vadd.f32 %v3894_v48, %v3893_v38  ;;  %v4196_v49 = vadd.f32 %v4021_v42, %v3894_v48  ;;  %v4024_v60 = vadd.f32 %v4023_v51, %v4022_v47  ;;  %v3112_v61 = vpop.f32.mrb[27].mxu1 }
 0x20a   :  { %v4203_v62 = vadd.f32 %v4023_v51, %v3896_v52  ;;  %v3644_v63 = vmax.f32 %v3098_v55, 0.0  ;;  %v3093_v0 = vadd.f32 %v7096_v30, %v3092_v23  ;;  %v3108_v1 = vadd.f32 %v6165_v35, %v7096_v30 }
 0x20b   :  { %v4192_v3 = vrot.slane %v4191_v57, 2  ;;  %v4197_v4 = vrot.slane %v4196_v49, 4  ;;  %v3897_v6 = vadd.f32 %v3896_v52, %v3895_v17  ;;  %v3103_v8 = vadd.f32 %v7096_v30, %v3102_v41 }
 0x20c   :  { %v4204_v5 = vrot.slane %v4203_v62, 4  ;;  %3772 = vst.msk [vmem:[%s8199_s10 + $0xb8] sm:$0xff] %vm2531_vm1, %v3644_v63  ;;  %v4025_v9 = vsel %vm2531_vm1, %v3644_v63, 0.0  ;;  %v3643_v58 = vmax.f32 %v3093_v0, 0.0  ;;  %v3646_v50 = vmax.f32 %v3108_v1, 0.0  ;;  %v6171_v7 = vpop.f32.mrb[28].mxu1 }
 0x20d   :  { %v4193_v12 = vadd.f32 %v4192_v3, %v4191_v57  ;;  %v4198_v14 = vadd.f32 %v4197_v4, %v4196_v49  ;;  %v4026_v15 = vadd.f32 %v4025_v9, %v4024_v60  ;;  %v3645_v16 = vmax.f32 %v3103_v8, 0.0  ;;  %v3122_v18 = vpop.f32.mrb[29].mxu1 }
 0x20e   :  { %v4205_v19 = vadd.f32 %v4204_v5, %v4203_v62  ;;  %3771 = vst.msk [vmem:[%s8199_s10 + $0xb0] sm:$0xff] %vm2531_vm1, %v3643_v58  ;;  %v3898_v21 = vsel %vm2531_vm1, %v3643_v58, 0.0  ;;  %3774 = vst.msk [vmem:[%s8199_s10 + $0xc8] sm:$0xff] %vm2531_vm1, %v3646_v50  ;;  %v4027_v22 = vsel %vm2531_vm1, %v3646_v50, 0.0  ;;  %v4187_v39 = vrot.slane %v4186_v44, 1 }
 0x20f   :  { %v4194_v23 = vrot.slane %v4193_v12, 1  ;;  %v4199_v24 = vrot.slane %v4198_v14, 2  ;;  %v3899_v10 = vadd.f32 %v3898_v21, %v3897_v6  ;;  %v4210_v11 = vadd.f32 %v4025_v9, %v3898_v21  ;;  %3773 = vst.msk [vmem:[%s8199_s10 + $0xc0] sm:$0xff] %vm2531_vm1, %v3645_v16 }
 0x210   :  { %v4206_v25 = vrot.slane %v4205_v19, 2  ;;  %v4028_v26 = vadd.f32 %v4027_v22, %v4026_v15  ;;  %v3900_v27 = vsel %vm2531_vm1, %v3645_v16, 0.0  ;;  %v4188_v28 = vadd.f32 %v4187_v39, %v4186_v44  ;;  %v6174_v29 = vpop.f32.mrb[30].mxu1 }
 0x211   :  { %v4195_v31 = vadd.f32 %v4194_v23, %v4193_v12  ;;  %v4200_v32 = vadd.f32 %v4199_v24, %v4198_v14  ;;  %v4211_v33 = vrot.slane %v4210_v11, 4  ;;  %v3901_v54 = vadd.f32 %v3900_v27, %v3899_v10  ;;  %v3132_v35 = vpop.f32.mrb[31].mxu1 }
 0x212   :  { %v4207_v36 = vadd.f32 %v4206_v25, %v4205_v19  ;;  %v4217_v37 = vadd.f32 %v4027_v22, %v3900_v27  ;;  %v4662_v38 = vsel %vm4661_vm4, %v7246_v34, %v7230_v13  ;;  %v3118_v40 = vadd.f32 %v6168_v56, %v7096_v30 }
 0x213   :  { %v4201_v41 = vrot.slane %v4200_v32, 1  ;;  %v4212_v42 = vadd.f32 %v4211_v33, %v4210_v11  ;;  %v4664_v43 = vsel %vm4663_vm5, %v7260_v53, %v4662_v38  ;;  %v3113_v2 = vadd.f32 %v7096_v30, %v3112_v61 }
 0x214   :  { %v4208_v45 = vrot.slane %v4207_v36, 1  ;;  %v4218_v44 = vrot.slane %v4217_v37, 4  ;;  %v4666_v59 = vsel %vm4665_vm6, %v7282_v20, %v4664_v43  ;;  %v3648_v47 = vmax.f32 %v3118_v40, 0.0  ;;  %v6177_v48 = vpop.f32.mrb[32].mxu1 }
 0x215   :  { %v4202_v51 = vadd.f32 %v4201_v41, %v4200_v32  ;;  %v4213_v52 = vrot.slane %v4212_v42, 2  ;;  %v4668_v13 = vsel %vm4667_vm7, %v7306_v46, %v4666_v59  ;;  %v3647_v34 = vmax.f32 %v3113_v2, 0.0  ;;  %v3142_v55 = vpop.f32.mrb[33].mxu1 }
 0x216   :  { %v4209_v56 = vadd.f32 %v4208_v45, %v4207_v36  ;;  %v4219_v57 = vadd.f32 %v4218_v44, %v4217_v37  ;;  %v4670_v53 = vsel %vm4669_vm8, %v4188_v28, %v4668_v13  ;;  %3776 = vst.msk [vmem:[%s8199_s10 + $0xd8] sm:$0xff] %vm2531_vm1, %v3648_v47  ;;  %v4029_v20 = vsel %vm2531_vm1, %v3648_v47, 0.0 }
 0x217   :  { %v4671_v17 = vsel %vm4657_vm2, %v4202_v51, %v4195_v31  ;;  %v4214_v49 = vadd.f32 %v4213_v52, %v4212_v42  ;;  %6327 = vmatprep.mubr.msk.f32.mxu1 %vm2531_vm1, %v4670_v53  ;;  %v4030_v60 = vadd.f32 %v4029_v20, %v4028_v26  ;;  %3775 = vst.msk [vmem:[%s8199_s10 + $0xd0] sm:$0xff] %vm2531_vm1, %v3647_v34  ;;  %v3902_v46 = vsel %vm2531_vm1, %v3647_v34, 0.0 }
 0x218   :  { %v4672_v61 = vsel %vm4659_vm3, %v4209_v56, %v4671_v17  ;;  %v4220_v62 = vrot.slane %v4219_v57, 2  ;;  %v3903_v63 = vadd.f32 %v3902_v46, %v3901_v54  ;;  %v4224_v0 = vadd.f32 %v4029_v20, %v3902_v46  ;;  %v6180_v1 = vpop.f32.mrb[34].mxu1 }
 0x219   :  { %v4215_v3 = vrot.slane %v4214_v49, 1  ;;  %v3128_v4 = vadd.f32 %v6171_v7, %v7096_v30  ;;  %v3123_v6 = vadd.f32 %v7096_v30, %v3122_v18  ;;  %v3138_v8 = vadd.f32 %v6174_v29, %v7096_v30  ;;  %v3152_v5 = vpop.f32.mrb[35].mxu1 }
 0x21a   :  { %v4221_v9 = vadd.f32 %v4220_v62, %v4219_v57  ;;  %v4225_v58 = vrot.slane %v4224_v0, 4  ;;  %v3133_v50 = vadd.f32 %v7096_v30, %v3132_v35  ;;  %v3148_v12 = vadd.f32 %v6177_v48, %v7096_v30 }
 0x21b   :  { %v4216_v14 = vadd.f32 %v4215_v3, %v4214_v49  ;;  %v3650_v15 = vmax.f32 %v3128_v4, 0.0  ;;  %v3649_v16 = vmax.f32 %v3123_v6, 0.0  ;;  %v3652_v19 = vmax.f32 %v3138_v8, 0.0 }
 0x21c   :  { %v4222_v21 = vrot.slane %v4221_v9, 1  ;;  %v4226_v22 = vadd.f32 %v4225_v58, %v4224_v0  ;;  %v3651_v39 = vmax.f32 %v3133_v50, 0.0  ;;  %v3654_v23 = vmax.f32 %v3148_v12, 0.0  ;;  %v6183_v7 = vpop.f32.mrb[36].mxu1 }
 0x21d   :  { %v4673_v18 = vsel %vm4661_vm4, %v4216_v14, %v4672_v61  ;;  %3778 = vst.msk [vmem:[%s8199_s10 + $0xe8] sm:$0xff] %vm2531_vm1, %v3650_v15  ;;  %v4031_v24 = vsel %vm2531_vm1, %v3650_v15, 0.0  ;;  %3777 = vst.msk [vmem:[%s8199_s10 + $0xe0] sm:$0xff] %vm2531_vm1, %v3649_v16  ;;  %v3904_v10 = vsel %vm2531_vm1, %v3649_v16, 0.0  ;;  %v4033_v11 = vsel %vm2531_vm1, %v3652_v19, 0.0  ;;  %v3162_v25 = vpop.f32.mrb[37].mxu1 }
 0x21e   :  { %3780 = vst.msk [vmem:[%s8199_s10 + $0xf8] sm:$0xff] %vm2531_vm1, %v3652_v19  ;;  %v4223_v26 = vadd.f32 %v4222_v21, %v4221_v9  ;;  %v4227_v27 = vrot.slane %v4226_v22, 2  ;;  %v4032_v28 = vadd.f32 %v4031_v24, %v4030_v60  ;;  %v3905_v29 = vadd.f32 %v3904_v10, %v3903_v63  ;;  %3779 = vst.msk [vmem:[%s8199_s10 + $0xf0] sm:$0xff] %vm2531_vm1, %v3651_v39 }
 0x21f   :  { %3782 = vst.msk [vmem:[%s8199_s10 + $0x108] sm:$0xff] %vm2531_vm1, %v3654_v23  ;;  %v4231_v31 = vadd.f32 %v4031_v24, %v3904_v10  ;;  %v3906_v32 = vsel %vm2531_vm1, %v3651_v39, 0.0  ;;  %v4035_v33 = vsel %vm2531_vm1, %v3654_v23, 0.0  ;;  %v3143_v54 = vadd.f32 %v7096_v30, %v3142_v55 }
 0x220   :  { %v7405_v35 = vsel %vm4663_vm5, %v4223_v26, %v4673_v18  ;;  %v4228_v36 = vadd.f32 %v4227_v27, %v4226_v22  ;;  %v4034_v37 = vadd.f32 %v4033_v11, %v4032_v28  ;;  %v3907_v38 = vadd.f32 %v3906_v32, %v3905_v29  ;;  %v6186_v40 = vpop.f32.mrb[38].mxu1 }
 0x221   :  { %v4232_v41 = vrot.slane %v4231_v31, 4  ;;  %v4238_v42 = vadd.f32 %v4033_v11, %v3906_v32  ;;  %v3653_v43 = vmax.f32 %v3143_v54, 0.0  ;;  %v3158_v2 = vadd.f32 %v6180_v1, %v7096_v30  ;;  %v3172_v45 = vpop.f32.mrb[39].mxu1 }
 0x222   :  { %v4229_v44 = vrot.slane %v4228_v36, 1  ;;  %v4036_v59 = vadd.f32 %v4035_v33, %v4034_v37  ;;  %v3153_v47 = vadd.f32 %v7096_v30, %v3152_v5  ;;  %v3168_v48 = vadd.f32 %v6183_v7, %v7096_v30 }
 0x223   :  { %v4233_v51 = vadd.f32 %v4232_v41, %v4231_v31  ;;  %v4239_v52 = vrot.slane %v4238_v42, 4  ;;  %3781 = vst.msk [vmem:[%s8199_s10 + $0x100] sm:$0xff] %vm2531_vm1, %v3653_v43  ;;  %v3908_v13 = vsel %vm2531_vm1, %v3653_v43, 0.0  ;;  %v3656_v34 = vmax.f32 %v3158_v2, 0.0 }
 0x224   :  { %v7415_v55 = vadd.f32 %v4229_v44, %v4228_v36  ;;  %v3909_v56 = vadd.f32 %v3908_v13, %v3907_v38  ;;  %v4245_v57 = vadd.f32 %v4035_v33, %v3908_v13  ;;  %v3655_v53 = vmax.f32 %v3153_v47, 0.0  ;;  %v6189_v20 = vpop.f32.mrb[40].mxu1 }
 0x225   :  { %v4234_v17 = vrot.slane %v4233_v51, 2  ;;  %v4240_v49 = vadd.f32 %v4239_v52, %v4238_v42  ;;  %3784 = vst.msk [vmem:[%s8199_s10 + $0x118] sm:$0xff] %vm2531_vm1, %v3656_v34  ;;  %v4037_v60 = vsel %vm2531_vm1, %v3656_v34, 0.0  ;;  %v3658_v46 = vmax.f32 %v3168_v48, 0.0  ;;  %v3182_v61 = vpop.f32.mrb[41].mxu1 }
 0x226   :  { %v4246_v62 = vrot.slane %v4245_v57, 4  ;;  %v4038_v63 = vadd.f32 %v4037_v60, %v4036_v59  ;;  %3783 = vst.msk [vmem:[%s8199_s10 + $0x110] sm:$0xff] %vm2531_vm1, %v3655_v53  ;;  %v3910_v0 = vsel %vm2531_vm1, %v3655_v53, 0.0  ;;  %v3163_v1 = vadd.f32 %v7096_v30, %v3162_v25 }
 0x227   :  { %v4235_v3 = vadd.f32 %v4234_v17, %v4233_v51  ;;  %v4241_v4 = vrot.slane %v4240_v49, 2  ;;  %v3911_v6 = vadd.f32 %v3910_v0, %v3909_v56  ;;  %v4252_v8 = vadd.f32 %v4037_v60, %v3910_v0  ;;  %3786 = vst.msk [vmem:[%s8199_s10 + $0x128] sm:$0xff] %vm2531_vm1, %v3658_v46 }
 0x228   :  { %v4247_v5 = vadd.f32 %v4246_v62, %v4245_v57  ;;  %v4039_v9 = vsel %vm2531_vm1, %v3658_v46, 0.0  ;;  %v3657_v58 = vmax.f32 %v3163_v1, 0.0  ;;  %v3178_v50 = vadd.f32 %v6186_v40, %v7096_v30  ;;  %v6192_v12 = vpop.f32.mrb[42].mxu1 }
 0x229   :  { %v4236_v14 = vrot.slane %v4235_v3, 1  ;;  %v4242_v15 = vadd.f32 %v4241_v4, %v4240_v49  ;;  %v4253_v16 = vrot.slane %v4252_v8, 4  ;;  %v4040_v19 = vadd.f32 %v4039_v9, %v4038_v63  ;;  %v3192_v21 = vpop.f32.mrb[43].mxu1 }
 0x22a   :  { %v4248_v22 = vrot.slane %v4247_v5, 2  ;;  %3785 = vst.msk [vmem:[%s8199_s10 + $0x120] sm:$0xff] %vm2531_vm1, %v3657_v58  ;;  %v3912_v39 = vsel %vm2531_vm1, %v3657_v58, 0.0  ;;  %v3660_v23 = vmax.f32 %v3178_v50, 0.0  ;;  %v3173_v7 = vadd.f32 %v7096_v30, %v3172_v45 }
 0x22b   :  { %v4237_v18 = vadd.f32 %v4236_v14, %v4235_v3  ;;  %v4243_v24 = vrot.slane %v4242_v15, 1  ;;  %v4254_v10 = vadd.f32 %v4253_v16, %v4252_v8  ;;  %v3913_v11 = vadd.f32 %v3912_v39, %v3911_v6 }
 0x22c   :  { %v4249_v25 = vadd.f32 %v4248_v22, %v4247_v5  ;;  %v4259_v26 = vadd.f32 %v4039_v9, %v3912_v39  ;;  %3788 = vst.msk [vmem:[%s8199_s10 + $0x138] sm:$0xff] %vm2531_vm1, %v3660_v23  ;;  %v4041_v27 = vsel %vm2531_vm1, %v3660_v23, 0.0  ;;  %v3659_v28 = vmax.f32 %v3173_v7, 0.0  ;;  %v6195_v29 = vpop.f32.mrb[44].mxu1 }
 0x22d   :  { %v4244_v31 = vadd.f32 %v4243_v24, %v4242_v15  ;;  %v4255_v32 = vrot.slane %v4254_v10, 2  ;;  %v4042_v33 = vadd.f32 %v4041_v27, %v4040_v19  ;;  %v3188_v54 = vadd.f32 %v6189_v20, %v7096_v30  ;;  %v3202_v36 = vpop.f32.mrb[45].mxu1 }
 0x22e   :  { %v4250_v37 = vrot.slane %v4249_v25, 1  ;;  %v4260_v38 = vrot.slane %v4259_v26, 4  ;;  %3787 = vst.msk [vmem:[%s8199_s10 + $0x130] sm:$0xff] %vm2531_vm1, %v3659_v28  ;;  %v3914_v40 = vsel %vm2531_vm1, %v3659_v28, 0.0  ;;  %v3183_v41 = vadd.f32 %v7096_v30, %v3182_v61  ;;  %v7471_v61 = vld [vmem:[%s8195_s6] ss:$0 sm:$0xff] }
 0x22f   :  { %v4256_v42 = vadd.f32 %v4255_v32, %v4254_v10  ;;  %v3915_v43 = vadd.f32 %v3914_v40, %v3913_v11  ;;  %v4266_v2 = vadd.f32 %v4041_v27, %v3914_v40  ;;  %v3662_v45 = vmax.f32 %v3188_v54, 0.0 }
 0x230   :  { %v4251_v44 = vadd.f32 %v4250_v37, %v4249_v25  ;;  %v4261_v59 = vadd.f32 %v4260_v38, %v4259_v26  ;;  %v3661_v47 = vmax.f32 %v3183_v41, 0.0  ;;  %v4675_v48 = vsel %vm4665_vm6, %v7415_v55, %v7405_v35  ;;  %v6198_v51 = vpop.f32.mrb[46].mxu1 }
 0x231   :  { %v4257_v52 = vrot.slane %v4256_v42, 1  ;;  %v4267_v13 = vrot.slane %v4266_v2, 4  ;;  %3790 = vst.msk [vmem:[%s8199_s10 + $0x148] sm:$0xff] %vm2531_vm1, %v3662_v45  ;;  %v4043_v30 = vsel %vm2531_vm1, %v3662_v45, 0.0  ;;  %v4676_v34 = vsel %vm4667_vm7, %v4237_v18, %v4675_v48  ;;  %v3212_v56 = vpop.f32.mrb[47].mxu1 }
 0x232   :  { %v4262_v57 = vrot.slane %v4261_v59, 2  ;;  %v4044_v53 = vadd.f32 %v4043_v30, %v4042_v33  ;;  %3789 = vst.msk [vmem:[%s8199_s10 + $0x140] sm:$0xff] %vm2531_vm1, %v3661_v47  ;;  %v3916_v35 = vsel %vm2531_vm1, %v3661_v47, 0.0  ;;  %v4677_v55 = vsel %vm4669_vm8, %v4244_v31, %v4676_v34 }
 0x233   :  { %v4258_v20 = vadd.f32 %v4257_v52, %v4256_v42  ;;  %v4268_v17 = vadd.f32 %v4267_v13, %v4266_v2  ;;  %v3917_v49 = vadd.f32 %v3916_v35, %v3915_v43  ;;  %v4273_v60 = vadd.f32 %v4043_v30, %v3916_v35  ;;  %6328 = vmatmul.mubr.msk.f32.vlgmr.msra.gmra.mrb[128].mxu1 %vm2531_vm1, %v4677_v55 }
 0x234   :  { %v4263_v46 = vadd.f32 %v4262_v57, %v4261_v59  ;;  %v3198_v62 = vadd.f32 %v7471_v61, %v6192_v12  ;;  %v3193_v63 = vadd.f32 %v7471_v61, %v3192_v21  ;;  %v3208_v0 = vadd.f32 %v7471_v61, %v6195_v29  ;;  %v6201_v1 = vpop.f32.mrb[48].mxu1 }
 0x235   :  { %v4678_v3 = vsel %vm4657_vm2, %v4258_v20, %v4251_v44  ;;  %v4269_v4 = vrot.slane %v4268_v17, 2  ;;  %v4274_v6 = vrot.slane %v4273_v60, 4  ;;  %v3203_v8 = vadd.f32 %v7471_v61, %v3202_v36  ;;  %v3222_v5 = vpop.f32.mrb[49].mxu1 }
 0x236   :  { %v4264_v9 = vrot.slane %v4263_v46, 1  ;;  %v3664_v58 = vmax.f32 %v3198_v62, 0.0  ;;  %v3663_v50 = vmax.f32 %v3193_v63, 0.0  ;;  %v3666_v14 = vmax.f32 %v3208_v0, 0.0 }
 0x237   :  { %v4270_v15 = vadd.f32 %v4269_v4, %v4268_v17  ;;  %v4275_v16 = vadd.f32 %v4274_v6, %v4273_v60  ;;  %v3665_v19 = vmax.f32 %v3203_v8, 0.0  ;;  %v3218_v12 = vadd.f32 %v7471_v61, %v6198_v51 }
 0x238   :  { %v4265_v21 = vadd.f32 %v4264_v9, %v4263_v46  ;;  %3792 = vst.msk [vmem:[%s8199_s10 + $0x158] sm:$0xff] %vm2531_vm1, %v3664_v58  ;;  %v4045_v22 = vsel %vm2531_vm1, %v3664_v58, 0.0  ;;  %3791 = vst.msk [vmem:[%s8199_s10 + $0x150] sm:$0xff] %vm2531_vm1, %v3663_v50  ;;  %v3918_v39 = vsel %vm2531_vm1, %v3663_v50, 0.0  ;;  %v4047_v23 = vsel %vm2531_vm1, %v3666_v14, 0.0  ;;  %v6204_v7 = vpop.f32.mrb[50].mxu1 }
 0x239   :  { %3794 = vst.msk [vmem:[%s8199_s10 + $0x168] sm:$0xff] %vm2531_vm1, %v3666_v14  ;;  %v4271_v18 = vrot.slane %v4270_v15, 1  ;;  %v4276_v24 = vrot.slane %v4275_v16, 2  ;;  %v4046_v10 = vadd.f32 %v4045_v22, %v4044_v53  ;;  %v3919_v11 = vadd.f32 %v3918_v39, %v3917_v49  ;;  %3793 = vst.msk [vmem:[%s8199_s10 + $0x160] sm:$0xff] %vm2531_vm1, %v3665_v19  ;;  %v3232_v25 = vpop.f32.mrb[51].mxu1 }
 0x23a   :  { %v7499_v26 = vsel %vm4659_vm3, %v4265_v21, %v4678_v3  ;;  %v4280_v27 = vadd.f32 %v4045_v22, %v3918_v39  ;;  %v3920_v28 = vsel %vm2531_vm1, %v3665_v19, 0.0  ;;  %v3668_v29 = vmax.f32 %v3218_v12, 0.0 }
 0x23b   :  { %v7502_v31 = vadd.f32 %v4271_v18, %v4270_v15  ;;  %v4277_v32 = vadd.f32 %v4276_v24, %v4275_v16  ;;  %v4048_v33 = vadd.f32 %v4047_v23, %v4046_v10  ;;  %v3921_v54 = vadd.f32 %v3920_v28, %v3919_v11 }
 0x23c   :  { %v4281_v36 = vrot.slane %v4280_v27, 4  ;;  %v4287_v37 = vadd.f32 %v4047_v23, %v3920_v28  ;;  %3796 = vst.msk [vmem:[%s8199_s10 + $0x178] sm:$0xff] %vm2531_vm1, %v3668_v29  ;;  %v4049_v38 = vsel %vm2531_vm1, %v3668_v29, 0.0  ;;  %v3213_v40 = vadd.f32 %v7471_v61, %v3212_v56  ;;  %v6207_v41 = vpop.f32.mrb[52].mxu1 }
 0x23d   :  { %v4278_v42 = vrot.slane %v4277_v32, 1  ;;  %v4050_v43 = vadd.f32 %v4049_v38, %v4048_v33  ;;  %v3228_v2 = vadd.f32 %v7471_v61, %v6201_v1  ;;  %v3223_v45 = vadd.f32 %v7471_v61, %v3222_v5  ;;  %v3242_v44 = vpop.f32.mrb[53].mxu1 }
 0x23e   :  { %v4282_v59 = vadd.f32 %v4281_v36, %v4280_v27  ;;  %v4288_v47 = vrot.slane %v4287_v37, 4  ;;  %v3667_v48 = vmax.f32 %v3213_v40, 0.0  ;;  %v3238_v51 = vadd.f32 %v7471_v61, %v6204_v7 }
 0x23f   :  { %v7513_v52 = vadd.f32 %v4278_v42, %v4277_v32  ;;  %v3670_v13 = vmax.f32 %v3228_v2, 0.0  ;;  %v3669_v30 = vmax.f32 %v3223_v45, 0.0  ;;  %v3233_v34 = vadd.f32 %v7471_v61, %v3232_v25 }
 0x240   :  { %v4283_v56 = vrot.slane %v4282_v59, 2  ;;  %v4289_v57 = vadd.f32 %v4288_v47, %v4287_v37  ;;  %3795 = vst.msk [vmem:[%s8199_s10 + $0x170] sm:$0xff] %vm2531_vm1, %v3667_v48  ;;  %v3922_v53 = vsel %vm2531_vm1, %v3667_v48, 0.0  ;;  %v3672_v35 = vmax.f32 %v3238_v51, 0.0  ;;  %v6210_v55 = vpop.f32.mrb[54].mxu1 }
 0x241   :  { %v3923_v20 = vadd.f32 %v3922_v53, %v3921_v54  ;;  %v4294_v17 = vadd.f32 %v4049_v38, %v3922_v53  ;;  %3798 = vst.msk [vmem:[%s8199_s10 + $0x188] sm:$0xff] %vm2531_vm1, %v3670_v13  ;;  %v4051_v49 = vsel %vm2531_vm1, %v3670_v13, 0.0  ;;  %3797 = vst.msk [vmem:[%s8199_s10 + $0x180] sm:$0xff] %vm2531_vm1, %v3669_v30  ;;  %v3924_v60 = vsel %vm2531_vm1, %v3669_v30, 0.0  ;;  %v3252_v46 = vpop.f32.mrb[55].mxu1 }
 0x242   :  { %v4284_v62 = vadd.f32 %v4283_v56, %v4282_v59  ;;  %v4290_v63 = vrot.slane %v4289_v57, 2  ;;  %v4052_v0 = vadd.f32 %v4051_v49, %v4050_v43  ;;  %v4301_v1 = vadd.f32 %v4051_v49, %v3924_v60  ;;  %3800 = vst.msk [vmem:[%s8199_s10 + $0x198] sm:$0xff] %vm2531_vm1, %v3672_v35 }
 0x243   :  { %v4295_v3 = vrot.slane %v4294_v17, 4  ;;  %v3925_v4 = vadd.f32 %v3924_v60, %v3923_v20  ;;  %v4053_v6 = vsel %vm2531_vm1, %v3672_v35, 0.0  ;;  %v3671_v8 = vmax.f32 %v3233_v34, 0.0 }
 0x244   :  { %v4285_v5 = vrot.slane %v4284_v62, 1  ;;  %v4291_v9 = vadd.f32 %v4290_v63, %v4289_v57  ;;  %v4302_v58 = vrot.slane %v4301_v1, 4  ;;  %v4054_v50 = vadd.f32 %v4053_v6, %v4052_v0  ;;  %v6213_v14 = vpop.f32.mrb[56].mxu1 }
 0x245   :  { %v4296_v15 = vadd.f32 %v4295_v3, %v4294_v17  ;;  %3799 = vst.msk [vmem:[%s8199_s10 + $0x190] sm:$0xff] %vm2531_vm1, %v3671_v8  ;;  %v3926_v16 = vsel %vm2531_vm1, %v3671_v8, 0.0  ;;  %v3248_v19 = vadd.f32 %v7471_v61, %v6207_v41  ;;  %v3243_v12 = vadd.f32 %v7471_v61, %v3242_v44  ;;  %v3262_v21 = vpop.f32.mrb[57].mxu1 }
 0x246   :  { %v7543_v22 = vadd.f32 %v4285_v5, %v4284_v62  ;;  %v4292_v39 = vrot.slane %v4291_v9, 1  ;;  %v4303_v23 = vadd.f32 %v4302_v58, %v4301_v1  ;;  %v3927_v7 = vadd.f32 %v3926_v16, %v3925_v4 }
 0x247   :  { %v4297_v18 = vrot.slane %v4296_v15, 2  ;;  %v4308_v24 = vadd.f32 %v4053_v6, %v3926_v16  ;;  %v3674_v10 = vmax.f32 %v3248_v19, 0.0  ;;  %v3673_v11 = vmax.f32 %v3243_v12, 0.0 }
 0x248   :  { %v4293_v25 = vadd.f32 %v4292_v39, %v4291_v9  ;;  %v4304_v27 = vrot.slane %v4303_v23, 2  ;;  %v3258_v28 = vadd.f32 %v7471_v61, %v6210_v55  ;;  %v3253_v29 = vadd.f32 %v7471_v61, %v3252_v46  ;;  %v6216_v32 = vpop.f32.mrb[58].mxu1 }
 0x249   :  { %v4298_v33 = vadd.f32 %v4297_v18, %v4296_v15  ;;  %v4309_v54 = vrot.slane %v4308_v24, 4  ;;  %3802 = vst.msk [vmem:[%s8199_s10 + $0x1a8] sm:$0xff] %vm2531_vm1, %v3674_v10  ;;  %v4055_v36 = vsel %vm2531_vm1, %v3674_v10, 0.0  ;;  %3801 = vst.msk [vmem:[%s8199_s10 + $0x1a0] sm:$0xff] %vm2531_vm1, %v3673_v11  ;;  %v3928_v37 = vsel %vm2531_vm1, %v3673_v11, 0.0  ;;  %v3272_v38 = vpop.f32.mrb[59].mxu1 }
 0x24a   :  { %v4305_v40 = vadd.f32 %v4304_v27, %v4303_v23  ;;  %v4056_v41 = vadd.f32 %v4055_v36, %v4054_v50  ;;  %v3929_v42 = vadd.f32 %v3928_v37, %v3927_v7  ;;  %v4315_v43 = vadd.f32 %v4055_v36, %v3928_v37 }
 0x24b   :  { %v4310_v2 = vadd.f32 %v4309_v54, %v4308_v24  ;;  %v3676_v45 = vmax.f32 %v3258_v28, 0.0  ;;  %v3675_v44 = vmax.f32 %v3253_v29, 0.0  ;;  %v3268_v59 = vadd.f32 %v7471_v61, %v6213_v14 }
 0x24c   :  { %v4306_v47 = vrot.slane %v4305_v40, 1  ;;  %v4316_v48 = vrot.slane %v4315_v43, 4  ;;  %v3263_v51 = vadd.f32 %v7471_v61, %v3262_v21  ;;  %v4299_v13 = vrot.slane %v4298_v33, 1  ;;  %v6219_v30 = vpop.f32.mrb[60].mxu1 }
 0x24d   :  { %v4311_v34 = vrot.slane %v4310_v2, 2  ;;  %3804 = vst.msk [vmem:[%s8199_s10 + $0x1b8] sm:$0xff] %vm2531_vm1, %v3676_v45  ;;  %v4057_v56 = vsel %vm2531_vm1, %v3676_v45, 0.0  ;;  %3803 = vst.msk [vmem:[%s8199_s10 + $0x1b0] sm:$0xff] %vm2531_vm1, %v3675_v44  ;;  %v3930_v57 = vsel %vm2531_vm1, %v3675_v44, 0.0  ;;  %v3678_v53 = vmax.f32 %v3268_v59, 0.0 }
 0x24e   :  { %v3282_v35 = vpop.f32.mrb[61].mxu1  ;;  %v4307_v55 = vadd.f32 %v4306_v47, %v4305_v40  ;;  %v4317_v20 = vadd.f32 %v4316_v48, %v4315_v43  ;;  %v4058_v17 = vadd.f32 %v4057_v56, %v4056_v41  ;;  %v3931_v49 = vadd.f32 %v3930_v57, %v3929_v42 }
 0x24f   :  { %v4312_v60 = vadd.f32 %v4311_v34, %v4310_v2  ;;  %v4322_v46 = vadd.f32 %v4057_v56, %v3930_v57  ;;  %3806 = vst.msk [vmem:[%s8199_s10 + $0x1c8] sm:$0xff] %vm2531_vm1, %v3678_v53  ;;  %v4059_v62 = vsel %vm2531_vm1, %v3678_v53, 0.0  ;;  %v3677_v63 = vmax.f32 %v3263_v51, 0.0 }
 0x250   :  { %v4318_v0 = vrot.slane %v4317_v20, 2  ;;  %v4060_v1 = vadd.f32 %v4059_v62, %v4058_v17  ;;  %v4300_v3 = vadd.f32 %v4299_v13, %v4298_v33  ;;  %v4680_v4 = vsel %vm4661_vm4, %v7502_v31, %v7499_v26  ;;  %v6222_v6 = vpop.f32.mrb[62].mxu1 }
 0x251   :  { %v4313_v8 = vrot.slane %v4312_v60, 1  ;;  %v4323_v5 = vrot.slane %v4322_v46, 4  ;;  %3805 = vst.msk [vmem:[%s8199_s10 + $0x1c0] sm:$0xff] %vm2531_vm1, %v3677_v63  ;;  %v3932_v9 = vsel %vm2531_vm1, %v3677_v63, 0.0  ;;  %v4681_v58 = vsel %vm4663_vm5, %v7513_v52, %v4680_v4  ;;  %v3292_v50 = vpop.f32.mrb[63].mxu1 }
 0x252   :  { %v4319_v14 = vadd.f32 %v4318_v0, %v4317_v20  ;;  %v3933_v15 = vadd.f32 %v3932_v9, %v3931_v49  ;;  %v4329_v16 = vadd.f32 %v4059_v62, %v3932_v9  ;;  %v4682_v26 = vsel %vm4665_vm6, %v7543_v22, %v4681_v58 }
 0x253   :  { %v4314_v31 = vadd.f32 %v4313_v8, %v4312_v60  ;;  %v4324_v19 = vadd.f32 %v4323_v5, %v4322_v46  ;;  %v4683_v12 = vsel %vm4667_vm7, %v4293_v25, %v4682_v26  ;;  %v3278_v21 = vadd.f32 %v7471_v61, %v6216_v32 }
 0x254   :  { %v4320_v39 = vrot.slane %v4319_v14, 1  ;;  %v4330_v23 = vrot.slane %v4329_v16, 4  ;;  %v4684_v7 = vsel %vm4669_vm8, %v4300_v3, %v4683_v12  ;;  %v3273_v18 = vadd.f32 %v7471_v61, %v3272_v38  ;;  %v6225_v52 = vpop.f32.mrb[64].mxu1 }
 0x255   :  { %v4685_v24 = vsel %vm4657_vm2, %v4314_v31, %v4307_v55  ;;  %v4325_v10 = vrot.slane %v4324_v19, 2  ;;  %6330 = vmatprep.mubr.msk.f32.mxu1 %vm2531_vm1, %v4684_v7  ;;  %v3680_v11 = vmax.f32 %v3278_v21, 0.0  ;;  %v3288_v22 = vadd.f32 %v7471_v61, %v6219_v30  ;;  %v3302_v27 = vpop.f32.mrb[65].mxu1 }
 0x256   :  { %v4321_v28 = vadd.f32 %v4320_v39, %v4319_v14  ;;  %v4331_v25 = vadd.f32 %v4330_v23, %v4329_v16  ;;  %v3679_v29 = vmax.f32 %v3273_v18, 0.0  ;;  %v3283_v32 = vadd.f32 %v7471_v61, %v3282_v35 }
 0x257   :  { %v4326_v33 = vadd.f32 %v4325_v10, %v4324_v19  ;;  %3808 = vst.msk [vmem:[%s8199_s10 + $0x1d8] sm:$0xff] %vm2531_vm1, %v3680_v11  ;;  %v4061_v54 = vsel %vm2531_vm1, %v3680_v11, 0.0  ;;  %v3682_v36 = vmax.f32 %v3288_v22, 0.0  ;;  %v3298_v37 = vadd.f32 %v7471_v61, %v6222_v6 }
 0x258   :  { %v7601_v38 = vsel %vm4659_vm3, %v4321_v28, %v4685_v24  ;;  %v4332_v40 = vrot.slane %v4331_v25, 2  ;;  %v4062_v41 = vadd.f32 %v4061_v54, %v4060_v1  ;;  %3807 = vst.msk [vmem:[%s8199_s10 + $0x1d0] sm:$0xff] %vm2531_vm1, %v3679_v29  ;;  %v3934_v42 = vsel %vm2531_vm1, %v3679_v29, 0.0  ;;  %v6228_v43 = vpop.f32.mrb[66].mxu1 }
 0x259   :  { %v4327_v2 = vrot.slane %v4326_v33, 1  ;;  %v3935_v45 = vadd.f32 %v3934_v42, %v3933_v15  ;;  %v4336_v44 = vadd.f32 %v4061_v54, %v3934_v42  ;;  %3810 = vst.msk [vmem:[%s8199_s10 + $0x1e8] sm:$0xff] %vm2531_vm1, %v3682_v36  ;;  %v4063_v59 = vsel %vm2531_vm1, %v3682_v36, 0.0  ;;  %v3312_v47 = vpop.f32.mrb[67].mxu1 }
 0x25a   :  { %v4333_v48 = vadd.f32 %v4332_v40, %v4331_v25  ;;  %v4064_v51 = vadd.f32 %v4063_v59, %v4062_v41  ;;  %v3681_v13 = vmax.f32 %v3283_v32, 0.0  ;;  %v3684_v30 = vmax.f32 %v3298_v37, 0.0 }
 0x25b   :  { %v7613_v34 = vadd.f32 %v4327_v2, %v4326_v33  ;;  %v4337_v56 = vrot.slane %v4336_v44, 4  ;;  %v3293_v57 = vadd.f32 %v7471_v61, %v3292_v50  ;;  %v3308_v53 = vadd.f32 %v7471_v61, %v6225_v52 }
 0x25c   :  { %v4334_v35 = vrot.slane %v4333_v48, 1  ;;  %3809 = vst.msk [vmem:[%s8199_s10 + $0x1e0] sm:$0xff] %vm2531_vm1, %v3681_v13  ;;  %v3936_v55 = vsel %vm2531_vm1, %v3681_v13, 0.0  ;;  %3812 = vst.msk [vmem:[%s8199_s10 + $0x1f8] sm:$0xff] %vm2531_vm1, %v3684_v30  ;;  %v4065_v20 = vsel %vm2531_vm1, %v3684_v30, 0.0  ;;  %v3303_v17 = vadd.f32 %v7471_v61, %v3302_v27  ;;  %v6231_v49 = vpop.f32.mrb[68].mxu1 }
 0x25d   :  { %v4338_v60 = vadd.f32 %v4337_v56, %v4336_v44  ;;  %v3937_v46 = vadd.f32 %v3936_v55, %v3935_v45  ;;  %v4343_v62 = vadd.f32 %v4063_v59, %v3936_v55  ;;  %v4066_v63 = vadd.f32 %v4065_v20, %v4064_v51  ;;  %v3322_v0 = vpop.f32.mrb[69].mxu1 }
 0x25e   :  { %v7628_v1 = vadd.f32 %v4334_v35, %v4333_v48  ;;  %v3683_v3 = vmax.f32 %v3293_v57, 0.0  ;;  %v3686_v4 = vmax.f32 %v3308_v53, 0.0  ;;  %v3685_v6 = vmax.f32 %v3303_v17, 0.0 }
 0x25f   :  { %v4339_v8 = vrot.slane %v4338_v60, 2  ;;  %v4344_v5 = vrot.slane %v4343_v62, 4  ;;  %v3318_v9 = vadd.f32 %v7471_v61, %v6228_v43  ;;  %v3313_v58 = vadd.f32 %v7471_v61, %v3312_v47 }
 0x260   :  { %3811 = vst.msk [vmem:[%s8199_s10 + $0x1f0] sm:$0xff] %vm2531_vm1, %v3683_v3  ;;  %v3938_v50 = vsel %vm2531_vm1, %v3683_v3, 0.0  ;;  %3814 = vst.msk [vmem:[%s8199_s10 + $0x208] sm:$0xff] %vm2531_vm1, %v3686_v4  ;;  %v4067_v14 = vsel %vm2531_vm1, %v3686_v4, 0.0  ;;  %v3940_v15 = vsel %vm2531_vm1, %v3685_v6, 0.0  ;;  %v3328_v16 = vadd.f32 %v7471_v61, %v6231_v49  ;;  %v6234_v26 = vpop.f32.mrb[70].mxu1 }
 0x261   :  { %3813 = vst.msk [vmem:[%s8199_s10 + $0x200] sm:$0xff] %vm2531_vm1, %v3685_v6  ;;  %v4340_v31 = vadd.f32 %v4339_v8, %v4338_v60  ;;  %v4345_v19 = vadd.f32 %v4344_v5, %v4343_v62  ;;  %v3939_v12 = vadd.f32 %v3938_v50, %v3937_v46  ;;  %v4350_v21 = vadd.f32 %v4065_v20, %v3938_v50  ;;  %v3332_v39 = vpop.f32.mrb[71].mxu1 }
 0x262   :  { %v4068_v23 = vadd.f32 %v4067_v14, %v4066_v63  ;;  %v4357_v7 = vadd.f32 %v4067_v14, %v3940_v15  ;;  %v3688_v18 = vmax.f32 %v3318_v9, 0.0  ;;  %v3687_v52 = vmax.f32 %v3313_v58, 0.0 }
 0x263   :  { %v4341_v24 = vrot.slane %v4340_v31, 1  ;;  %v4346_v10 = vrot.slane %v4345_v19, 2  ;;  %v4351_v11 = vrot.slane %v4350_v21, 4  ;;  %v3941_v22 = vadd.f32 %v3940_v15, %v3939_v12 }
 0x264   :  { %v4358_v27 = vrot.slane %v4357_v7, 4  ;;  %3816 = vst.msk [vmem:[%s8199_s10 + $0x218] sm:$0xff] %vm2531_vm1, %v3688_v18  ;;  %v4069_v28 = vsel %vm2531_vm1, %v3688_v18, 0.0  ;;  %3815 = vst.msk [vmem:[%s8199_s10 + $0x210] sm:$0xff] %vm2531_vm1, %v3687_v52  ;;  %v3942_v25 = vsel %vm2531_vm1, %v3687_v52, 0.0  ;;  %v3690_v29 = vmax.f32 %v3328_v16, 0.0 }
 0x265   :  { %v6237_v32 = vpop.f32.mrb[72].mxu1  ;;  %v7658_v33 = vadd.f32 %v4341_v24, %v4340_v31  ;;  %v4347_v54 = vadd.f32 %v4346_v10, %v4345_v19  ;;  %v4352_v36 = vadd.f32 %v4351_v11, %v4350_v21  ;;  %v4070_v37 = vadd.f32 %v4069_v28, %v4068_v23 }
 0x266   :  { %v3342_v40 = vpop.f32.mrb[73].mxu1  ;;  %v4359_v41 = vadd.f32 %v4358_v27, %v4357_v7  ;;  %v3943_v42 = vadd.f32 %v3942_v25, %v3941_v22  ;;  %v4364_v43 = vadd.f32 %v4069_v28, %v3942_v25  ;;  %3818 = vst.msk [vmem:[%s8199_s10 + $0x228] sm:$0xff] %vm2531_vm1, %v3690_v29  ;;  %v4071_v2 = vsel %vm2531_vm1, %v3690_v29, 0.0 }
 0x267   :  { %v4348_v45 = vrot.slane %v4347_v54, 1  ;;  %v4353_v44 = vrot.slane %v4352_v36, 2  ;;  %v4072_v59 = vadd.f32 %v4071_v2, %v4070_v37  ;;  %v3323_v47 = vadd.f32 %v7471_v61, %v3322_v0 }
 0x268   :  { %v4360_v48 = vrot.slane %v4359_v41, 2  ;;  %v4365_v51 = vrot.slane %v4364_v43, 4  ;;  %v3338_v13 = vadd.f32 %v7471_v61, %v6234_v26  ;;  %v3333_v30 = vadd.f32 %v7471_v61, %v3332_v39  ;;  %v6240_v56 = vpop.f32.mrb[74].mxu1 }
 0x269   :  { %v4349_v57 = vadd.f32 %v4348_v45, %v4347_v54  ;;  %v4354_v53 = vadd.f32 %v4353_v44, %v4352_v36  ;;  %v3689_v35 = vmax.f32 %v3323_v47, 0.0  ;;  %v3348_v55 = vadd.f32 %v7471_v61, %v6237_v32  ;;  %v3352_v20 = vpop.f32.mrb[75].mxu1 }
 0x26a   :  { %v4361_v17 = vadd.f32 %v4360_v48, %v4359_v41  ;;  %v4366_v49 = vadd.f32 %v4365_v51, %v4364_v43  ;;  %v3692_v60 = vmax.f32 %v3338_v13, 0.0  ;;  %v3691_v46 = vmax.f32 %v3333_v30, 0.0 }
 0x26b   :  { %3817 = vst.msk [vmem:[%s8199_s10 + $0x220] sm:$0xff] %vm2531_vm1, %v3689_v35  ;;  %v3944_v62 = vsel %vm2531_vm1, %v3689_v35, 0.0  ;;  %v3694_v63 = vmax.f32 %v3348_v55, 0.0  ;;  %v3343_v0 = vadd.f32 %v7471_v61, %v3342_v40  ;;  %v4355_v3 = vrot.slane %v4354_v53, 1 }
 0x26c   :  { %v4362_v4 = vrot.slane %v4361_v17, 1  ;;  %v4367_v6 = vrot.slane %v4366_v49, 2  ;;  %v3945_v8 = vadd.f32 %v3944_v62, %v3943_v42  ;;  %v4371_v5 = vadd.f32 %v4071_v2, %v3944_v62  ;;  %3820 = vst.msk [vmem:[%s8199_s10 + $0x238] sm:$0xff] %vm2531_vm1, %v3692_v60  ;;  %3819 = vst.msk [vmem:[%s8199_s10 + $0x230] sm:$0xff] %vm2531_vm1, %v3691_v46  ;;  %v6243_v9 = vpop.f32.mrb[76].mxu1 }
 0x26d   :  { %v4073_v58 = vsel %vm2531_vm1, %v3692_v60, 0.0  ;;  %v3946_v50 = vsel %vm2531_vm1, %v3691_v46, 0.0  ;;  %3822 = vst.msk [vmem:[%s8199_s10 + $0x248] sm:$0xff] %vm2531_vm1, %v3694_v63  ;;  %v4075_v14 = vsel %vm2531_vm1, %v3694_v63, 0.0  ;;  %v3693_v15 = vmax.f32 %v3343_v0, 0.0  ;;  %v3362_v16 = vpop.f32.mrb[77].mxu1 }
 0x26e   :  { %v4363_v26 = vadd.f32 %v4362_v4, %v4361_v17  ;;  %v4368_v31 = vadd.f32 %v4367_v6, %v4366_v49  ;;  %v4372_v19 = vrot.slane %v4371_v5, 4  ;;  %v4074_v12 = vadd.f32 %v4073_v58, %v4072_v59 }
 0x26f   :  { %v3947_v21 = vadd.f32 %v3946_v50, %v3945_v8  ;;  %v4378_v39 = vadd.f32 %v4073_v58, %v3946_v50  ;;  %3821 = vst.msk [vmem:[%s8199_s10 + $0x240] sm:$0xff] %vm2531_vm1, %v3693_v15  ;;  %v3948_v23 = vsel %vm2531_vm1, %v3693_v15, 0.0  ;;  %v4356_v7 = vadd.f32 %v4355_v3, %v4354_v53 }
 0x270   :  { %v4369_v18 = vrot.slane %v4368_v31, 1  ;;  %v4373_v52 = vadd.f32 %v4372_v19, %v4371_v5  ;;  %v4076_v24 = vadd.f32 %v4075_v14, %v4074_v12  ;;  %v4385_v10 = vadd.f32 %v4075_v14, %v3948_v23  ;;  %v6246_v11 = vpop.f32.mrb[78].mxu1 }
 0x271   :  { %v4379_v22 = vrot.slane %v4378_v39, 4  ;;  %v3949_v27 = vadd.f32 %v3948_v23, %v3947_v21  ;;  %v4687_v28 = vsel %vm4661_vm4, %v7613_v34, %v7601_v38  ;;  %v3358_v25 = vadd.f32 %v7471_v61, %v6240_v56  ;;  %v3372_v29 = vpop.f32.mrb[79].mxu1 }
 0x272   :  { %v4370_v32 = vadd.f32 %v4369_v18, %v4368_v31  ;;  %v4374_v54 = vrot.slane %v4373_v52, 2  ;;  %v4386_v36 = vrot.slane %v4385_v10, 4  ;;  %v4688_v37 = vsel %vm4663_vm5, %v7628_v1, %v4687_v28 }
 0x273   :  { %v4380_v40 = vadd.f32 %v4379_v22, %v4378_v39  ;;  %v4689_v41 = vsel %vm4665_vm6, %v7658_v33, %v4688_v37  ;;  %v3696_v42 = vmax.f32 %v3358_v25, 0.0  ;;  %v3353_v43 = vadd.f32 %v7471_v61, %v3352_v20 }
 0x274   :  { %v4692_v2 = vsel %vm4657_vm2, %v4370_v32, %v4363_v26  ;;  %v4375_v45 = vadd.f32 %v4374_v54, %v4373_v52  ;;  %v4387_v38 = vadd.f32 %v4386_v36, %v4385_v10  ;;  %v4690_v34 = vsel %vm4667_vm7, %v4349_v57, %v4689_v41  ;;  %v6249_v44 = vpop.f32.mrb[80].mxu1 }
 0x275   :  { %v4381_v59 = vrot.slane %v4380_v40, 2  ;;  %v4691_v47 = vsel %vm4669_vm8, %v4356_v7, %v4690_v34  ;;  %3824 = vst.msk [vmem:[%s8199_s10 + $0x258] sm:$0xff] %vm2531_vm1, %v3696_v42  ;;  %v4077_v1 = vsel %vm2531_vm1, %v3696_v42, 0.0  ;;  %v3695_v33 = vmax.f32 %v3353_v43, 0.0  ;;  %v3382_v48 = vpop.f32.mrb[81].mxu1 }
 0x276   :  { %v4376_v51 = vrot.slane %v4375_v45, 1  ;;  %v4388_v13 = vrot.slane %v4387_v38, 2  ;;  %6331 = vmatmul.mubr.msk.f32.gmra.mrb[130].mxu1 %vm2531_vm1, %v4691_v47  ;;  %v4078_v30 = vadd.f32 %v4077_v1, %v4076_v24  ;;  %v3368_v56 = vadd.f32 %v7471_v61, %v6243_v9 }
 0x277   :  { %v4382_v57 = vadd.f32 %v4381_v59, %v4380_v40  ;;  %3823 = vst.msk [vmem:[%s8199_s10 + $0x250] sm:$0xff] %vm2531_vm1, %v3695_v33  ;;  %v3950_v53 = vsel %vm2531_vm1, %v3695_v33, 0.0  ;;  %v3363_v35 = vadd.f32 %v7471_v61, %v3362_v16  ;;  %v3378_v55 = vadd.f32 %v7471_v61, %v6246_v11 }
 0x278   :  { %v4377_v20 = vadd.f32 %v4376_v51, %v4375_v45  ;;  %v4389_v17 = vadd.f32 %v4388_v13, %v4387_v38  ;;  %v3951_v49 = vadd.f32 %v3950_v53, %v3949_v27  ;;  %v4392_v60 = vadd.f32 %v4077_v1, %v3950_v53  ;;  %v6252_v46 = vpop.f32.mrb[82].mxu1 }
 0x279   :  { %v4383_v62 = vrot.slane %v4382_v57, 1  ;;  %v3698_v63 = vmax.f32 %v3368_v56, 0.0  ;;  %v3697_v0 = vmax.f32 %v3363_v35, 0.0  ;;  %v3700_v3 = vmax.f32 %v3378_v55, 0.0  ;;  %v3392_v4 = vpop.f32.mrb[83].mxu1 }
 0x27a   :  { %v7722_v6 = vsel %vm4659_vm3, %v4377_v20, %v4692_v2  ;;  %v4390_v8 = vrot.slane %v4389_v17, 1  ;;  %v4393_v5 = vrot.slane %v4392_v60, 4  ;;  %v3373_v9 = vadd.f32 %v7471_v61, %v3372_v29 }
 0x27b   :  { %v7725_v58 = vadd.f32 %v4383_v62, %v4382_v57  ;;  %3826 = vst.msk [vmem:[%s8199_s10 + $0x268] sm:$0xff] %vm2531_vm1, %v3698_v63  ;;  %v4079_v50 = vsel %vm2531_vm1, %v3698_v63, 0.0  ;;  %3825 = vst.msk [vmem:[%s8199_s10 + $0x260] sm:$0xff] %vm2531_vm1, %v3697_v0  ;;  %v3952_v14 = vsel %vm2531_vm1, %v3697_v0, 0.0  ;;  %v4081_v15 = vsel %vm2531_vm1, %v3700_v3, 0.0 }
 0x27c   :  { %3828 = vst.msk [vmem:[%s8199_s10 + $0x278] sm:$0xff] %vm2531_vm1, %v3700_v3  ;;  %v7742_v16 = vadd.f32 %v4390_v8, %v4389_v17  ;;  %v4394_v26 = vadd.f32 %v4393_v5, %v4392_v60  ;;  %v4080_v31 = vadd.f32 %v4079_v50, %v4078_v30  ;;  %v3953_v19 = vadd.f32 %v3952_v14, %v3951_v49  ;;  %v6255_v12 = vpop.f32.mrb[84].mxu1 }
 0x27d   :  { %v4399_v21 = vadd.f32 %v4079_v50, %v3952_v14  ;;  %v3699_v39 = vmax.f32 %v3373_v9, 0.0  ;;  %v3388_v23 = vadd.f32 %v7471_v61, %v6249_v44  ;;  %v3383_v7 = vadd.f32 %v7471_v61, %v3382_v48  ;;  %v3402_v18 = vpop.f32.mrb[85].mxu1 }
 0x27e   :  { %v4395_v52 = vrot.slane %v4394_v26, 2  ;;  %v4082_v24 = vadd.f32 %v4081_v15, %v4080_v31  ;;  %v3398_v10 = vadd.f32 %v7471_v61, %v6252_v46  ;;  %v3393_v11 = vadd.f32 %v7471_v61, %v3392_v4 }
 0x27f   :  { %v4400_v22 = vrot.slane %v4399_v21, 4  ;;  %3827 = vst.msk [vmem:[%s8199_s10 + $0x270] sm:$0xff] %vm2531_vm1, %v3699_v39  ;;  %v3954_v27 = vsel %vm2531_vm1, %v3699_v39, 0.0  ;;  %v3702_v28 = vmax.f32 %v3388_v23, 0.0  ;;  %v3701_v25 = vmax.f32 %v3383_v7, 0.0 }
 0x280   :  { %v4396_v29 = vadd.f32 %v4395_v52, %v4394_v26  ;;  %v3955_v32 = vadd.f32 %v3954_v27, %v3953_v19  ;;  %v4406_v54 = vadd.f32 %v4081_v15, %v3954_v27  ;;  %v3704_v36 = vmax.f32 %v3398_v10, 0.0  ;;  %v6258_v37 = vpop.f32.mrb[86].mxu1 }
 0x281   :  { %v4401_v40 = vadd.f32 %v4400_v22, %v4399_v21  ;;  %3830 = vst.msk [vmem:[%s8199_s10 + $0x288] sm:$0xff] %vm2531_vm1, %v3702_v28  ;;  %v4083_v41 = vsel %vm2531_vm1, %v3702_v28, 0.0  ;;  %3829 = vst.msk [vmem:[%s8199_s10 + $0x280] sm:$0xff] %vm2531_vm1, %v3701_v25  ;;  %v3956_v42 = vsel %vm2531_vm1, %v3701_v25, 0.0  ;;  %v3703_v43 = vmax.f32 %v3393_v11, 0.0  ;;  %v3412_v2 = vpop.f32.mrb[87].mxu1 }
 0x282   :  { %v4397_v45 = vrot.slane %v4396_v29, 1  ;;  %v4407_v38 = vrot.slane %v4406_v54, 4  ;;  %v4084_v34 = vadd.f32 %v4083_v41, %v4082_v24  ;;  %v3957_v44 = vadd.f32 %v3956_v42, %v3955_v32  ;;  %3832 = vst.msk [vmem:[%s8199_s10 + $0x298] sm:$0xff] %vm2531_vm1, %v3704_v36 }
 0x283   :  { %v4402_v59 = vrot.slane %v4401_v40, 2  ;;  %v4413_v47 = vadd.f32 %v4083_v41, %v3956_v42  ;;  %v4085_v1 = vsel %vm2531_vm1, %v3704_v36, 0.0  ;;  %3831 = vst.msk [vmem:[%s8199_s10 + $0x290] sm:$0xff] %vm2531_vm1, %v3703_v43  ;;  %v3958_v33 = vsel %vm2531_vm1, %v3703_v43, 0.0 }
 0x284   :  { %v7773_v48 = vadd.f32 %v4397_v45, %v4396_v29  ;;  %v4408_v51 = vadd.f32 %v4407_v38, %v4406_v54  ;;  %v4086_v13 = vadd.f32 %v4085_v1, %v4084_v34  ;;  %v3959_v30 = vadd.f32 %v3958_v33, %v3957_v44  ;;  %v6261_v56 = vpop.f32.mrb[88].mxu1 }
 0x285   :  { %v4403_v57 = vadd.f32 %v4402_v59, %v4401_v40  ;;  %v4414_v53 = vrot.slane %v4413_v47, 4  ;;  %v4420_v35 = vadd.f32 %v4085_v1, %v3958_v33  ;;  %v3408_v55 = vadd.f32 %v7471_v61, %v6255_v12  ;;  %v3422_v20 = vpop.f32.mrb[89].mxu1 }
 0x286   :  { %v4409_v17 = vrot.slane %v4408_v51, 2  ;;  %v3403_v49 = vadd.f32 %v7471_v61, %v3402_v18  ;;  %v3418_v60 = vadd.f32 %v7471_v61, %v6258_v37  ;;  %v3413_v46 = vadd.f32 %v7471_v61, %v3412_v2 }
 0x287   :  { %v4404_v62 = vrot.slane %v4403_v57, 1  ;;  %v4415_v63 = vadd.f32 %v4414_v53, %v4413_v47  ;;  %v4421_v0 = vrot.slane %v4420_v35, 4  ;;  %v3706_v3 = vmax.f32 %v3408_v55, 0.0 }
 0x288   :  { %v4410_v4 = vadd.f32 %v4409_v17, %v4408_v51  ;;  %v3705_v8 = vmax.f32 %v3403_v49, 0.0  ;;  %v3708_v5 = vmax.f32 %v3418_v60, 0.0  ;;  %v3707_v9 = vmax.f32 %v3413_v46, 0.0  ;;  %v6264_v50 = vpop.f32.mrb[90].mxu1 }
 0x289   :  { %v4405_v14 = vadd.f32 %v4404_v62, %v4403_v57  ;;  %v4416_v15 = vrot.slane %v4415_v63, 2  ;;  %v4422_v26 = vadd.f32 %v4421_v0, %v4420_v35  ;;  %3834 = vst.msk [vmem:[%s8199_s10 + $0x2a8] sm:$0xff] %vm2531_vm1, %v3706_v3  ;;  %v4087_v31 = vsel %vm2531_vm1, %v3706_v3, 0.0  ;;  %v3432_v19 = vpop.f32.mrb[91].mxu1 }
 0x28a   :  { %v4088_v12 = vadd.f32 %v4087_v31, %v4086_v13  ;;  %3833 = vst.msk [vmem:[%s8199_s10 + $0x2a0] sm:$0xff] %vm2531_vm1, %v3705_v8  ;;  %v3960_v21 = vsel %vm2531_vm1, %v3705_v8, 0.0  ;;  %3836 = vst.msk [vmem:[%s8199_s10 + $0x2b8] sm:$0xff] %vm2531_vm1, %v3708_v5  ;;  %v4089_v39 = vsel %vm2531_vm1, %v3708_v5, 0.0  ;;  %v3962_v23 = vsel %vm2531_vm1, %v3707_v9, 0.0 }
 0x28b   :  { %3835 = vst.msk [vmem:[%s8199_s10 + $0x2b0] sm:$0xff] %vm2531_vm1, %v3707_v9  ;;  %v4417_v7 = vadd.f32 %v4416_v15, %v4415_v63  ;;  %v4423_v18 = vrot.slane %v4422_v26, 2  ;;  %v3961_v52 = vadd.f32 %v3960_v21, %v3959_v30  ;;  %v4427_v24 = vadd.f32 %v4087_v31, %v3960_v21 }
 0x28c   :  { %v4090_v10 = vadd.f32 %v4089_v39, %v4088_v12  ;;  %v4434_v11 = vadd.f32 %v4089_v39, %v3962_v23  ;;  %v3428_v22 = vadd.f32 %v7471_v61, %v6261_v56  ;;  %v3423_v27 = vadd.f32 %v7471_v61, %v3422_v20  ;;  %v6267_v28 = vpop.f32.mrb[92].mxu1 }
 0x28d   :  { %v4418_v25 = vrot.slane %v4417_v7, 1  ;;  %v4424_v29 = vadd.f32 %v4423_v18, %v4422_v26  ;;  %v4428_v32 = vrot.slane %v4427_v24, 4  ;;  %v3963_v54 = vadd.f32 %v3962_v23, %v3961_v52  ;;  %v3442_v36 = vpop.f32.mrb[93].mxu1 }
 0x28e   :  { %v4435_v37 = vrot.slane %v4434_v11, 4  ;;  %v3710_v40 = vmax.f32 %v3428_v22, 0.0  ;;  %v3709_v41 = vmax.f32 %v3423_v27, 0.0  ;;  %v4411_v42 = vrot.slane %v4410_v4, 1 }
 0x28f   :  { %v4419_v43 = vadd.f32 %v4418_v25, %v4417_v7  ;;  %v4425_v2 = vrot.slane %v4424_v29, 1  ;;  %v4429_v45 = vadd.f32 %v4428_v32, %v4427_v24  ;;  %v4694_v38 = vsel %vm4661_vm4, %v7725_v58, %v7722_v6 }
 0x290   :  { %v4436_v34 = vadd.f32 %v4435_v37, %v4434_v11  ;;  %3838 = vst.msk [vmem:[%s8199_s10 + $0x2c8] sm:$0xff] %vm2531_vm1, %v3710_v40  ;;  %v4091_v44 = vsel %vm2531_vm1, %v3710_v40, 0.0  ;;  %3837 = vst.msk [vmem:[%s8199_s10 + $0x2c0] sm:$0xff] %vm2531_vm1, %v3709_v41  ;;  %v3964_v59 = vsel %vm2531_vm1, %v3709_v41, 0.0  ;;  %v4412_v47 = vadd.f32 %v4411_v42, %v4410_v4  ;;  %v6270_v1 = vpop.f32.mrb[94].mxu1 }
 0x291   :  { %v4426_v33 = vadd.f32 %v4425_v2, %v4424_v29  ;;  %v4430_v51 = vrot.slane %v4429_v45, 2  ;;  %v4092_v6 = vadd.f32 %v4091_v44, %v4090_v10  ;;  %v3965_v58 = vadd.f32 %v3964_v59, %v3963_v54  ;;  %v3452_v13 = vpop.f32.mrb[95].mxu1 }
 0x292   :  { %v4437_v30 = vrot.slane %v4436_v34, 2  ;;  %v4441_v56 = vadd.f32 %v4091_v44, %v3964_v59  ;;  %v4695_v57 = vsel %vm4663_vm5, %v7742_v16, %v4694_v38  ;;  %v3438_v53 = vadd.f32 %v7471_v61, %v6264_v50 }
 0x293   :  { %v4699_v35 = vsel %vm4657_vm2, %v4426_v33, %v4419_v43  ;;  %v4431_v55 = vadd.f32 %v4430_v51, %v4429_v45  ;;  %v4696_v20 = vsel %vm4665_vm6, %v7773_v48, %v4695_v57  ;;  %v3433_v17 = vadd.f32 %v7471_v61, %v3432_v19 }
 0x294   :  { %v4438_v49 = vadd.f32 %v4437_v30, %v4436_v34  ;;  %v4442_v60 = vrot.slane %v4441_v56, 4  ;;  %v4697_v46 = vsel %vm4667_vm7, %v4405_v14, %v4696_v20  ;;  %v3712_v62 = vmax.f32 %v3438_v53, 0.0  ;;  %v6273_v63 = vpop.f32.mrb[96].mxu1 }
 0x295   :  { %v4432_v0 = vrot.slane %v4431_v55, 1  ;;  %v4698_v3 = vsel %vm4669_vm8, %v4412_v47, %v4697_v46  ;;  %v3711_v16 = vmax.f32 %v3433_v17, 0.0  ;;  %v3448_v4 = vadd.f32 %v7471_v61, %v6267_v28  ;;  %v3462_v8 = vpop.f32.mrb[97].mxu1  ;;  %v7850_v28 = vld [vmem:[%s8195_s6] ss:$0 sm:$0xff] }
 0x296   :  { %v4439_v5 = vrot.slane %v4438_v49, 1  ;;  %v4443_v9 = vadd.f32 %v4442_v60, %v4441_v56  ;;  %6333 = vmatprep.mubr.msk.f32.mxu1 %vm2531_vm1, %v4698_v3  ;;  %3840 = vst.msk [vmem:[%s8199_s10 + $0x2d8] sm:$0xff] %vm2531_vm1, %v3712_v62  ;;  %v4093_v48 = vsel %vm2531_vm1, %v3712_v62, 0.0  ;;  %v3443_v50 = vadd.f32 %v7471_v61, %v3442_v36 }
 0x297   :  { %v4433_v14 = vadd.f32 %v4432_v0, %v4431_v55  ;;  %v4094_v15 = vadd.f32 %v4093_v48, %v4092_v6  ;;  %3839 = vst.msk [vmem:[%s8199_s10 + $0x2d0] sm:$0xff] %vm2531_vm1, %v3711_v16  ;;  %v3966_v26 = vsel %vm2531_vm1, %v3711_v16, 0.0  ;;  %v3714_v31 = vmax.f32 %v3448_v4, 0.0 }
 0x298   :  { %v7836_v19 = vadd.f32 %v4439_v5, %v4438_v49  ;;  %v4444_v12 = vrot.slane %v4443_v9, 2  ;;  %v3967_v21 = vadd.f32 %v3966_v26, %v3965_v58  ;;  %v4448_v39 = vadd.f32 %v4093_v48, %v3966_v26  ;;  %v6276_v23 = vpop.f32.mrb[98].mxu1 }
 0x299   :  { %v7839_v7 = vsel %vm4659_vm3, %v4433_v14, %v4699_v35  ;;  %3842 = vst.msk [vmem:[%s8199_s10 + $0x2e8] sm:$0xff] %vm2531_vm1, %v3714_v31  ;;  %v4095_v18 = vsel %vm2531_vm1, %v3714_v31, 0.0  ;;  %v3713_v52 = vmax.f32 %v3443_v50, 0.0  ;;  %v3458_v24 = vadd.f32 %v7471_v61, %v6270_v1  ;;  %v3472_v10 = vpop.f32.mrb[99].mxu1 }
 0x29a   :  { %v4445_v11 = vadd.f32 %v4444_v12, %v4443_v9  ;;  %v4449_v22 = vrot.slane %v4448_v39, 4  ;;  %v4096_v27 = vadd.f32 %v4095_v18, %v4094_v15  ;;  %v3453_v25 = vadd.f32 %v7850_v28, %v3452_v13 }
 0x29b   :  { %3841 = vst.msk [vmem:[%s8199_s10 + $0x2e0] sm:$0xff] %vm2531_vm1, %v3713_v52  ;;  %v3968_v29 = vsel %vm2531_vm1, %v3713_v52, 0.0  ;;  %v3716_v32 = vmax.f32 %v3458_v24, 0.0  ;;  %v3468_v61 = vadd.f32 %v7850_v28, %v6273_v63  ;;  %v3463_v54 = vadd.f32 %v7850_v28, %v3462_v8 }
 0x29c   :  { %v4446_v36 = vrot.slane %v4445_v11, 1  ;;  %v4450_v37 = vadd.f32 %v4449_v22, %v4448_v39  ;;  %v3969_v40 = vadd.f32 %v3968_v29, %v3967_v21  ;;  %v4455_v41 = vadd.f32 %v4095_v18, %v3968_v29  ;;  %v6279_v42 = vpop.f32.mrb[100].mxu1 }
 0x29d   :  { %3844 = vst.msk [vmem:[%s8199_s10 + $0x2f8] sm:$0xff] %vm2531_vm1, %v3716_v32  ;;  %v4097_v43 = vsel %vm2531_vm1, %v3716_v32, 0.0  ;;  %v3715_v2 = vmax.f32 %v3453_v25, 0.0  ;;  %v3718_v45 = vmax.f32 %v3468_v61, 0.0  ;;  %v3717_v38 = vmax.f32 %v3463_v54, 0.0  ;;  %v3482_v34 = vpop.f32.mrb[101].mxu1 }
 0x29e   :  { %v7865_v44 = vadd.f32 %v4446_v36, %v4445_v11  ;;  %v4451_v59 = vrot.slane %v4450_v37, 2  ;;  %v4456_v47 = vrot.slane %v4455_v41, 4  ;;  %v4098_v1 = vadd.f32 %v4097_v43, %v4096_v27 }
 0x29f   :  { %3843 = vst.msk [vmem:[%s8199_s10 + $0x2f0] sm:$0xff] %vm2531_vm1, %v3715_v2  ;;  %v3970_v33 = vsel %vm2531_vm1, %v3715_v2, 0.0  ;;  %3846 = vst.msk [vmem:[%s8199_s10 + $0x308] sm:$0xff] %vm2531_vm1, %v3718_v45  ;;  %v4099_v51 = vsel %vm2531_vm1, %v3718_v45, 0.0  ;;  %v3972_v6 = vsel %vm2531_vm1, %v3717_v38, 0.0  ;;  %v3478_v58 = vadd.f32 %v7850_v28, %v6276_v23 }
 0x2a0   :  { %3845 = vst.msk [vmem:[%s8199_s10 + $0x300] sm:$0xff] %vm2531_vm1, %v3717_v38  ;;  %v4452_v13 = vadd.f32 %v4451_v59, %v4450_v37  ;;  %v4457_v30 = vadd.f32 %v4456_v47, %v4455_v41  ;;  %v3971_v56 = vadd.f32 %v3970_v33, %v3969_v40  ;;  %v4462_v57 = vadd.f32 %v4097_v43, %v3970_v33  ;;  %v6282_v53 = vpop.f32.mrb[102].mxu1 }
 0x2a1   :  { %v4100_v35 = vadd.f32 %v4099_v51, %v4098_v1  ;;  %v4469_v55 = vadd.f32 %v4099_v51, %v3972_v6  ;;  %v3720_v20 = vmax.f32 %v3478_v58, 0.0  ;;  %v3473_v17 = vadd.f32 %v7850_v28, %v3472_v10  ;;  %v3492_v49 = vpop.f32.mrb[103].mxu1 }
 0x2a2   :  { %v4453_v60 = vrot.slane %v4452_v13, 1  ;;  %v4458_v46 = vrot.slane %v4457_v30, 2  ;;  %v4463_v62 = vrot.slane %v4462_v57, 4  ;;  %v3973_v63 = vadd.f32 %v3972_v6, %v3971_v56 }
 0x2a3   :  { %v4470_v0 = vrot.slane %v4469_v55, 4  ;;  %3848 = vst.msk [vmem:[%s8199_s10 + $0x318] sm:$0xff] %vm2531_vm1, %v3720_v20  ;;  %v4101_v3 = vsel %vm2531_vm1, %v3720_v20, 0.0  ;;  %v3719_v16 = vmax.f32 %v3473_v17, 0.0  ;;  %v3488_v4 = vadd.f32 %v7850_v28, %v6279_v42 }
 0x2a4   :  { %v7890_v8 = vadd.f32 %v4453_v60, %v4452_v13  ;;  %v4459_v5 = vadd.f32 %v4458_v46, %v4457_v30  ;;  %v4464_v9 = vadd.f32 %v4463_v62, %v4462_v57  ;;  %v4102_v48 = vadd.f32 %v4101_v3, %v4100_v35  ;;  %v6285_v50 = vpop.f32.mrb[104].mxu1 }
 0x2a5   :  { %v4471_v14 = vadd.f32 %v4470_v0, %v4469_v55  ;;  %3847 = vst.msk [vmem:[%s8199_s10 + $0x310] sm:$0xff] %vm2531_vm1, %v3719_v16  ;;  %v3974_v15 = vsel %vm2531_vm1, %v3719_v16, 0.0  ;;  %v3722_v26 = vmax.f32 %v3488_v4, 0.0  ;;  %v3483_v31 = vadd.f32 %v7850_v28, %v3482_v34  ;;  %v3502_v12 = vpop.f32.mrb[105].mxu1 }
 0x2a6   :  { %v4460_v21 = vrot.slane %v4459_v5, 1  ;;  %v4465_v39 = vrot.slane %v4464_v9, 2  ;;  %v3975_v23 = vadd.f32 %v3974_v15, %v3973_v63  ;;  %v4476_v18 = vadd.f32 %v4101_v3, %v3974_v15 }
 0x2a7   :  { %v4472_v52 = vrot.slane %v4471_v14, 2  ;;  %3850 = vst.msk [vmem:[%s8199_s10 + $0x328] sm:$0xff] %vm2531_vm1, %v3722_v26  ;;  %v4103_v24 = vsel %vm2531_vm1, %v3722_v26, 0.0  ;;  %v3721_v10 = vmax.f32 %v3483_v31, 0.0  ;;  %v3498_v11 = vadd.f32 %v7850_v28, %v6282_v53 }
 0x2a8   :  { %v4461_v22 = vadd.f32 %v4460_v21, %v4459_v5  ;;  %v4466_v27 = vadd.f32 %v4465_v39, %v4464_v9  ;;  %v4477_v25 = vrot.slane %v4476_v18, 4  ;;  %v4104_v29 = vadd.f32 %v4103_v24, %v4102_v48  ;;  %v6288_v32 = vpop.f32.mrb[106].mxu1 }
 0x2a9   :  { %v4473_v61 = vadd.f32 %v4472_v52, %v4471_v14  ;;  %3849 = vst.msk [vmem:[%s8199_s10 + $0x320] sm:$0xff] %vm2531_vm1, %v3721_v10  ;;  %v3976_v54 = vsel %vm2531_vm1, %v3721_v10, 0.0  ;;  %v3724_v36 = vmax.f32 %v3498_v11, 0.0  ;;  %v3493_v37 = vadd.f32 %v7850_v28, %v3492_v49  ;;  %v3512_v40 = vpop.f32.mrb[107].mxu1 }
 0x2aa   :  { %v4478_v41 = vadd.f32 %v4477_v25, %v4476_v18  ;;  %v3977_v42 = vadd.f32 %v3976_v54, %v3975_v23  ;;  %v4483_v43 = vadd.f32 %v4103_v24, %v3976_v54  ;;  %v3508_v2 = vadd.f32 %v7850_v28, %v6285_v50 }
 0x2ab   :  { %v4474_v45 = vrot.slane %v4473_v61, 1  ;;  %3852 = vst.msk [vmem:[%s8199_s10 + $0x338] sm:$0xff] %vm2531_vm1, %v3724_v36  ;;  %v4105_v38 = vsel %vm2531_vm1, %v3724_v36, 0.0  ;;  %v3723_v34 = vmax.f32 %v3493_v37, 0.0  ;;  %v3503_v59 = vadd.f32 %v7850_v28, %v3502_v12 }
 0x2ac   :  { %v4479_v47 = vrot.slane %v4478_v41, 2  ;;  %v4484_v1 = vrot.slane %v4483_v43, 4  ;;  %v4106_v33 = vadd.f32 %v4105_v38, %v4104_v29  ;;  %v3726_v51 = vmax.f32 %v3508_v2, 0.0  ;;  %v6291_v6 = vpop.f32.mrb[108].mxu1 }
 0x2ad   :  { %v4475_v58 = vadd.f32 %v4474_v45, %v4473_v61  ;;  %3851 = vst.msk [vmem:[%s8199_s10 + $0x330] sm:$0xff] %vm2531_vm1, %v3723_v34  ;;  %v3978_v13 = vsel %vm2531_vm1, %v3723_v34, 0.0  ;;  %v3725_v30 = vmax.f32 %v3503_v59, 0.0  ;;  %v4467_v56 = vrot.slane %v4466_v27, 1  ;;  %v3522_v57 = vpop.f32.mrb[109].mxu1 }
 0x2ae   :  { %v4480_v53 = vadd.f32 %v4479_v47, %v4478_v41  ;;  %v4485_v35 = vadd.f32 %v4484_v1, %v4483_v43  ;;  %v3979_v55 = vadd.f32 %v3978_v13, %v3977_v42  ;;  %v4490_v20 = vadd.f32 %v4105_v38, %v3978_v13  ;;  %3854 = vst.msk [vmem:[%s8199_s10 + $0x348] sm:$0xff] %vm2531_vm1, %v3726_v51 }
 0x2af   :  { %v4107_v17 = vsel %vm2531_vm1, %v3726_v51, 0.0  ;;  %3853 = vst.msk [vmem:[%s8199_s10 + $0x340] sm:$0xff] %vm2531_vm1, %v3725_v30  ;;  %v3980_v49 = vsel %vm2531_vm1, %v3725_v30, 0.0  ;;  %v4468_v60 = vadd.f32 %v4467_v56, %v4466_v27  ;;  %v4701_v46 = vsel %vm4661_vm4, %v7836_v19, %v7839_v7  ;;  %v4857_v56 = vld [vmem:[%s8197_s8] sm:$0xff] }
 0x2b0   :  { %v4481_v62 = vrot.slane %v4480_v53, 1  ;;  %v4486_v63 = vrot.slane %v4485_v35, 2  ;;  %v4491_v0 = vrot.slane %v4490_v20, 4  ;;  %v4108_v3 = vadd.f32 %v4107_v17, %v4106_v33  ;;  %v6294_v16 = vpop.f32.mrb[110].mxu1 }
 0x2b1   :  { %v3981_v4 = vadd.f32 %v3980_v49, %v3979_v55  ;;  %v4497_v5 = vadd.f32 %v4107_v17, %v3980_v49  ;;  %v4702_v9 = vsel %vm4663_vm5, %v7865_v44, %v4701_v46  ;;  %v3518_v48 = vadd.f32 %v7850_v28, %v6288_v32  ;;  %v3532_v50 = vpop.f32.mrb[111].mxu1 }
 0x2b2   :  { %v4482_v14 = vadd.f32 %v4481_v62, %v4480_v53  ;;  %v4487_v15 = vadd.f32 %v4486_v63, %v4485_v35  ;;  %v4492_v26 = vadd.f32 %v4491_v0, %v4490_v20  ;;  %v4703_v31 = vsel %vm4665_vm6, %v7890_v8, %v4702_v9 }
 0x2b3   :  { %v4498_v19 = vrot.slane %v4497_v5, 4  ;;  %v4704_v7 = vsel %vm4667_vm7, %v4461_v22, %v4703_v31  ;;  %v3728_v12 = vmax.f32 %v3518_v48, 0.0  ;;  %v3513_v21 = vadd.f32 %v7850_v28, %v3512_v40 }
 0x2b4   :  { %v4706_v39 = vsel %vm4657_vm2, %v4482_v14, %v4475_v58  ;;  %v4488_v23 = vrot.slane %v4487_v15, 1  ;;  %v4493_v18 = vrot.slane %v4492_v26, 2  ;;  %v4705_v44 = vsel %vm4669_vm8, %v4468_v60, %v4704_v7  ;;  %v6297_v52 = vpop.f32.mrb[112].mxu1 }
 0x2b5   :  { %v4499_v24 = vadd.f32 %v4498_v19, %v4497_v5  ;;  %6334 = vmatmul.mubr.msk.f32.gmra.mrb[132].mxu1 %vm2531_vm1, %v4705_v44  ;;  %3856 = vst.msk [vmem:[%s8199_s10 + $0x358] sm:$0xff] %vm2531_vm1, %v3728_v12  ;;  %v4109_v8 = vsel %vm2531_vm1, %v3728_v12, 0.0  ;;  %v3727_v10 = vmax.f32 %v3513_v21, 0.0  ;;  %v3528_v11 = vadd.f32 %v7850_v28, %v6291_v6  ;;  %v3542_v22 = vpop.f32.mrb[113].mxu1 }
 0x2b6   :  { %v4489_v27 = vadd.f32 %v4488_v23, %v4487_v15  ;;  %v4494_v25 = vadd.f32 %v4493_v18, %v4492_v26  ;;  %v4110_v29 = vadd.f32 %v4109_v8, %v4108_v3  ;;  %v3523_v32 = vadd.f32 %v7850_v28, %v3522_v57  ;;  %v4858_v57 = vld [vmem:[%s8197_s8 + $0x8] sm:$0xff] }
 0x2b7   :  { %v4500_v61 = vrot.slane %v4499_v24, 2  ;;  %3855 = vst.msk [vmem:[%s8199_s10 + $0x350] sm:$0xff] %vm2531_vm1, %v3727_v10  ;;  %v3982_v54 = vsel %vm2531_vm1, %v3727_v10, 0.0  ;;  %v3730_v36 = vmax.f32 %v3528_v11, 0.0  ;;  %v3538_v37 = vadd.f32 %v7850_v28, %v6294_v16 }
 0x2b8   :  { %v7959_v40 = vsel %vm4659_vm3, %v4489_v27, %v4706_v39  ;;  %v4495_v41 = vrot.slane %v4494_v25, 1  ;;  %v3983_v42 = vadd.f32 %v3982_v54, %v3981_v4  ;;  %v4504_v43 = vadd.f32 %v4109_v8, %v3982_v54 }
 0x2b9   :  { %v4501_v2 = vadd.f32 %v4500_v61, %v4499_v24  ;;  %3858 = vst.msk [vmem:[%s8199_s10 + $0x368] sm:$0xff] %vm2531_vm1, %v3730_v36  ;;  %v4111_v45 = vsel %vm2531_vm1, %v3730_v36, 0.0  ;;  %v3729_v38 = vmax.f32 %v3523_v32, 0.0  ;;  %v3732_v34 = vmax.f32 %v3538_v37, 0.0 }
 0x2ba   :  { %v7966_v59 = vadd.f32 %v4495_v41, %v4494_v25  ;;  %v4505_v47 = vrot.slane %v4504_v43, 4  ;;  %v4112_v1 = vadd.f32 %v4111_v45, %v4110_v29  ;;  %v3533_v33 = vadd.f32 %v7850_v28, %v3532_v50  ;;  %v6300_v51 = vpop.f32.mrb[114].mxu1 }
 0x2bb   :  { %v4502_v6 = vrot.slane %v4501_v2, 1  ;;  %3857 = vst.msk [vmem:[%s8199_s10 + $0x360] sm:$0xff] %vm2531_vm1, %v3729_v38  ;;  %v3984_v58 = vsel %vm2531_vm1, %v3729_v38, 0.0  ;;  %3860 = vst.msk [vmem:[%s8199_s10 + $0x378] sm:$0xff] %vm2531_vm1, %v3732_v34  ;;  %v4113_v13 = vsel %vm2531_vm1, %v3732_v34, 0.0  ;;  %v3548_v30 = vadd.f32 %v7850_v28, %v6297_v52  ;;  %v3552_v53 = vpop.f32.mrb[115].mxu1 }
 0x2bc   :  { %v4506_v35 = vadd.f32 %v4505_v47, %v4504_v43  ;;  %v3985_v55 = vadd.f32 %v3984_v58, %v3983_v42  ;;  %v4511_v20 = vadd.f32 %v4111_v45, %v3984_v58  ;;  %v4114_v17 = vadd.f32 %v4113_v13, %v4112_v1 }
 0x2bd   :  { %v7986_v49 = vadd.f32 %v4502_v6, %v4501_v2  ;;  %v3731_v60 = vmax.f32 %v3533_v33, 0.0  ;;  %v3734_v46 = vmax.f32 %v3548_v30, 0.0  ;;  %v3543_v62 = vadd.f32 %v7850_v28, %v3542_v22  ;;  %v4859_v33 = vld [vmem:[%s8197_s8 + $0x10] sm:$0xff] }
 0x2be   :  { %v4507_v63 = vrot.slane %v4506_v35, 2  ;;  %v4512_v0 = vrot.slane %v4511_v20, 4  ;;  %v6391_v3 = vpack.c.bf16 %v4858_v57, %v4857_v56  ;;  %v3558_v16 = vadd.f32 %v7850_v28, %v6300_v51  ;;  %v6303_v4 = vpop.f32.mrb[116].mxu1  ;;  %v4860_v51 = vld [vmem:[%s8197_s8 + $0x18] sm:$0xff] }
 0x2bf   :  { %3859 = vst.msk [vmem:[%s8199_s10 + $0x370] sm:$0xff] %vm2531_vm1, %v3731_v60  ;;  %v3986_v5 = vsel %vm2531_vm1, %v3731_v60, 0.0  ;;  %3862 = vst.msk [vmem:[%s8199_s10 + $0x388] sm:$0xff] %vm2531_vm1, %v3734_v46  ;;  %v4115_v9 = vsel %vm2531_vm1, %v3734_v46, 0.0  ;;  %v3733_v48 = vmax.f32 %v3543_v62, 0.0  ;;  %v3553_v50 = vadd.f32 %v7850_v28, %v3552_v53  ;;  %v3562_v14 = vpop.f32.mrb[117].mxu1 }
 0x2c0   :  { %v4508_v15 = vadd.f32 %v4507_v63, %v4506_v35  ;;  %v4513_v26 = vadd.f32 %v4512_v0, %v4511_v20  ;;  %v3987_v31 = vadd.f32 %v3986_v5, %v3985_v55  ;;  %v4518_v19 = vadd.f32 %v4113_v13, %v3986_v5  ;;  %6392 = vmatprep.subr.bf16.mxu0 %v6391_v3 }
 0x2c1   :  { %v4116_v7 = vadd.f32 %v4115_v9, %v4114_v17  ;;  %3861 = vst.msk [vmem:[%s8199_s10 + $0x380] sm:$0xff] %vm2531_vm1, %v3733_v48  ;;  %v3988_v12 = vsel %vm2531_vm1, %v3733_v48, 0.0  ;;  %v3736_v21 = vmax.f32 %v3558_v16, 0.0  ;;  %6394 = vmatpush3.bf16.msra.mxu0 %v6391_v3  ;;  %v3735_v39 = vmax.f32 %v3553_v50, 0.0  ;;  %6399 = vmatprep.subr.bf16.mxu1 %v6391_v3 }
 0x2c2   :  { %v4509_v23 = vrot.slane %v4508_v15, 1  ;;  %v4514_v18 = vrot.slane %v4513_v26, 2  ;;  %v4519_v44 = vrot.slane %v4518_v19, 4  ;;  %v3989_v52 = vadd.f32 %v3988_v12, %v3987_v31  ;;  %6401 = vmatpush3.bf16.msra.mxu1 %v6391_v3 }
 0x2c3   :  { %v4525_v24 = vadd.f32 %v4115_v9, %v3988_v12  ;;  %3864 = vst.msk [vmem:[%s8199_s10 + $0x398] sm:$0xff] %vm2531_vm1, %v3736_v21  ;;  %v4117_v8 = vsel %vm2531_vm1, %v3736_v21, 0.0  ;;  %3863 = vst.msk [vmem:[%s8199_s10 + $0x390] sm:$0xff] %vm2531_vm1, %v3735_v39  ;;  %v3990_v10 = vsel %vm2531_vm1, %v3735_v39, 0.0  ;;  %v3568_v11 = vadd.f32 %v7850_v28, %v6303_v4 }
 0x2c4   :  { %v8017_v22 = vadd.f32 %v4509_v23, %v4508_v15  ;;  %v4515_v27 = vadd.f32 %v4514_v18, %v4513_v26  ;;  %v4520_v25 = vadd.f32 %v4519_v44, %v4518_v19  ;;  %v4118_v29 = vadd.f32 %v4117_v8, %v4116_v7  ;;  %v6306_v32 = vpop.f32.mrb[118].mxu1 }
 0x2c5   :  { %v4526_v61 = vrot.slane %v4525_v24, 4  ;;  %v3991_v54 = vadd.f32 %v3990_v10, %v3989_v52  ;;  %v4532_v36 = vadd.f32 %v4117_v8, %v3990_v10  ;;  %v3738_v37 = vmax.f32 %v3568_v11, 0.0  ;;  %v3572_v41 = vpop.f32.mrb[119].mxu1 }
 0x2c6   :  { %v4516_v42 = vrot.slane %v4515_v27, 1  ;;  %v4521_v43 = vrot.slane %v4520_v25, 2  ;;  %v3563_v2 = vadd.f32 %v7850_v28, %v3562_v14  ;;  %v3578_v45 = vadd.f32 %v7850_v28, %v6306_v32 }
 0x2c7   :  { %v4527_v38 = vadd.f32 %v4526_v61, %v4525_v24  ;;  %v4533_v34 = vrot.slane %v4532_v36, 4  ;;  %3866 = vst.msk [vmem:[%s8199_s10 + $0x3a8] sm:$0xff] %vm2531_vm1, %v3738_v37  ;;  %v4119_v47 = vsel %vm2531_vm1, %v3738_v37, 0.0  ;;  %v3573_v1 = vadd.f32 %v7850_v28, %v3572_v41 }
 0x2c8   :  { %v4517_v6 = vadd.f32 %v4516_v42, %v4515_v27  ;;  %v4522_v58 = vadd.f32 %v4521_v43, %v4520_v25  ;;  %v4120_v13 = vadd.f32 %v4119_v47, %v4118_v29  ;;  %v3737_v30 = vmax.f32 %v3563_v2, 0.0 }
 0x2c9   :  { %v4528_v56 = vrot.slane %v4527_v38, 2  ;;  %v4534_v57 = vadd.f32 %v4533_v34, %v4532_v36  ;;  %v3740_v53 = vmax.f32 %v3578_v45, 0.0  ;;  %v3739_v35 = vmax.f32 %v3573_v1, 0.0 }
 0x2ca   :  { %3865 = vst.msk [vmem:[%s8199_s10 + $0x3a0] sm:$0xff] %vm2531_vm1, %v3737_v30  ;;  %v3992_v55 = vsel %vm2531_vm1, %v3737_v30, 0.0  ;;  %v6309_v20 = vpop.f32.mrb[120].mxu1  ;;  %v4523_v17 = vrot.slane %v4522_v58, 1  ;;  %v4708_v60 = vsel %vm4661_vm4, %v7966_v59, %v7959_v40  ;;  %v6395_v46 = vpack.c.bf16 %v4860_v51, %v4859_v33 }
 0x2cb   :  { %v4529_v62 = vadd.f32 %v4528_v56, %v4527_v38  ;;  %v4535_v63 = vrot.slane %v4534_v57, 2  ;;  %v3993_v0 = vadd.f32 %v3992_v55, %v3991_v54  ;;  %v4539_v3 = vadd.f32 %v4119_v47, %v3992_v55  ;;  %3868 = vst.msk [vmem:[%s8199_s10 + $0x3b8] sm:$0xff] %vm2531_vm1, %v3740_v53  ;;  %3867 = vst.msk [vmem:[%s8199_s10 + $0x3b0] sm:$0xff] %vm2531_vm1, %v3739_v35  ;;  %v3582_v16 = vpop.f32.mrb[121].mxu1 }
 0x2cc   :  { %v4121_v4 = vsel %vm2531_vm1, %v3740_v53, 0.0  ;;  %v3994_v40 = vsel %vm2531_vm1, %v3739_v35, 0.0  ;;  %v3588_v59 = vadd.f32 %v7850_v28, %v6309_v20  ;;  %v3583_v5 = vadd.f32 %v7850_v28, %v3582_v16  ;;  %6396 = vmatprep.subr.bf16.mxu0 %v6395_v46  ;;  %6400 = vmatprep.subr.bf16.mxu1 %v6395_v46 }
 0x2cd   :  { %v4530_v9 = vrot.slane %v4529_v62, 1  ;;  %v4536_v48 = vadd.f32 %v4535_v63, %v4534_v57  ;;  %v4540_v50 = vrot.slane %v4539_v3, 4  ;;  %v4122_v14 = vadd.f32 %v4121_v4, %v4120_v13  ;;  %6398 = vmatpush3.bf16.msra.mxu0 %v6395_v46  ;;  %6402 = vmatpush3.bf16.msra.mxu1 %v6395_v46 }
 0x2ce   :  { %v3995_v15 = vadd.f32 %v3994_v40, %v3993_v0  ;;  %v4546_v26 = vadd.f32 %v4121_v4, %v3994_v40  ;;  %v3742_v31 = vmax.f32 %v3588_v59, 0.0  ;;  %v3741_v19 = vmax.f32 %v3583_v5, 0.0 }
 0x2cf   :  { %v4531_v7 = vadd.f32 %v4530_v9, %v4529_v62  ;;  %v4537_v12 = vrot.slane %v4536_v48, 1  ;;  %v4541_v21 = vadd.f32 %v4540_v50, %v4539_v3  ;;  %v4524_v39 = vadd.f32 %v4523_v17, %v4522_v58 }
 0x2d0   :  { %v4547_v23 = vrot.slane %v4546_v26, 4  ;;  %3870 = vst.msk [vmem:[%s8199_s10 + $0x3c8] sm:$0xff] %vm2531_vm1, %v3742_v31  ;;  %v4123_v18 = vsel %vm2531_vm1, %v3742_v31, 0.0  ;;  %3869 = vst.msk [vmem:[%s8199_s10 + $0x3c0] sm:$0xff] %vm2531_vm1, %v3741_v19  ;;  %v3996_v44 = vsel %vm2531_vm1, %v3741_v19, 0.0  ;;  %v4709_v52 = vsel %vm4663_vm5, %v7986_v49, %v4708_v60  ;;  %v6312_v24 = vpop.f32.mrb[122].mxu1 }
 0x2d1   :  { %v4538_v8 = vadd.f32 %v4537_v12, %v4536_v48  ;;  %v4542_v10 = vrot.slane %v4541_v21, 2  ;;  %v4124_v11 = vadd.f32 %v4123_v18, %v4122_v14  ;;  %v3997_v27 = vadd.f32 %v3996_v44, %v3995_v15  ;;  %v3592_v25 = vpop.f32.mrb[123].mxu1 }
 0x2d2   :  { %v4548_v29 = vadd.f32 %v4547_v23, %v4546_v26  ;;  %v4553_v32 = vadd.f32 %v4123_v18, %v3996_v44  ;;  %v4710_v61 = vsel %vm4665_vm6, %v8017_v22, %v4709_v52  ;;  %v3598_v54 = vadd.f32 %v7850_v28, %v6312_v24 }
 0x2d3   :  { %v4713_v36 = vsel %vm4657_vm2, %v4538_v8, %v4531_v7  ;;  %v4543_v37 = vadd.f32 %v4542_v10, %v4541_v21  ;;  %v4711_v41 = vsel %vm4667_vm7, %v4517_v6, %v4710_v61  ;;  %v3593_v49 = vadd.f32 %v7850_v28, %v3592_v25 }
 0x2d4   :  { %v4549_v42 = vrot.slane %v4548_v29, 2  ;;  %v4554_v43 = vrot.slane %v4553_v32, 4  ;;  %v4712_v2 = vsel %vm4669_vm8, %v4524_v39, %v4711_v41  ;;  %v3744_v45 = vmax.f32 %v3598_v54, 0.0  ;;  %v6315_v38 = vpop.f32.mrb[124].mxu1 }
 0x2d5   :  { %v4544_v34 = vrot.slane %v4543_v37, 1  ;;  %6336 = vmatprep.mubr.msk.f32.mxu1 %vm2531_vm1, %v4712_v2  ;;  %v3743_v47 = vmax.f32 %v3593_v49, 0.0  ;;  %v3608_v22 = vadd.f32 %v7850_v28, %v6315_v38  ;;  %v3602_v1 = vpop.f32.mrb[125].mxu1  ;;  %v4582_v2 = vld [vmem:[%s8191_s2 + $0x8] sm:$0xff] }
 0x2d6   :  { %v4550_v33 = vadd.f32 %v4549_v42, %v4548_v29  ;;  %v4555_v51 = vadd.f32 %v4554_v43, %v4553_v32  ;;  %3872 = vst.msk [vmem:[%s8199_s10 + $0x3d8] sm:$0xff] %vm2531_vm1, %v3744_v45  ;;  %v4125_v6 = vsel %vm2531_vm1, %v3744_v45, 0.0  ;;  %v3603_v58 = vadd.f32 %v7850_v28, %v3602_v1  ;;  %v4581_v45 = vld [vmem:[%s8191_s2] sm:$0xff] }
 0x2d7   :  { %v4545_v13 = vadd.f32 %v4544_v34, %v4543_v37  ;;  %v4126_v30 = vadd.f32 %v4125_v6, %v4124_v11  ;;  %3871 = vst.msk [vmem:[%s8199_s10 + $0x3d0] sm:$0xff] %vm2531_vm1, %v3743_v47  ;;  %v3998_v56 = vsel %vm2531_vm1, %v3743_v47, 0.0  ;;  %v3746_v57 = vmax.f32 %v3608_v22, 0.0 }
 0x2d8   :  { %v4551_v53 = vrot.slane %v4550_v33, 1  ;;  %v4556_v35 = vrot.slane %v4555_v51, 2  ;;  %v3999_v55 = vadd.f32 %v3998_v56, %v3997_v27  ;;  %v4560_v20 = vadd.f32 %v4125_v6, %v3998_v56  ;;  %v6318_v17 = vpop.f32.mrb[126].mxu1  ;;  %v4583_v6 = vld [vmem:[%s8191_s2 + $0x10] sm:$0xff] }
 0x2d9   :  { %v4714_v60 = vsel %vm4659_vm3, %v4545_v13, %v4713_v36  ;;  %3874 = vst.msk [vmem:[%s8199_s10 + $0x3e8] sm:$0xff] %vm2531_vm1, %v3746_v57  ;;  %v4127_v46 = vsel %vm2531_vm1, %v3746_v57, 0.0  ;;  %v3745_v62 = vmax.f32 %v3603_v58, 0.0  ;;  %v3618_v63 = vadd.f32 %v7850_v28, %v6318_v17  ;;  %v3612_v0 = vpop.f32.mrb[127].mxu1 }
 0x2da   :  { %v4552_v3 = vadd.f32 %v4551_v53, %v4550_v33  ;;  %v4557_v16 = vadd.f32 %v4556_v35, %v4555_v51  ;;  %v4561_v4 = vrot.slane %v4560_v20, 4  ;;  %v4128_v40 = vadd.f32 %v4127_v46, %v4126_v30  ;;  %v4584_v51 = vld [vmem:[%s8191_s2 + $0x18] sm:$0xff]  ;;  %v4586_v35 = vld [vmem:[%s8191_s2 + $0x28] sm:$0xff] }
 0x2db   :  { %3873 = vst.msk [vmem:[%s8199_s10 + $0x3e0] sm:$0xff] %vm2531_vm1, %v3745_v62  ;;  %v4000_v59 = vsel %vm2531_vm1, %v3745_v62, 0.0  ;;  %v3748_v5 = vmax.f32 %v3618_v63, 0.0  ;;  %v3613_v9 = vadd.f32 %v7850_v28, %v3612_v0  ;;  %v4588_v0 = vld [vmem:[%s8191_s2 + $0x38] sm:$0xff] }
 0x2dc   :  { %v4558_v48 = vrot.slane %v4557_v16, 1  ;;  %v4562_v50 = vadd.f32 %v4561_v4, %v4560_v20  ;;  %v4001_v14 = vadd.f32 %v4000_v59, %v3999_v55  ;;  %v4567_v15 = vadd.f32 %v4127_v46, %v4000_v59  ;;  %v4585_v55 = vld [vmem:[%s8191_s2 + $0x20] sm:$0xff] }
 0x2dd   :  { %3876 = vst.msk [vmem:[%s8199_s10 + $0x3f8] sm:$0xff] %vm2531_vm1, %v3748_v5  ;;  %v4129_v26 = vsel %vm2531_vm1, %v3748_v5, 0.0  ;;  %v3747_v31 = vmax.f32 %v3613_v9, 0.0  ;;  %v4715_v19 = vsel %vm4661_vm4, %v4552_v3, %v4714_v60  ;;  %v4587_v3 = vld [vmem:[%s8191_s2 + $0x30] sm:$0xff] }
 0x2de   :  { %v4559_v7 = vadd.f32 %v4558_v48, %v4557_v16  ;;  %v4563_v12 = vrot.slane %v4562_v50, 2  ;;  %v4568_v21 = vrot.slane %v4567_v15, 4  ;;  %v4130_v39 = vadd.f32 %v4129_v26, %v4128_v40  ;;  %v5291_v48 = vld [vmem:[%s8198_s9] ss:$0 sm:$0xff] }
 0x2df   :  { %3875 = vst.msk [vmem:[%s8199_s10 + $0x3f0] sm:$0xff] %vm2531_vm1, %v3747_v31  ;;  %v4002_v28 = vsel %vm2531_vm1, %v3747_v31, 0.0 }
 0x2e0   :  { %v4564_v23 = vadd.f32 %v4563_v12, %v4562_v50  ;;  %v4569_v18 = vadd.f32 %v4568_v21, %v4567_v15  ;;  %4132 = vst.msk [vmem:[%s8201_s12 + $0x8] sm:$0xff] %vm2531_vm1, %v4130_v39  ;;  %v4003_v44 = vadd.f32 %v4002_v28, %v4001_v14  ;;  %v4574_v52 = vadd.f32 %v4129_v26, %v4002_v28 }
 0x2e1   :  { %v4716_v24 = vsel %vm4663_vm5, %v4559_v7, %v4715_v19 }
 0x2e2   :  { %v4565_v8 = vrot.slane %v4564_v23, 1  ;;  %v4570_v10 = vrot.slane %v4569_v18, 2  ;;  %4131 = vst.msk [vmem:[%s8201_s12] sm:$0xff] %vm2531_vm1, %v4003_v44  ;;  %v4575_v11 = vrot.slane %v4574_v52, 4 }
 0x2e4   :  { %v4566_v27 = vadd.f32 %v4565_v8, %v4564_v23  ;;  %v4571_v25 = vadd.f32 %v4570_v10, %v4569_v18  ;;  %v4576_v29 = vadd.f32 %v4575_v11, %v4574_v52 }
 0x2e6   :  { %v4572_v32 = vrot.slane %v4571_v25, 1  ;;  %v4577_v61 = vrot.slane %v4576_v29, 2  ;;  %v4717_v54 = vsel %vm4665_vm6, %v4566_v27, %v4716_v24 }
 0x2e8   :  { %v4573_v36 = vadd.f32 %v4572_v32, %v4571_v25  ;;  %v4578_v37 = vadd.f32 %v4577_v61, %v4576_v29 }
 0x2ea   :  { %v4579_v41 = vrot.slane %v4578_v37, 1  ;;  %v4718_v49 = vsel %vm4667_vm7, %v4573_v36, %v4717_v54 }
 0x2ec   :  { %v4580_v42 = vadd.f32 %v4579_v41, %v4578_v37 }
 0x2ee   :  { %v4719_v43 = vsel %vm4669_vm8, %v4580_v42, %v4718_v49 }
 0x2ef   :  { %6337 = vmatmul.mubr.msk.f32.gmra.mrb[134].mxu1 %vm2531_vm1, %v4719_v43 }
 0x306   :  { %v6329_v38 = vpop.f32.mrb[128].mxu1 }
 0x307   :  { %v4842_v34 = vadd.f32 %v6329_v38, %v4582_v2  ;;  %v4802_v47 = vpop.f32.mrb[129].mxu1 }
 0x308   :  { %v4841_v22 = vadd.f32 %v4802_v47, %v4581_v45 }
 0x309   :  { %v4850_v33 = vmax.f32 %v4842_v34, 0.0 }
 0x30a   :  { %v4849_v1 = vmax.f32 %v4841_v22, 0.0 }
 0x30c   :  { %6347 = vmatprep.mubr.msk.f32.mxu0 %vm2531_vm1, %v4849_v1 }
 0x30d   :  { %6348 = vmatmul.mubr.msk.f32.vlgmr.msra.gmra.mrb[128].mxu0 %vm2531_vm1, %v4850_v33 }
 0x349   :  { %v6332_v58 = vpop.f32.mrb[130].mxu1 }
 0x34a   :  { %v4844_v13 = vadd.f32 %v6332_v58, %v4584_v51  ;;  %v4812_v30 = vpop.f32.mrb[131].mxu1 }
 0x34b   :  { %v4843_v56 = vadd.f32 %v4812_v30, %v4583_v6 }
 0x34c   :  { %v4852_v53 = vmax.f32 %v4844_v13, 0.0 }
 0x34d   :  { %v4851_v57 = vmax.f32 %v4843_v56, 0.0 }
 0x34f   :  { %6350 = vmatprep.mubr.msk.f32.mxu0 %vm2531_vm1, %v4851_v57 }
 0x350   :  { %6351 = vmatmul.mubr.msk.f32.gmra.mrb[130].mxu0 %vm2531_vm1, %v4852_v53 }
 0x388   :  { %v6335_v20 = vpop.f32.mrb[132].mxu1 }
 0x389   :  { %v4846_v17 = vadd.f32 %v6335_v20, %v4586_v35  ;;  %v4822_v60 = vpop.f32.mrb[133].mxu1 }
 0x38a   :  { %v4845_v46 = vadd.f32 %v4822_v60, %v4585_v55 }
 0x38b   :  { %v4854_v63 = vmax.f32 %v4846_v17, 0.0 }
 0x38c   :  { %v4853_v62 = vmax.f32 %v4845_v46, 0.0 }
 0x38e   :  { %6353 = vmatprep.mubr.msk.f32.mxu0 %vm2531_vm1, %v4853_v62 }
 0x38f   :  { %6354 = vmatmul.mubr.msk.f32.gmra.mrb[132].mxu0 %vm2531_vm1, %v4854_v63 }
 0x3c2   :  { %v6338_v16 = vpop.f32.mrb[134].mxu1 }
 0x3c3   :  { %v4848_v4 = vadd.f32 %v6338_v16, %v4588_v0  ;;  %v4832_v40 = vpop.f32.mrb[135].mxu1 }
 0x3c4   :  { %v4847_v59 = vadd.f32 %v4832_v40, %v4587_v3 }
 0x3c5   :  { %v4856_v9 = vmax.f32 %v4848_v4, 0.0 }
 0x3c6   :  { %v4855_v5 = vmax.f32 %v4847_v59, 0.0 }
 0x3c8   :  { %6356 = vmatprep.mubr.msk.f32.mxu1 %vm2531_vm1, %v4855_v5 }
 0x3c9   :  { %6357 = vmatmul.mubr.msk.f32.vlgmr.msra.gmra.mrb[136].mxu1 %vm2531_vm1, %v4856_v9 }
 0x3e0   :  { %v6349_v50 = vpop.f32.mrb[128].mxu0 }
 0x3e1   :  { %v4964_v14 = vadd.f32 %v6349_v50, %v5291_v48  ;;  %v4958_v15 = vpop.f32.mrb[129].mxu0 }
 0x3e2   :  { %v4959_v26 = vadd.f32 %v5291_v48, %v4958_v15 }
 0x3e3   :  { %v4998_v31 = vmax.f32 %v4964_v14, 0.0 }
 0x3e4   :  { %v4997_v19 = vmax.f32 %v4959_v26, 0.0 }
 0x3e5   :  { %5006 = vst.msk [vmem:[%s8200_s11 + $0x8] sm:$0xff] %vm2531_vm1, %v4998_v31 }
 0x3e6   :  { %5005 = vst.msk [vmem:[%s8200_s11] sm:$0xff] %vm2531_vm1, %v4997_v19 }
 0x423   :  { %v6352_v7 = vpop.f32.mrb[130].mxu0 }
 0x424   :  { %v4974_v12 = vadd.f32 %v6352_v7, %v5291_v48  ;;  %v4968_v21 = vpop.f32.mrb[131].mxu0 }
 0x425   :  { %v4969_v39 = vadd.f32 %v5291_v48, %v4968_v21 }
 0x426   :  { %v5000_v28 = vmax.f32 %v4974_v12, 0.0 }
 0x427   :  { %v4999_v23 = vmax.f32 %v4969_v39, 0.0 }
 0x428   :  { %5008 = vst.msk [vmem:[%s8200_s11 + $0x18] sm:$0xff] %vm2531_vm1, %v5000_v28 }
 0x429   :  { %5007 = vst.msk [vmem:[%s8200_s11 + $0x10] sm:$0xff] %vm2531_vm1, %v4999_v23 }
 0x462   :  { %v6355_v18 = vpop.f32.mrb[132].mxu0 }
 0x463   :  { %v4984_v44 = vadd.f32 %v6355_v18, %v5291_v48  ;;  %v4978_v52 = vpop.f32.mrb[133].mxu0 }
 0x464   :  { %v4979_v24 = vadd.f32 %v5291_v48, %v4978_v52 }
 0x465   :  { %v5002_v8 = vmax.f32 %v4984_v44, 0.0 }
 0x466   :  { %v5001_v10 = vmax.f32 %v4979_v24, 0.0 }
 0x467   :  { %5010 = vst.msk [vmem:[%s8200_s11 + $0x28] sm:$0xff] %vm2531_vm1, %v5002_v8 }
 0x468   :  { %5009 = vst.msk [vmem:[%s8200_s11 + $0x20] sm:$0xff] %vm2531_vm1, %v5001_v10 }
 0x49c   :  { %v6358_v11 = vpop.f32.mrb[136].mxu1 }
 0x49d   :  { %v4994_v27 = vadd.f32 %v6358_v11, %v5291_v48  ;;  %v4988_v25 = vpop.f32.mrb[137].mxu1 }
 0x49e   :  { %v4989_v29 = vadd.f32 %v5291_v48, %v4988_v25 }
 0x49f   :  { %v5004_v32 = vmax.f32 %v4994_v27, 0.0 }
 0x4a0   :  { %v5003_v61 = vmax.f32 %v4989_v29, 0.0 }
 0x4a1   :  { %5012 = vst.msk [vmem:[%s8200_s11 + $0x38] sm:$0xff] %vm2531_vm1, %v5004_v32 }
 0x4a2   :  { %5011 = vst.msk [vmem:[%s8200_s11 + $0x30] sm:$0xff] %vm2531_vm1, %v5003_v61 }
 0x4a3   :  { %5025 = vsyncpa [#allocation3], 1 }

</bundles_post_ra>
